<compile_context>
chip_gen: v7x
topology: tpu7x:2x2x1
jax: 0.10.0
libtpu: 0.0.40
codegen_flags: <defaults>
</compile_context>

<pallas_src>
import functools

import jax
import jax.numpy as jnp
from jax.experimental import pallas as pl
from jax.experimental.pallas import tpu as pltpu

LANE = 128
SUBLANE = 8
MIB = 1024 * 1024

# Set to False automatically (once) if pl.Buffered pipeline hints are rejected.
_BUFFER_HINTS_OK = [True]


def _rup(x, m):
    return ((x + m - 1) // m) * m


def _pad2(a, rows, cols):
    r, c = a.shape
    return jnp.pad(a, ((0, rows - r), (0, cols - c)))


def _vmem_budget_bytes():
    """Generation-aware VMEM budget: ~50 MiB on v7x (64 MiB physical),
    ~100 MiB on v5e/v6e (128 MiB physical)."""
    cap = 64 * MIB  # conservative fallback (v7x per-TensorCore VMEM)
    try:
        cap = int(pltpu.get_tpu_info().vmem_capacity_bytes)
    except Exception:
        pass
    return max(32 * MIB, min(int(cap * 0.78), 100 * MIB))


def _bspec(shape, index_map, n_buf=None):
    """BlockSpec with an optional pipeline-depth hint (best effort)."""
    if n_buf is None or not _BUFFER_HINTS_OK[0] or not hasattr(pl, "Buffered"):
        return pl.BlockSpec(shape, index_map)
    try:
        return pl.BlockSpec(shape, index_map, pipeline_mode=pl.Buffered(n_buf))
    except TypeError:
        return pl.BlockSpec(shape, index_map)


# ------------------------------- fused kernel -------------------------------

def _condnet_kernel(*refs, n_params, dims):
    x_ref = refs[0]
    p = refs[1:1 + n_params]
    o_ref = refs[1 + n_params]
    acc_ref = refs[2 + n_params]

    RBp = dims["RBp"]
    F1p = dims["F1p"]

    k = pl.program_id(1)

    @pl.when(k == 0)
    def _init():
        acc_ref[...] = jnp.zeros_like(acc_ref)

    # K-tiled first Linear of cat_drop (the only large matmul).
    # x / W1 blocks are bf16; accumulation stays f32 in VMEM scratch.
    acc_ref[...] += jnp.dot(x_ref[...], p[0][...],
                            preferred_element_type=jnp.float32)

    @pl.when(k == pl.num_programs(1) - 1)
    def _tail():
        def lin(h, w_ref, b_ref, act):
            y = jnp.dot(h, w_ref[...], preferred_element_type=jnp.float32)
            y = y + b_ref[...]
            if act == "relu":
                y = jnp.maximum(y, 0.0)
            elif act == "tanh":
                y = jnp.tanh(y)
            return y

        # ---- rest of cat_drop ------------------------------------------
        h = jnp.maximum(acc_ref[...] + p[1][...], 0.0)      # ReLU(x@W1 + b1)
        h = lin(h, p[2], p[3], "relu")
        catb = lin(h, p[4], p[5], "none")                   # (tm, RBp)

        # pieces of the (virtually concatenated) cat_base; widths are padded
        pieces = [(catb, RBp)]

        def head(w1_ref, b1_ref, w2_ref, b2_ref, w3_ref, b3_ref):
            # first layer: split-weight dots instead of a concat
            pre = None
            off = 0
            for val, width in pieces:
                d = jnp.dot(val, w1_ref[off:off + width, :],
                            preferred_element_type=jnp.float32)
                pre = d if pre is None else pre + d
                off += width
            t = jnp.maximum(pre + b1_ref[...], 0.0)
            t = lin(t, w2_ref, b2_ref, "tanh")
            return lin(t, w3_ref, b3_ref, "none")

        # ---- cat_next -> c ---------------------------------------------
        c = head(p[6], p[7], p[8], p[9], p[10], p[11])
        outs = [c]
        prev = c

        i = 12
        for _ in range(4):                                  # s1, s2, r1, r2
            wb, bb = p[i], p[i + 1]
            base = lin(prev, wb, bb, "relu")                # (tm, F1p)
            pieces.append((base, F1p))
            y = head(p[i + 2], p[i + 3], p[i + 4],
                     p[i + 5], p[i + 6], p[i + 7])
            outs.append(y)
            prev = y
            i += 8

        # lane-dense packed output slab (offsets / widths are 128-aligned)
        for y, off, width in zip(outs, dims["out_offsets"], dims["out_widths"]):
            o_ref[:, off:off + width] = y.astype(o_ref.dtype)


# ------------------------- parameter construction ---------------------------

def _init_linear(key, fan_in, fan_out):
    kw, kb = jax.random.split(key)
    bound = 1.0 / jnp.sqrt(jnp.float32(fan_in))
    w = jax.random.uniform(kw, (fan_in, fan_out), jnp.float32, -bound, bound)
    b = jax.random.uniform(kb, (fan_out,), jnp.float32, -bound, bound)
    return w, b


def init_condnet(key, cfg):
    out = cfg["out"]
    DB = cfg["ffn_dim_base"]
    F1, F2 = cfg["ffn_dim1"], cfg["ffn_dim2"]
    RB = int(DB * cfg["dim1_drop"])

    keys = iter(jax.random.split(key, 64))

    def lin(fi, fo):
        return _init_linear(next(keys), fi, fo)

    p = {}
    p["cat_drop"] = [lin(cfg["model_in"], DB), lin(DB, DB), lin(DB, RB)]
    inter = RB
    p["cat_next"] = [lin(inter, F2), lin(F2, F2), lin(F2, out["c"])]
    inter += F2
    p["s1_base"] = lin(out["c"], F1)
    p["s1_out"] = [lin(inter, F2), lin(F2, F2), lin(F2, out["s1"])]
    inter += F2
    p["s2_base"] = lin(out["s1"], F1)
    p["s2_out"] = [lin(inter, F2), lin(F2, F2), lin(F2, out["s2"])]
    inter += F2
    p["r1_base"] = lin(out["s2"], F1)
    p["r1_out"] = [lin(inter, F2), lin(F2, F2), lin(F2, out["r1"])]
    inter += F2
    p["r2_base"] = lin(out["r1"], F1)
    p["r2_out"] = [lin(inter, F2), lin(F2, F2), lin(F2, out["r2"])]
    return p


def _pack_padded(params, cfg, Kp, w1_dtype):
    """Zero-pad every weight/bias to 128-lane-aligned shapes; head first-layer
    weights get rows at padded (128-aligned) offsets so the kernel uses
    split-weight dots instead of concatenation.  W1 is stored in w1_dtype."""
    out = cfg["out"]
    DB = cfg["ffn_dim_base"]
    RB = int(DB * cfg["dim1_drop"])
    F1, F2 = cfg["ffn_dim1"], cfg["ffn_dim2"]
    DBp, RBp = _rup(DB, LANE), _rup(RB, LANE)
    F1p, F2p = _rup(F1, LANE), _rup(F2, LANE)

    def padw(w, rp, cp):
        return _pad2(w.astype(jnp.float32), rp, cp)

    def padb(b, cp):
        return _pad2(b.astype(jnp.float32).reshape(1, -1), 1, cp)

    flat = []

    # cat_drop ---------------------------------------------------------------
    (w1, b1), (w2, b2), (w3, b3) = params["cat_drop"]
    flat += [padw(w1, Kp, DBp).astype(w1_dtype), padb(b1, DBp),
             padw(w2, DBp, DBp), padb(b2, DBp),
             padw(w3, DBp, RBp), padb(b3, RBp)]

    def pack_head(head, true_widths, pad_widths, out_p):
        (wh1, bh1), (wh2, bh2), (wh3, bh3) = head
        rows_p = sum(pad_widths)
        W = jnp.zeros((rows_p, F2p), jnp.float32)
        src, dst = 0, 0
        for tw, pw in zip(true_widths, pad_widths):
            W = W.at[dst:dst + tw, :F2].set(wh1[src:src + tw, :])
            src += tw
            dst += pw
        return [W, padb(bh1, F2p),
                padw(wh2, F2p, F2p), padb(bh2, F2p),
                padw(wh3, F2p, out_p), padb(bh3, out_p)]

    # cat_next ----------------------------------------------------------------
    true_widths, pad_widths = [RB], [RBp]
    out_pads = [_rup(out["c"], LANE)]
    flat += pack_head(params["cat_next"], true_widths, pad_widths, out_pads[0])

    prev_out_p = out_pads[0]
    for name in ("s1", "s2", "r1", "r2"):
        wb, bb = params[name + "_base"]
        flat += [padw(wb, prev_out_p, F1p), padb(bb, F1p)]
        true_widths = true_widths + [F1]
        pad_widths = pad_widths + [F1p]
        o_p = _rup(out[name], LANE)
        flat += pack_head(params[name + "_out"], true_widths, pad_widths, o_p)
        out_pads.append(o_p)
        prev_out_p = o_p

    out_offsets, off = [], 0
    for w in out_pads:
        out_offsets.append(off)
        off += w

    dims = dict(DBp=DBp, RBp=RBp, F1p=F1p, F2p=F2p,
                out_widths=out_pads, out_offsets=out_offsets)
    return flat, dims


def pack_condnet(params, cfg, *, tk=None, w1_dtype=jnp.bfloat16):
    """One-time packing of the weights (hoisted out of the per-call path)."""
    # The PyTorch module's forward only works if ffn_dim1 == ffn_dim2
    # (concatenated base pieces are ffn_dim1 wide but head inputs grow by
    # ffn_dim2 per stage).
    assert cfg["ffn_dim1"] == cfg["ffn_dim2"]

    budget = _vmem_budget_bytes()
    Kp_full = _rup(cfg["model_in"], LANE)
    if tk is None:
        tk = 2048 if budget >= 48 * MIB else 1024
    tk = min(_rup(tk, LANE), Kp_full)          # never pad K above model_in
    Kp = _rup(Kp_full, tk)

    flat, dims = _pack_padded(params, cfg, Kp, w1_dtype)
    dims.update(Kp=Kp, tk=tk, num_k=Kp // tk,
                x_dtype=jnp.dtype(w1_dtype), vmem_budget=budget)
    return {"flat": flat, "dims": dims}


# ------------------------------ forward pass ---------------------------------

def condnet_forward(packed, cfg, Xr, Xp):
    flat, dims = packed["flat"], packed["dims"]
    Kp, tk, num_k = dims["Kp"], dims["tk"], dims["num_k"]
    budget = dims["vmem_budget"]

    x = jnp.concatenate([Xr, Xp], axis=1).astype(jnp.float32)
    M, MI = x.shape
    assert MI == cfg["model_in"]

    # --- M tiling: big tiles, but keep >=2 blocks for megacore when possible.
    desired_tm = 512 if budget >= 80 * MIB else 256
    m_align = SUBLANE * max(1, 4 // dims["x_dtype"].itemsize)   # 16 for bf16
    Mp_a = _rup(max(M, m_align), m_align)
    if Mp_a <= 2 * m_align:
        tm = Mp_a
    else:
        tm = min(desired_tm, _rup((Mp_a + 1) // 2, m_align))
    Mp = _rup(Mp_a, tm)
    num_m = Mp // tm

    x = jnp.pad(x, ((0, Mp - M), (0, Kp - MI))).astype(dims["x_dtype"])

    total_out = sum(dims["out_widths"])

    # --- cost hint: W1 is re-streamed from HBM once per M tile ---------------
    w1_bytes = int(flat[0].size) * flat[0].dtype.itemsize
    small_bytes = sum(int(a.size) * a.dtype.itemsize for a in flat[1:])
    flops = 2 * Mp * sum(int(a.shape[0]) * int(a.shape[1])
                         for a in flat if a.shape[0] > 1)
    cost = pl.CostEstimate(
        flops=int(flops),
        transcendentals=int(5 * Mp * dims["F2p"]),
        bytes_accessed=int(num_m * w1_bytes
                           + int(x.size) * x.dtype.itemsize
                           + small_bytes + Mp * total_out * 4),
    )

    def run(use_hints):
        # streamed operands get 3 buffers (hide the serial-tail bubble);
        # constant-index small weights are single-buffered to save VMEM.
        stream_buf = 3 if (use_hints and num_k >= 2) else None
        resident_buf = 1 if use_hints else None

        in_specs = [
            _bspec((tm, tk), lambda i, k: (i, k), stream_buf),             # x
            _bspec((tk, dims["DBp"]), lambda i, k: (k, 0), stream_buf),    # W1
        ]
        for a in flat[1:]:   # small weights: constant block index -> resident
            in_specs.append(_bspec(a.shape, lambda i, k: (0, 0), resident_buf))
        out_spec = pl.BlockSpec((tm, total_out), lambda i, k: (i, 0))

        grid_spec = pltpu.PrefetchScalarGridSpec(
            num_scalar_prefetch=0,
            grid=(num_m, num_k),
            in_specs=in_specs,
            out_specs=out_spec,
            scratch_shapes=[pltpu.VMEM((tm, dims["DBp"]), jnp.float32)],
        )

        out = pl.pallas_call(
            functools.partial(_condnet_kernel, n_params=len(flat), dims=dims),
            out_shape=jax.ShapeDtypeStruct((Mp, total_out), jnp.float32),
            grid_spec=grid_spec,
            compiler_params=pltpu.CompilerParams(
                dimension_semantics=("parallel", "arbitrary"),
                vmem_limit_bytes=int(budget),
            ),
            cost_estimate=cost,
        )(x, *flat)
        return jax.block_until_ready(out)

    if _BUFFER_HINTS_OK[0]:
        try:
            slab = run(True)
        except Exception:
            _BUFFER_HINTS_OK[0] = False      # hints unsupported -> retry plain
            slab = run(False)
    else:
        slab = run(False)

    names = ("c", "s1", "s2", "r1", "r2")
    return {name: slab[:M, off:off + cfg["out"][name]]
            for name, off in zip(names, dims["out_offsets"])}


# ----------------------------- pure-JAX reference ----------------------------

def _ref_lin(x, w, b, act):
    y = x @ w + b
    if act == "relu":
        return jnp.maximum(y, 0.0)
    if act == "tanh":
        return jnp.tanh(y)
    return y


def _ref_mlp3(x, layers, act2):
    (w1, b1), (w2, b2), (w3, b3) = layers
    h = _ref_lin(x, w1, b1, "relu")
    h = _ref_lin(h, w2, b2, act2)
    return _ref_lin(h, w3, b3, "none")


def condnet_ref(params, Xr, Xp, first_layer_cast=None):
    """Pure-JAX reference.  If first_layer_cast (e.g. bf16) is given, the
    inputs/weights of the very first Linear are cast the way the kernel
    streams them (f32 accumulation is kept)."""
    with jax.default_matmul_precision("highest"):
        x = jnp.concatenate([Xr, Xp], axis=1).astype(jnp.float32)
        (w1, b1), l2, l3 = params["cat_drop"]
        if first_layer_cast is not None:
            h = jnp.dot(x.astype(first_layer_cast),
                        w1.astype(first_layer_cast),
                        preferred_element_type=jnp.float32) + b1
        else:
            h = x @ w1 + b1
        h = jnp.maximum(h, 0.0)
        h = _ref_lin(h, l2[0], l2[1], "relu")
        cat_base = _ref_lin(h, l3[0], l3[1], "none")

        c = _ref_mlp3(cat_base, params["cat_next"], "tanh")
        outs = {"c": c}
        prev = c
        for name in ("s1", "s2", "r1", "r2"):
            w, b = params[name + "_base"]
            base = _ref_lin(prev, w, b, "relu")
            cat_base = jnp.concatenate([cat_base, base], axis=1)
            outs[name] = _ref_mlp3(cat_base, params[name + "_out"], "tanh")
            prev = outs[name]
        return outs


# ---------------------------------- main --------------------------------------

if __name__ == "__main__":
    # Small but structurally faithful config (PyTorch defaults are
    # model_in=32768, ffn_dim_base=1000, ffn_dim1=ffn_dim2=100, ...).
    # Odd feature sizes exercise the 128-lane padding paths.
    cfg = dict(
        model_in=512,
        ffn_dim_base=48,
        dim1_drop=0.5,
        ffn_dim1=24,
        ffn_dim2=24,
        out={"c": 10, "s1": 12, "s2": 9, "r1": 20, "r2": 11},
    )

    key = jax.random.PRNGKey(0)
    k_param, kr, kp_ = jax.random.split(key, 3)
    params = init_condnet(k_param, cfg)

    batch = 40                       # -> 2 M tiles (exercises multi-tile path)
    half = cfg["model_in"] // 2
    Xr = jax.random.normal(kr, (batch, half), jnp.float32)
    Xp = jax.random.normal(kp_, (batch, half), jnp.float32)

    # bf16-matched reference (same first-layer cast as the kernel; tight
    # tolerance) and the exact f32 reference (module semantics; loose).
    ref_bf16 = condnet_ref(params, Xr, Xp, first_layer_cast=jnp.bfloat16)
    ref_f32 = condnet_ref(params, Xr, Xp)

    names = ("c", "s1", "s2", "r1", "r2")
    # tk=128 exercises the K-tiled reduction (4 K steps, triple-buffered
    # streams); tk=None is the auto, generation-aware tiling path.
    for tk in (128, None):
        packed = pack_condnet(params, cfg, tk=tk)
        out = jax.block_until_ready(condnet_forward(packed, cfg, Xr, Xp))
        for name in names:
            got, want = out[name], ref_bf16[name]
            if got.shape != want.shape:
                raise RuntimeError(
                    f"shape mismatch for {name}: {got.shape} vs {want.shape}")
            if not bool(jnp.allclose(got, want, atol=1e-3, rtol=1e-3)):
                err = float(jnp.max(jnp.abs(got - want)))
                raise RuntimeError(
                    f"mismatch vs bf16-matched ref for '{name}' "
                    f"(tk={tk}, max err {err:.3e})")
            if not bool(jnp.allclose(got, ref_f32[name], atol=5e-2, rtol=5e-2)):
                err = float(jnp.max(jnp.abs(got - ref_f32[name])))
                raise RuntimeError(
                    f"mismatch vs f32 ref for '{name}' "
                    f"(tk={tk}, max err {err:.3e})")

    print("KERNEL_OK")
</pallas_src>

<mosaic_0001>
module attributes {stable_mosaic.version = 11 : i64} {
  func.func @_condnet_kernel(%arg0: i32, %arg1: i32, %arg2: memref<32x128xbf16, #tpu.memory_space<vmem>>, %arg3: memref<128x128xbf16, #tpu.memory_space<vmem>>, %arg4: memref<1x128xf32, #tpu.memory_space<vmem>>, %arg5: memref<128x128xf32, #tpu.memory_space<vmem>>, %arg6: memref<1x128xf32, #tpu.memory_space<vmem>>, %arg7: memref<128x128xf32, #tpu.memory_space<vmem>>, %arg8: memref<1x128xf32, #tpu.memory_space<vmem>>, %arg9: memref<128x128xf32, #tpu.memory_space<vmem>>, %arg10: memref<1x128xf32, #tpu.memory_space<vmem>>, %arg11: memref<128x128xf32, #tpu.memory_space<vmem>>, %arg12: memref<1x128xf32, #tpu.memory_space<vmem>>, %arg13: memref<128x128xf32, #tpu.memory_space<vmem>>, %arg14: memref<1x128xf32, #tpu.memory_space<vmem>>, %arg15: memref<128x128xf32, #tpu.memory_space<vmem>>, %arg16: memref<1x128xf32, #tpu.memory_space<vmem>>, %arg17: memref<256x128xf32, #tpu.memory_space<vmem>>, %arg18: memref<1x128xf32, #tpu.memory_space<vmem>>, %arg19: memref<128x128xf32, #tpu.memory_space<vmem>>, %arg20: memref<1x128xf32, #tpu.memory_space<vmem>>, %arg21: memref<128x128xf32, #tpu.memory_space<vmem>>, %arg22: memref<1x128xf32, #tpu.memory_space<vmem>>, %arg23: memref<128x128xf32, #tpu.memory_space<vmem>>, %arg24: memref<1x128xf32, #tpu.memory_space<vmem>>, %arg25: memref<384x128xf32, #tpu.memory_space<vmem>>, %arg26: memref<1x128xf32, #tpu.memory_space<vmem>>, %arg27: memref<128x128xf32, #tpu.memory_space<vmem>>, %arg28: memref<1x128xf32, #tpu.memory_space<vmem>>, %arg29: memref<128x128xf32, #tpu.memory_space<vmem>>, %arg30: memref<1x128xf32, #tpu.memory_space<vmem>>, %arg31: memref<128x128xf32, #tpu.memory_space<vmem>>, %arg32: memref<1x128xf32, #tpu.memory_space<vmem>>, %arg33: memref<512x128xf32, #tpu.memory_space<vmem>>, %arg34: memref<1x128xf32, #tpu.memory_space<vmem>>, %arg35: memref<128x128xf32, #tpu.memory_space<vmem>>, %arg36: memref<1x128xf32, #tpu.memory_space<vmem>>, %arg37: memref<128x128xf32, #tpu.memory_space<vmem>>, %arg38: memref<1x128xf32, #tpu.memory_space<vmem>>, %arg39: memref<128x128xf32, #tpu.memory_space<vmem>>, %arg40: memref<1x128xf32, #tpu.memory_space<vmem>>, %arg41: memref<640x128xf32, #tpu.memory_space<vmem>>, %arg42: memref<1x128xf32, #tpu.memory_space<vmem>>, %arg43: memref<128x128xf32, #tpu.memory_space<vmem>>, %arg44: memref<1x128xf32, #tpu.memory_space<vmem>>, %arg45: memref<128x128xf32, #tpu.memory_space<vmem>>, %arg46: memref<1x128xf32, #tpu.memory_space<vmem>>, %arg47: memref<32x640xf32, #tpu.memory_space<vmem>>, %arg48: memref<32x128xf32, #tpu.memory_space<vmem>>) attributes {dimension_semantics = [#tpu.dimension_semantics<parallel>, #tpu.dimension_semantics<arbitrary>], iteration_bounds = array<i64: 2, 4>, scalar_prefetch = 0 : i64, scratch_operands = 1 : i64, tpu.core_type = #tpu.core_type<tc>, window_params = [{transform_indices = @transform_0, window_bounds = array<i64: 32, 128>}, {transform_indices = @transform_1, window_bounds = array<i64: 128, 128>}, {pipeline_mode = #tpu.pipeline_mode<synchronous>, transform_indices = @transform_2, window_bounds = array<i64: 1, 128>}, {pipeline_mode = #tpu.pipeline_mode<synchronous>, transform_indices = @transform_3, window_bounds = array<i64: 128, 128>}, {pipeline_mode = #tpu.pipeline_mode<synchronous>, transform_indices = @transform_4, window_bounds = array<i64: 1, 128>}, {pipeline_mode = #tpu.pipeline_mode<synchronous>, transform_indices = @transform_5, window_bounds = array<i64: 128, 128>}, {pipeline_mode = #tpu.pipeline_mode<synchronous>, transform_indices = @transform_6, window_bounds = array<i64: 1, 128>}, {pipeline_mode = #tpu.pipeline_mode<synchronous>, transform_indices = @transform_7, window_bounds = array<i64: 128, 128>}, {pipeline_mode = #tpu.pipeline_mode<synchronous>, transform_indices = @transform_8, window_bounds = array<i64: 1, 128>}, {pipeline_mode = #tpu.pipeline_mode<synchronous>, transform_indices = @transform_9, window_bounds = array<i64: 128, 128>}, {pipeline_mode = #tpu.pipeline_mode<synchronous>, transform_indices = @transform_10, window_bounds = array<i64: 1, 128>}, {pipeline_mode = #tpu.pipeline_mode<synchronous>, transform_indices = @transform_11, window_bounds = array<i64: 128, 128>}, {pipeline_mode = #tpu.pipeline_mode<synchronous>, transform_indices = @transform_12, window_bounds = array<i64: 1, 128>}, {pipeline_mode = #tpu.pipeline_mode<synchronous>, transform_indices = @transform_13, window_bounds = array<i64: 128, 128>}, {pipeline_mode = #tpu.pipeline_mode<synchronous>, transform_indices = @transform_14, window_bounds = array<i64: 1, 128>}, {pipeline_mode = #tpu.pipeline_mode<synchronous>, transform_indices = @transform_15, window_bounds = array<i64: 256, 128>}, {pipeline_mode = #tpu.pipeline_mode<synchronous>, transform_indices = @transform_16, window_bounds = array<i64: 1, 128>}, {pipeline_mode = #tpu.pipeline_mode<synchronous>, transform_indices = @transform_17, window_bounds = array<i64: 128, 128>}, {pipeline_mode = #tpu.pipeline_mode<synchronous>, transform_indices = @transform_18, window_bounds = array<i64: 1, 128>}, {pipeline_mode = #tpu.pipeline_mode<synchronous>, transform_indices = @transform_19, window_bounds = array<i64: 128, 128>}, {pipeline_mode = #tpu.pipeline_mode<synchronous>, transform_indices = @transform_20, window_bounds = array<i64: 1, 128>}, {pipeline_mode = #tpu.pipeline_mode<synchronous>, transform_indices = @transform_21, window_bounds = array<i64: 128, 128>}, {pipeline_mode = #tpu.pipeline_mode<synchronous>, transform_indices = @transform_22, window_bounds = array<i64: 1, 128>}, {pipeline_mode = #tpu.pipeline_mode<synchronous>, transform_indices = @transform_23, window_bounds = array<i64: 384, 128>}, {pipeline_mode = #tpu.pipeline_mode<synchronous>, transform_indices = @transform_24, window_bounds = array<i64: 1, 128>}, {pipeline_mode = #tpu.pipeline_mode<synchronous>, transform_indices = @transform_25, window_bounds = array<i64: 128, 128>}, {pipeline_mode = #tpu.pipeline_mode<synchronous>, transform_indices = @transform_26, window_bounds = array<i64: 1, 128>}, {pipeline_mode = #tpu.pipeline_mode<synchronous>, transform_indices = @transform_27, window_bounds = array<i64: 128, 128>}, {pipeline_mode = #tpu.pipeline_mode<synchronous>, transform_indices = @transform_28, window_bounds = array<i64: 1, 128>}, {pipeline_mode = #tpu.pipeline_mode<synchronous>, transform_indices = @transform_29, window_bounds = array<i64: 128, 128>}, {pipeline_mode = #tpu.pipeline_mode<synchronous>, transform_indices = @transform_30, window_bounds = array<i64: 1, 128>}, {pipeline_mode = #tpu.pipeline_mode<synchronous>, transform_indices = @transform_31, window_bounds = array<i64: 512, 128>}, {pipeline_mode = #tpu.pipeline_mode<synchronous>, transform_indices = @transform_32, window_bounds = array<i64: 1, 128>}, {pipeline_mode = #tpu.pipeline_mode<synchronous>, transform_indices = @transform_33, window_bounds = array<i64: 128, 128>}, {pipeline_mode = #tpu.pipeline_mode<synchronous>, transform_indices = @transform_34, window_bounds = array<i64: 1, 128>}, {pipeline_mode = #tpu.pipeline_mode<synchronous>, transform_indices = @transform_35, window_bounds = array<i64: 128, 128>}, {pipeline_mode = #tpu.pipeline_mode<synchronous>, transform_indices = @transform_36, window_bounds = array<i64: 1, 128>}, {pipeline_mode = #tpu.pipeline_mode<synchronous>, transform_indices = @transform_37, window_bounds = array<i64: 128, 128>}, {pipeline_mode = #tpu.pipeline_mode<synchronous>, transform_indices = @transform_38, window_bounds = array<i64: 1, 128>}, {pipeline_mode = #tpu.pipeline_mode<synchronous>, transform_indices = @transform_39, window_bounds = array<i64: 640, 128>}, {pipeline_mode = #tpu.pipeline_mode<synchronous>, transform_indices = @transform_40, window_bounds = array<i64: 1, 128>}, {pipeline_mode = #tpu.pipeline_mode<synchronous>, transform_indices = @transform_41, window_bounds = array<i64: 128, 128>}, {pipeline_mode = #tpu.pipeline_mode<synchronous>, transform_indices = @transform_42, window_bounds = array<i64: 1, 128>}, {pipeline_mode = #tpu.pipeline_mode<synchronous>, transform_indices = @transform_43, window_bounds = array<i64: 128, 128>}, {pipeline_mode = #tpu.pipeline_mode<synchronous>, transform_indices = @transform_44, window_bounds = array<i64: 1, 128>}, {transform_indices = @transform_45, window_bounds = array<i64: 32, 640>}]} {
    %c0_i32 = arith.constant 0 : i32
    %0 = arith.cmpi eq, %arg1, %c0_i32 : i32
    %1 = arith.extui %0 : i1 to i32
    %c0_i32_0 = arith.constant 0 : i32
    %2 = arith.cmpi ne, %1, %c0_i32_0 : i32
    scf.if %2 {
      %cst_9 = arith.constant 0.000000e+00 : f32
      %12 = vector.broadcast %cst_9 : f32 to vector<32x128xf32>
      %c0_10 = arith.constant 0 : index
      %c0_11 = arith.constant 0 : index
      %13 = vector.load %arg48[%c0_10, %c0_11] : memref<32x128xf32, #tpu.memory_space<vmem>>, vector<32x128xf32>
      tpu.vector_store %arg48[%c0_10, %c0_11], %12 {strides = array<i32>} : memref<32x128xf32, #tpu.memory_space<vmem>>, vector<32x128xf32>,
    } else {
    }
    %c0 = arith.constant 0 : index
    %c0_1 = arith.constant 0 : index
    %3 = vector.load %arg48[%c0, %c0_1] : memref<32x128xf32, #tpu.memory_space<vmem>>, vector<32x128xf32>
    %c0_2 = arith.constant 0 : index
    %c0_3 = arith.constant 0 : index
    %4 = vector.load %arg2[%c0_2, %c0_3] : memref<32x128xbf16, #tpu.memory_space<vmem>>, vector<32x128xbf16>
    %c0_4 = arith.constant 0 : index
    %c0_5 = arith.constant 0 : index
    %5 = vector.load %arg3[%c0_4, %c0_5] : memref<128x128xbf16, #tpu.memory_space<vmem>>, vector<128x128xbf16>
    %cst = arith.constant dense<0.000000e+00> : vector<32x128xf32>
    %6 = tpu.matmul %4, %5, %cst {dimension_numbers = #tpu.dot_dimension_numbers<[1], [0], [0], [1], [0, 0, 1, 1], [], []>} : vector<32x128xbf16>, vector<128x128xbf16>, vector<32x128xf32> -> vector<32x128xf32>
    %7 = arith.addf %3, %6 : vector<32x128xf32>
    %c0_6 = arith.constant 0 : index
    %c0_7 = arith.constant 0 : index
    %8 = vector.load %arg48[%c0_6, %c0_7] : memref<32x128xf32, #tpu.memory_space<vmem>>, vector<32x128xf32>
    tpu.vector_store %arg48[%c0_6, %c0_7], %7 {strides = array<i32>} : memref<32x128xf32, #tpu.memory_space<vmem>>, vector<32x128xf32>,
    %c3_i32 = arith.constant 3 : i32
    %9 = arith.cmpi eq, %arg1, %c3_i32 : i32
    %10 = arith.extui %9 : i1 to i32
    %c0_i32_8 = arith.constant 0 : i32
    %11 = arith.cmpi ne, %10, %c0_i32_8 : i32
    scf.if %11 {
      %c0_9 = arith.constant 0 : index
      %c0_10 = arith.constant 0 : index
      %12 = vector.load %arg48[%c0_9, %c0_10] : memref<32x128xf32, #tpu.memory_space<vmem>>, vector<32x128xf32>
      %c0_11 = arith.constant 0 : index
      %c0_12 = arith.constant 0 : index
      %13 = vector.load %arg4[%c0_11, %c0_12] : memref<1x128xf32, #tpu.memory_space<vmem>>, vector<1x128xf32>
      %14 = vector.broadcast %13 : vector<1x128xf32> to vector<32x128xf32>
      %15 = arith.addf %12, %14 : vector<32x128xf32>
      %cst_13 = arith.constant 0.000000e+00 : f32
      %16 = vector.broadcast %cst_13 : f32 to vector<32x128xf32>
      %17 = arith.maximumf %15, %16 : vector<32x128xf32>
      %c0_14 = arith.constant 0 : index
      %c0_15 = arith.constant 0 : index
      %18 = vector.load %arg5[%c0_14, %c0_15] : memref<128x128xf32, #tpu.memory_space<vmem>>, vector<128x128xf32>
      %cst_16 = arith.constant dense<0.000000e+00> : vector<32x128xf32>
      %19 = tpu.matmul %17, %18, %cst_16 {dimension_numbers = #tpu.dot_dimension_numbers<[1], [0], [0], [1], [0, 0, 1, 1], [], []>} : vector<32x128xf32>, vector<128x128xf32>, vector<32x128xf32> -> vector<32x128xf32>
      %c0_17 = arith.constant 0 : index
      %c0_18 = arith.constant 0 : index
      %20 = vector.load %arg6[%c0_17, %c0_18] : memref<1x128xf32, #tpu.memory_space<vmem>>, vector<1x128xf32>
      %21 = vector.broadcast %20 : vector<1x128xf32> to vector<32x128xf32>
      %22 = arith.addf %19, %21 : vector<32x128xf32>
      %cst_19 = arith.constant 0.000000e+00 : f32
      %23 = vector.broadcast %cst_19 : f32 to vector<32x128xf32>
      %24 = arith.maximumf %22, %23 : vector<32x128xf32>
      %c0_20 = arith.constant 0 : index
      %c0_21 = arith.constant 0 : index
      %25 = vector.load %arg7[%c0_20, %c0_21] : memref<128x128xf32, #tpu.memory_space<vmem>>, vector<128x128xf32>
      %cst_22 = arith.constant dense<0.000000e+00> : vector<32x128xf32>
      %26 = tpu.matmul %24, %25, %cst_22 {dimension_numbers = #tpu.dot_dimension_numbers<[1], [0], [0], [1], [0, 0, 1, 1], [], []>} : vector<32x128xf32>, vector<128x128xf32>, vector<32x128xf32> -> vector<32x128xf32>
      %c0_23 = arith.constant 0 : index
      %c0_24 = arith.constant 0 : index
      %27 = vector.load %arg8[%c0_23, %c0_24] : memref<1x128xf32, #tpu.memory_space<vmem>>, vector<1x128xf32>
      %28 = vector.broadcast %27 : vector<1x128xf32> to vector<32x128xf32>
      %29 = arith.addf %26, %28 : vector<32x128xf32>
      %c0_25 = arith.constant 0 : index
      %c0_26 = arith.constant 0 : index
      %30 = vector.load %arg9[%c0_25, %c0_26] : memref<128x128xf32, #tpu.memory_space<vmem>>, vector<128x128xf32>
      %cst_27 = arith.constant dense<0.000000e+00> : vector<32x128xf32>
      %31 = tpu.matmul %29, %30, %cst_27 {dimension_numbers = #tpu.dot_dimension_numbers<[1], [0], [0], [1], [0, 0, 1, 1], [], []>} : vector<32x128xf32>, vector<128x128xf32>, vector<32x128xf32> -> vector<32x128xf32>
      %c0_28 = arith.constant 0 : index
      %c0_29 = arith.constant 0 : index
      %32 = vector.load %arg10[%c0_28, %c0_29] : memref<1x128xf32, #tpu.memory_space<vmem>>, vector<1x128xf32>
      %33 = vector.broadcast %32 : vector<1x128xf32> to vector<32x128xf32>
      %34 = arith.addf %31, %33 : vector<32x128xf32>
      %cst_30 = arith.constant 0.000000e+00 : f32
      %35 = vector.broadcast %cst_30 : f32 to vector<32x128xf32>
      %36 = arith.maximumf %34, %35 : vector<32x128xf32>
      %c0_31 = arith.constant 0 : index
      %c0_32 = arith.constant 0 : index
      %37 = vector.load %arg11[%c0_31, %c0_32] : memref<128x128xf32, #tpu.memory_space<vmem>>, vector<128x128xf32>
      %cst_33 = arith.constant dense<0.000000e+00> : vector<32x128xf32>
      %38 = tpu.matmul %36, %37, %cst_33 {dimension_numbers = #tpu.dot_dimension_numbers<[1], [0], [0], [1], [0, 0, 1, 1], [], []>} : vector<32x128xf32>, vector<128x128xf32>, vector<32x128xf32> -> vector<32x128xf32>
      %c0_34 = arith.constant 0 : index
      %c0_35 = arith.constant 0 : index
      %39 = vector.load %arg12[%c0_34, %c0_35] : memref<1x128xf32, #tpu.memory_space<vmem>>, vector<1x128xf32>
      %40 = vector.broadcast %39 : vector<1x128xf32> to vector<32x128xf32>
      %41 = arith.addf %38, %40 : vector<32x128xf32>
      %42 = math.tanh %41 : vector<32x128xf32>
      %c0_36 = arith.constant 0 : index
      %c0_37 = arith.constant 0 : index
      %43 = vector.load %arg13[%c0_36, %c0_37] : memref<128x128xf32, #tpu.memory_space<vmem>>, vector<128x128xf32>
      %cst_38 = arith.constant dense<0.000000e+00> : vector<32x128xf32>
      %44 = tpu.matmul %42, %43, %cst_38 {dimension_numbers = #tpu.dot_dimension_numbers<[1], [0], [0], [1], [0, 0, 1, 1], [], []>} : vector<32x128xf32>, vector<128x128xf32>, vector<32x128xf32> -> vector<32x128xf32>
      %c0_39 = arith.constant 0 : index
      %c0_40 = arith.constant 0 : index
      %45 = vector.load %arg14[%c0_39, %c0_40] : memref<1x128xf32, #tpu.memory_space<vmem>>, vector<1x128xf32>
      %46 = vector.broadcast %45 : vector<1x128xf32> to vector<32x128xf32>
      %47 = arith.addf %44, %46 : vector<32x128xf32>
      %c0_41 = arith.constant 0 : index
      %c0_42 = arith.constant 0 : index
      %48 = vector.load %arg15[%c0_41, %c0_42] : memref<128x128xf32, #tpu.memory_space<vmem>>, vector<128x128xf32>
      %cst_43 = arith.constant dense<0.000000e+00> : vector<32x128xf32>
      %49 = tpu.matmul %47, %48, %cst_43 {dimension_numbers = #tpu.dot_dimension_numbers<[1], [0], [0], [1], [0, 0, 1, 1], [], []>} : vector<32x128xf32>, vector<128x128xf32>, vector<32x128xf32> -> vector<32x128xf32>
      %c0_44 = arith.constant 0 : index
      %c0_45 = arith.constant 0 : index
      %50 = vector.load %arg16[%c0_44, %c0_45] : memref<1x128xf32, #tpu.memory_space<vmem>>, vector<1x128xf32>
      %51 = vector.broadcast %50 : vector<1x128xf32> to vector<32x128xf32>
      %52 = arith.addf %49, %51 : vector<32x128xf32>
      %cst_46 = arith.constant 0.000000e+00 : f32
      %53 = vector.broadcast %cst_46 : f32 to vector<32x128xf32>
      %54 = arith.maximumf %52, %53 : vector<32x128xf32>
      %c0_47 = arith.constant 0 : index
      %c0_48 = arith.constant 0 : index
      %55 = vector.load %arg17[%c0_47, %c0_48] : memref<256x128xf32, #tpu.memory_space<vmem>>, vector<128x128xf32>
      %cst_49 = arith.constant dense<0.000000e+00> : vector<32x128xf32>
      %56 = tpu.matmul %29, %55, %cst_49 {dimension_numbers = #tpu.dot_dimension_numbers<[1], [0], [0], [1], [0, 0, 1, 1], [], []>} : vector<32x128xf32>, vector<128x128xf32>, vector<32x128xf32> -> vector<32x128xf32>
      %c128 = arith.constant 128 : index
      %c0_50 = arith.constant 0 : index
      %57 = vector.load %arg17[%c128, %c0_50] : memref<256x128xf32, #tpu.memory_space<vmem>>, vector<128x128xf32>
      %cst_51 = arith.constant dense<0.000000e+00> : vector<32x128xf32>
      %58 = tpu.matmul %54, %57, %cst_51 {dimension_numbers = #tpu.dot_dimension_numbers<[1], [0], [0], [1], [0, 0, 1, 1], [], []>} : vector<32x128xf32>, vector<128x128xf32>, vector<32x128xf32> -> vector<32x128xf32>
      %59 = arith.addf %56, %58 : vector<32x128xf32>
      %c0_52 = arith.constant 0 : index
      %c0_53 = arith.constant 0 : index
      %60 = vector.load %arg18[%c0_52, %c0_53] : memref<1x128xf32, #tpu.memory_space<vmem>>, vector<1x128xf32>
      %61 = vector.broadcast %60 : vector<1x128xf32> to vector<32x128xf32>
      %62 = arith.addf %59, %61 : vector<32x128xf32>
      %cst_54 = arith.constant 0.000000e+00 : f32
      %63 = vector.broadcast %cst_54 : f32 to vector<32x128xf32>
      %64 = arith.maximumf %62, %63 : vector<32x128xf32>
      %c0_55 = arith.constant 0 : index
      %c0_56 = arith.constant 0 : index
      %65 = vector.load %arg19[%c0_55, %c0_56] : memref<128x128xf32, #tpu.memory_space<vmem>>, vector<128x128xf32>
      %cst_57 = arith.constant dense<0.000000e+00> : vector<32x128xf32>
      %66 = tpu.matmul %64, %65, %cst_57 {dimension_numbers = #tpu.dot_dimension_numbers<[1], [0], [0], [1], [0, 0, 1, 1], [], []>} : vector<32x128xf32>, vector<128x128xf32>, vector<32x128xf32> -> vector<32x128xf32>
      %c0_58 = arith.constant 0 : index
      %c0_59 = arith.constant 0 : index
      %67 = vector.load %arg20[%c0_58, %c0_59] : memref<1x128xf32, #tpu.memory_space<vmem>>, vector<1x128xf32>
      %68 = vector.broadcast %67 : vector<1x128xf32> to vector<32x128xf32>
      %69 = arith.addf %66, %68 : vector<32x128xf32>
      %70 = math.tanh %69 : vector<32x128xf32>
      %c0_60 = arith.constant 0 : index
      %c0_61 = arith.constant 0 : index
      %71 = vector.load %arg21[%c0_60, %c0_61] : memref<128x128xf32, #tpu.memory_space<vmem>>, vector<128x128xf32>
      %cst_62 = arith.constant dense<0.000000e+00> : vector<32x128xf32>
      %72 = tpu.matmul %70, %71, %cst_62 {dimension_numbers = #tpu.dot_dimension_numbers<[1], [0], [0], [1], [0, 0, 1, 1], [], []>} : vector<32x128xf32>, vector<128x128xf32>, vector<32x128xf32> -> vector<32x128xf32>
      %c0_63 = arith.constant 0 : index
      %c0_64 = arith.constant 0 : index
      %73 = vector.load %arg22[%c0_63, %c0_64] : memref<1x128xf32, #tpu.memory_space<vmem>>, vector<1x128xf32>
      %74 = vector.broadcast %73 : vector<1x128xf32> to vector<32x128xf32>
      %75 = arith.addf %72, %74 : vector<32x128xf32>
      %c0_65 = arith.constant 0 : index
      %c0_66 = arith.constant 0 : index
      %76 = vector.load %arg23[%c0_65, %c0_66] : memref<128x128xf32, #tpu.memory_space<vmem>>, vector<128x128xf32>
      %cst_67 = arith.constant dense<0.000000e+00> : vector<32x128xf32>
      %77 = tpu.matmul %75, %76, %cst_67 {dimension_numbers = #tpu.dot_dimension_numbers<[1], [0], [0], [1], [0, 0, 1, 1], [], []>} : vector<32x128xf32>, vector<128x128xf32>, vector<32x128xf32> -> vector<32x128xf32>
      %c0_68 = arith.constant 0 : index
      %c0_69 = arith.constant 0 : index
      %78 = vector.load %arg24[%c0_68, %c0_69] : memref<1x128xf32, #tpu.memory_space<vmem>>, vector<1x128xf32>
      %79 = vector.broadcast %78 : vector<1x128xf32> to vector<32x128xf32>
      %80 = arith.addf %77, %79 : vector<32x128xf32>
      %cst_70 = arith.constant 0.000000e+00 : f32
      %81 = vector.broadcast %cst_70 : f32 to vector<32x128xf32>
      %82 = arith.maximumf %80, %81 : vector<32x128xf32>
      %c0_71 = arith.constant 0 : index
      %c0_72 = arith.constant 0 : index
      %83 = vector.load %arg25[%c0_71, %c0_72] : memref<384x128xf32, #tpu.memory_space<vmem>>, vector<128x128xf32>
      %cst_73 = arith.constant dense<0.000000e+00> : vector<32x128xf32>
      %84 = tpu.matmul %29, %83, %cst_73 {dimension_numbers = #tpu.dot_dimension_numbers<[1], [0], [0], [1], [0, 0, 1, 1], [], []>} : vector<32x128xf32>, vector<128x128xf32>, vector<32x128xf32> -> vector<32x128xf32>
      %c128_74 = arith.constant 128 : index
      %c0_75 = arith.constant 0 : index
      %85 = vector.load %arg25[%c128_74, %c0_75] : memref<384x128xf32, #tpu.memory_space<vmem>>, vector<128x128xf32>
      %cst_76 = arith.constant dense<0.000000e+00> : vector<32x128xf32>
      %86 = tpu.matmul %54, %85, %cst_76 {dimension_numbers = #tpu.dot_dimension_numbers<[1], [0], [0], [1], [0, 0, 1, 1], [], []>} : vector<32x128xf32>, vector<128x128xf32>, vector<32x128xf32> -> vector<32x128xf32>
      %87 = arith.addf %84, %86 : vector<32x128xf32>
      %c256 = arith.constant 256 : index
      %c0_77 = arith.constant 0 : index
      %88 = vector.load %arg25[%c256, %c0_77] : memref<384x128xf32, #tpu.memory_space<vmem>>, vector<128x128xf32>
      %cst_78 = arith.constant dense<0.000000e+00> : vector<32x128xf32>
      %89 = tpu.matmul %82, %88, %cst_78 {dimension_numbers = #tpu.dot_dimension_numbers<[1], [0], [0], [1], [0, 0, 1, 1], [], []>} : vector<32x128xf32>, vector<128x128xf32>, vector<32x128xf32> -> vector<32x128xf32>
      %90 = arith.addf %87, %89 : vector<32x128xf32>
      %c0_79 = arith.constant 0 : index
      %c0_80 = arith.constant 0 : index
      %91 = vector.load %arg26[%c0_79, %c0_80] : memref<1x128xf32, #tpu.memory_space<vmem>>, vector<1x128xf32>
      %92 = vector.broadcast %91 : vector<1x128xf32> to vector<32x128xf32>
      %93 = arith.addf %90, %92 : vector<32x128xf32>
      %cst_81 = arith.constant 0.000000e+00 : f32
      %94 = vector.broadcast %cst_81 : f32 to vector<32x128xf32>
      %95 = arith.maximumf %93, %94 : vector<32x128xf32>
      %c0_82 = arith.constant 0 : index
      %c0_83 = arith.constant 0 : index
      %96 = vector.load %arg27[%c0_82, %c0_83] : memref<128x128xf32, #tpu.memory_space<vmem>>, vector<128x128xf32>
      %cst_84 = arith.constant dense<0.000000e+00> : vector<32x128xf32>
      %97 = tpu.matmul %95, %96, %cst_84 {dimension_numbers = #tpu.dot_dimension_numbers<[1], [0], [0], [1], [0, 0, 1, 1], [], []>} : vector<32x128xf32>, vector<128x128xf32>, vector<32x128xf32> -> vector<32x128xf32>
      %c0_85 = arith.constant 0 : index
      %c0_86 = arith.constant 0 : index
      %98 = vector.load %arg28[%c0_85, %c0_86] : memref<1x128xf32, #tpu.memory_space<vmem>>, vector<1x128xf32>
      %99 = vector.broadcast %98 : vector<1x128xf32> to vector<32x128xf32>
      %100 = arith.addf %97, %99 : vector<32x128xf32>
      %101 = math.tanh %100 : vector<32x128xf32>
      %c0_87 = arith.constant 0 : index
      %c0_88 = arith.constant 0 : index
      %102 = vector.load %arg29[%c0_87, %c0_88] : memref<128x128xf32, #tpu.memory_space<vmem>>, vector<128x128xf32>
      %cst_89 = arith.constant dense<0.000000e+00> : vector<32x128xf32>
      %103 = tpu.matmul %101, %102, %cst_89 {dimension_numbers = #tpu.dot_dimension_numbers<[1], [0], [0], [1], [0, 0, 1, 1], [], []>} : vector<32x128xf32>, vector<128x128xf32>, vector<32x128xf32> -> vector<32x128xf32>
      %c0_90 = arith.constant 0 : index
      %c0_91 = arith.constant 0 : index
      %104 = vector.load %arg30[%c0_90, %c0_91] : memref<1x128xf32, #tpu.memory_space<vmem>>, vector<1x128xf32>
      %105 = vector.broadcast %104 : vector<1x128xf32> to vector<32x128xf32>
      %106 = arith.addf %103, %105 : vector<32x128xf32>
      %c0_92 = arith.constant 0 : index
      %c0_93 = arith.constant 0 : index
      %107 = vector.load %arg31[%c0_92, %c0_93] : memref<128x128xf32, #tpu.memory_space<vmem>>, vector<128x128xf32>
      %cst_94 = arith.constant dense<0.000000e+00> : vector<32x128xf32>
      %108 = tpu.matmul %106, %107, %cst_94 {dimension_numbers = #tpu.dot_dimension_numbers<[1], [0], [0], [1], [0, 0, 1, 1], [], []>} : vector<32x128xf32>, vector<128x128xf32>, vector<32x128xf32> -> vector<32x128xf32>
      %c0_95 = arith.constant 0 : index
      %c0_96 = arith.constant 0 : index
      %109 = vector.load %arg32[%c0_95, %c0_96] : memref<1x128xf32, #tpu.memory_space<vmem>>, vector<1x128xf32>
      %110 = vector.broadcast %109 : vector<1x128xf32> to vector<32x128xf32>
      %111 = arith.addf %108, %110 : vector<32x128xf32>
      %cst_97 = arith.constant 0.000000e+00 : f32
      %112 = vector.broadcast %cst_97 : f32 to vector<32x128xf32>
      %113 = arith.maximumf %111, %112 : vector<32x128xf32>
      %c0_98 = arith.constant 0 : index
      %c0_99 = arith.constant 0 : index
      %114 = vector.load %arg33[%c0_98, %c0_99] : memref<512x128xf32, #tpu.memory_space<vmem>>, vector<128x128xf32>
      %cst_100 = arith.constant dense<0.000000e+00> : vector<32x128xf32>
      %115 = tpu.matmul %29, %114, %cst_100 {dimension_numbers = #tpu.dot_dimension_numbers<[1], [0], [0], [1], [0, 0, 1, 1], [], []>} : vector<32x128xf32>, vector<128x128xf32>, vector<32x128xf32> -> vector<32x128xf32>
      %c128_101 = arith.constant 128 : index
      %c0_102 = arith.constant 0 : index
      %116 = vector.load %arg33[%c128_101, %c0_102] : memref<512x128xf32, #tpu.memory_space<vmem>>, vector<128x128xf32>
      %cst_103 = arith.constant dense<0.000000e+00> : vector<32x128xf32>
      %117 = tpu.matmul %54, %116, %cst_103 {dimension_numbers = #tpu.dot_dimension_numbers<[1], [0], [0], [1], [0, 0, 1, 1], [], []>} : vector<32x128xf32>, vector<128x128xf32>, vector<32x128xf32> -> vector<32x128xf32>
      %118 = arith.addf %115, %117 : vector<32x128xf32>
      %c256_104 = arith.constant 256 : index
      %c0_105 = arith.constant 0 : index
      %119 = vector.load %arg33[%c256_104, %c0_105] : memref<512x128xf32, #tpu.memory_space<vmem>>, vector<128x128xf32>
      %cst_106 = arith.constant dense<0.000000e+00> : vector<32x128xf32>
      %120 = tpu.matmul %82, %119, %cst_106 {dimension_numbers = #tpu.dot_dimension_numbers<[1], [0], [0], [1], [0, 0, 1, 1], [], []>} : vector<32x128xf32>, vector<128x128xf32>, vector<32x128xf32> -> vector<32x128xf32>
      %121 = arith.addf %118, %120 : vector<32x128xf32>
      %c384 = arith.constant 384 : index
      %c0_107 = arith.constant 0 : index
      %122 = vector.load %arg33[%c384, %c0_107] : memref<512x128xf32, #tpu.memory_space<vmem>>, vector<128x128xf32>
      %cst_108 = arith.constant dense<0.000000e+00> : vector<32x128xf32>
      %123 = tpu.matmul %113, %122, %cst_108 {dimension_numbers = #tpu.dot_dimension_numbers<[1], [0], [0], [1], [0, 0, 1, 1], [], []>} : vector<32x128xf32>, vector<128x128xf32>, vector<32x128xf32> -> vector<32x128xf32>
      %124 = arith.addf %121, %123 : vector<32x128xf32>
      %c0_109 = arith.constant 0 : index
      %c0_110 = arith.constant 0 : index
      %125 = vector.load %arg34[%c0_109, %c0_110] : memref<1x128xf32, #tpu.memory_space<vmem>>, vector<1x128xf32>
      %126 = vector.broadcast %125 : vector<1x128xf32> to vector<32x128xf32>
      %127 = arith.addf %124, %126 : vector<32x128xf32>
      %cst_111 = arith.constant 0.000000e+00 : f32
      %128 = vector.broadcast %cst_111 : f32 to vector<32x128xf32>
      %129 = arith.maximumf %127, %128 : vector<32x128xf32>
      %c0_112 = arith.constant 0 : index
      %c0_113 = arith.constant 0 : index
      %130 = vector.load %arg35[%c0_112, %c0_113] : memref<128x128xf32, #tpu.memory_space<vmem>>, vector<128x128xf32>
      %cst_114 = arith.constant dense<0.000000e+00> : vector<32x128xf32>
      %131 = tpu.matmul %129, %130, %cst_114 {dimension_numbers = #tpu.dot_dimension_numbers<[1], [0], [0], [1], [0, 0, 1, 1], [], []>} : vector<32x128xf32>, vector<128x128xf32>, vector<32x128xf32> -> vector<32x128xf32>
      %c0_115 = arith.constant 0 : index
      %c0_116 = arith.constant 0 : index
      %132 = vector.load %arg36[%c0_115, %c0_116] : memref<1x128xf32, #tpu.memory_space<vmem>>, vector<1x128xf32>
      %133 = vector.broadcast %132 : vector<1x128xf32> to vector<32x128xf32>
      %134 = arith.addf %131, %133 : vector<32x128xf32>
      %135 = math.tanh %134 : vector<32x128xf32>
      %c0_117 = arith.constant 0 : index
      %c0_118 = arith.constant 0 : index
      %136 = vector.load %arg37[%c0_117, %c0_118] : memref<128x128xf32, #tpu.memory_space<vmem>>, vector<128x128xf32>
      %cst_119 = arith.constant dense<0.000000e+00> : vector<32x128xf32>
      %137 = tpu.matmul %135, %136, %cst_119 {dimension_numbers = #tpu.dot_dimension_numbers<[1], [0], [0], [1], [0, 0, 1, 1], [], []>} : vector<32x128xf32>, vector<128x128xf32>, vector<32x128xf32> -> vector<32x128xf32>
      %c0_120 = arith.constant 0 : index
      %c0_121 = arith.constant 0 : index
      %138 = vector.load %arg38[%c0_120, %c0_121] : memref<1x128xf32, #tpu.memory_space<vmem>>, vector<1x128xf32>
      %139 = vector.broadcast %138 : vector<1x128xf32> to vector<32x128xf32>
      %140 = arith.addf %137, %139 : vector<32x128xf32>
      %c0_122 = arith.constant 0 : index
      %c0_123 = arith.constant 0 : index
      %141 = vector.load %arg39[%c0_122, %c0_123] : memref<128x128xf32, #tpu.memory_space<vmem>>, vector<128x128xf32>
      %cst_124 = arith.constant dense<0.000000e+00> : vector<32x128xf32>
      %142 = tpu.matmul %140, %141, %cst_124 {dimension_numbers = #tpu.dot_dimension_numbers<[1], [0], [0], [1], [0, 0, 1, 1], [], []>} : vector<32x128xf32>, vector<128x128xf32>, vector<32x128xf32> -> vector<32x128xf32>
      %c0_125 = arith.constant 0 : index
      %c0_126 = arith.constant 0 : index
      %143 = vector.load %arg40[%c0_125, %c0_126] : memref<1x128xf32, #tpu.memory_space<vmem>>, vector<1x128xf32>
      %144 = vector.broadcast %143 : vector<1x128xf32> to vector<32x128xf32>
      %145 = arith.addf %142, %144 : vector<32x128xf32>
      %cst_127 = arith.constant 0.000000e+00 : f32
      %146 = vector.broadcast %cst_127 : f32 to vector<32x128xf32>
      %147 = arith.maximumf %145, %146 : vector<32x128xf32>
      %c0_128 = arith.constant 0 : index
      %c0_129 = arith.constant 0 : index
      %148 = vector.load %arg41[%c0_128, %c0_129] : memref<640x128xf32, #tpu.memory_space<vmem>>, vector<128x128xf32>
      %cst_130 = arith.constant dense<0.000000e+00> : vector<32x128xf32>
      %149 = tpu.matmul %29, %148, %cst_130 {dimension_numbers = #tpu.dot_dimension_numbers<[1], [0], [0], [1], [0, 0, 1, 1], [], []>} : vector<32x128xf32>, vector<128x128xf32>, vector<32x128xf32> -> vector<32x128xf32>
      %c128_131 = arith.constant 128 : index
      %c0_132 = arith.constant 0 : index
      %150 = vector.load %arg41[%c128_131, %c0_132] : memref<640x128xf32, #tpu.memory_space<vmem>>, vector<128x128xf32>
      %cst_133 = arith.constant dense<0.000000e+00> : vector<32x128xf32>
      %151 = tpu.matmul %54, %150, %cst_133 {dimension_numbers = #tpu.dot_dimension_numbers<[1], [0], [0], [1], [0, 0, 1, 1], [], []>} : vector<32x128xf32>, vector<128x128xf32>, vector<32x128xf32> -> vector<32x128xf32>
      %152 = arith.addf %149, %151 : vector<32x128xf32>
      %c256_134 = arith.constant 256 : index
      %c0_135 = arith.constant 0 : index
      %153 = vector.load %arg41[%c256_134, %c0_135] : memref<640x128xf32, #tpu.memory_space<vmem>>, vector<128x128xf32>
      %cst_136 = arith.constant dense<0.000000e+00> : vector<32x128xf32>
      %154 = tpu.matmul %82, %153, %cst_136 {dimension_numbers = #tpu.dot_dimension_numbers<[1], [0], [0], [1], [0, 0, 1, 1], [], []>} : vector<32x128xf32>, vector<128x128xf32>, vector<32x128xf32> -> vector<32x128xf32>
      %155 = arith.addf %152, %154 : vector<32x128xf32>
      %c384_137 = arith.constant 384 : index
      %c0_138 = arith.constant 0 : index
      %156 = vector.load %arg41[%c384_137, %c0_138] : memref<640x128xf32, #tpu.memory_space<vmem>>, vector<128x128xf32>
      %cst_139 = arith.constant dense<0.000000e+00> : vector<32x128xf32>
      %157 = tpu.matmul %113, %156, %cst_139 {dimension_numbers = #tpu.dot_dimension_numbers<[1], [0], [0], [1], [0, 0, 1, 1], [], []>} : vector<32x128xf32>, vector<128x128xf32>, vector<32x128xf32> -> vector<32x128xf32>
      %158 = arith.addf %155, %157 : vector<32x128xf32>
      %c512 = arith.constant 512 : index
      %c0_140 = arith.constant 0 : index
      %159 = vector.load %arg41[%c512, %c0_140] : memref<640x128xf32, #tpu.memory_space<vmem>>, vector<128x128xf32>
      %cst_141 = arith.constant dense<0.000000e+00> : vector<32x128xf32>
      %160 = tpu.matmul %147, %159, %cst_141 {dimension_numbers = #tpu.dot_dimension_numbers<[1], [0], [0], [1], [0, 0, 1, 1], [], []>} : vector<32x128xf32>, vector<128x128xf32>, vector<32x128xf32> -> vector<32x128xf32>
      %161 = arith.addf %158, %160 : vector<32x128xf32>
      %c0_142 = arith.constant 0 : index
      %c0_143 = arith.constant 0 : index
      %162 = vector.load %arg42[%c0_142, %c0_143] : memref<1x128xf32, #tpu.memory_space<vmem>>, vector<1x128xf32>
      %163 = vector.broadcast %162 : vector<1x128xf32> to vector<32x128xf32>
      %164 = arith.addf %161, %163 : vector<32x128xf32>
      %cst_144 = arith.constant 0.000000e+00 : f32
      %165 = vector.broadcast %cst_144 : f32 to vector<32x128xf32>
      %166 = arith.maximumf %164, %165 : vector<32x128xf32>
      %c0_145 = arith.constant 0 : index
      %c0_146 = arith.constant 0 : index
      %167 = vector.load %arg43[%c0_145, %c0_146] : memref<128x128xf32, #tpu.memory_space<vmem>>, vector<128x128xf32>
      %cst_147 = arith.constant dense<0.000000e+00> : vector<32x128xf32>
      %168 = tpu.matmul %166, %167, %cst_147 {dimension_numbers = #tpu.dot_dimension_numbers<[1], [0], [0], [1], [0, 0, 1, 1], [], []>} : vector<32x128xf32>, vector<128x128xf32>, vector<32x128xf32> -> vector<32x128xf32>
      %c0_148 = arith.constant 0 : index
      %c0_149 = arith.constant 0 : index
      %169 = vector.load %arg44[%c0_148, %c0_149] : memref<1x128xf32, #tpu.memory_space<vmem>>, vector<1x128xf32>
      %170 = vector.broadcast %169 : vector<1x128xf32> to vector<32x128xf32>
      %171 = arith.addf %168, %170 : vector<32x128xf32>
      %172 = math.tanh %171 : vector<32x128xf32>
      %c0_150 = arith.constant 0 : index
      %c0_151 = arith.constant 0 : index
      %173 = vector.load %arg45[%c0_150, %c0_151] : memref<128x128xf32, #tpu.memory_space<vmem>>, vector<128x128xf32>
      %cst_152 = arith.constant dense<0.000000e+00> : vector<32x128xf32>
      %174 = tpu.matmul %172, %173, %cst_152 {dimension_numbers = #tpu.dot_dimension_numbers<[1], [0], [0], [1], [0, 0, 1, 1], [], []>} : vector<32x128xf32>, vector<128x128xf32>, vector<32x128xf32> -> vector<32x128xf32>
      %c0_153 = arith.constant 0 : index
      %c0_154 = arith.constant 0 : index
      %175 = vector.load %arg46[%c0_153, %c0_154] : memref<1x128xf32, #tpu.memory_space<vmem>>, vector<1x128xf32>
      %176 = vector.broadcast %175 : vector<1x128xf32> to vector<32x128xf32>
      %177 = arith.addf %174, %176 : vector<32x128xf32>
      %c0_155 = arith.constant 0 : index
      %c0_156 = arith.constant 0 : index
      %178 = vector.load %arg47[%c0_155, %c0_156] : memref<32x640xf32, #tpu.memory_space<vmem>>, vector<32x128xf32>
      tpu.vector_store %arg47[%c0_155, %c0_156], %47 {strides = array<i32>} : memref<32x640xf32, #tpu.memory_space<vmem>>, vector<32x128xf32>,
      %c0_157 = arith.constant 0 : index
      %c128_158 = arith.constant 128 : index
      %179 = vector.load %arg47[%c0_157, %c128_158] : memref<32x640xf32, #tpu.memory_space<vmem>>, vector<32x128xf32>
      tpu.vector_store %arg47[%c0_157, %c128_158], %75 {strides = array<i32>} : memref<32x640xf32, #tpu.memory_space<vmem>>, vector<32x128xf32>,
      %c0_159 = arith.constant 0 : index
      %c256_160 = arith.constant 256 : index
      %180 = vector.load %arg47[%c0_159, %c256_160] : memref<32x640xf32, #tpu.memory_space<vmem>>, vector<32x128xf32>
      tpu.vector_store %arg47[%c0_159, %c256_160], %106 {strides = array<i32>} : memref<32x640xf32, #tpu.memory_space<vmem>>, vector<32x128xf32>,
      %c0_161 = arith.constant 0 : index
      %c384_162 = arith.constant 384 : index
      %181 = vector.load %arg47[%c0_161, %c384_162] : memref<32x640xf32, #tpu.memory_space<vmem>>, vector<32x128xf32>
      tpu.vector_store %arg47[%c0_161, %c384_162], %140 {strides = array<i32>} : memref<32x640xf32, #tpu.memory_space<vmem>>, vector<32x128xf32>,
      %c0_163 = arith.constant 0 : index
      %c512_164 = arith.constant 512 : index
      %182 = vector.load %arg47[%c0_163, %c512_164] : memref<32x640xf32, #tpu.memory_space<vmem>>, vector<32x128xf32>
      tpu.vector_store %arg47[%c0_163, %c512_164], %177 {strides = array<i32>} : memref<32x640xf32, #tpu.memory_space<vmem>>, vector<32x128xf32>,
    } else {
    }
    return
  }
  func.func @transform_0(%arg0: i32, %arg1: i32) -> (i32, i32) {
    %c0_i32 = arith.constant 0 : i32
    return %arg0, %arg1 : i32, i32
  }
  func.func @transform_1(%arg0: i32, %arg1: i32) -> (i32, i32) {
    %c0_i32 = arith.constant 0 : i32
    %c0_i32_0 = arith.constant 0 : i32
    return %arg1, %c0_i32 : i32, i32
  }
  func.func @transform_2(%arg0: i32, %arg1: i32) -> (i32, i32) {
    %c0_i32 = arith.constant 0 : i32
    %c0_i32_0 = arith.constant 0 : i32
    %c0_i32_1 = arith.constant 0 : i32
    return %c0_i32, %c0_i32_0 : i32, i32
  }
  func.func @transform_3(%arg0: i32, %arg1: i32) -> (i32, i32) {
    %c0_i32 = arith.constant 0 : i32
    %c0_i32_0 = arith.constant 0 : i32
    %c0_i32_1 = arith.constant 0 : i32
    return %c0_i32, %c0_i32_0 : i32, i32
  }
  func.func @transform_4(%arg0: i32, %arg1: i32) -> (i32, i32) {
    %c0_i32 = arith.constant 0 : i32
    %c0_i32_0 = arith.constant 0 : i32
    %c0_i32_1 = arith.constant 0 : i32
    return %c0_i32, %c0_i32_0 : i32, i32
  }
  func.func @transform_5(%arg0: i32, %arg1: i32) -> (i32, i32) {
    %c0_i32 = arith.constant 0 : i32
    %c0_i32_0 = arith.constant 0 : i32
    %c0_i32_1 = arith.constant 0 : i32
    return %c0_i32, %c0_i32_0 : i32, i32
  }
  func.func @transform_6(%arg0: i32, %arg1: i32) -> (i32, i32) {
    %c0_i32 = arith.constant 0 : i32
    %c0_i32_0 = arith.constant 0 : i32
    %c0_i32_1 = arith.constant 0 : i32
    return %c0_i32, %c0_i32_0 : i32, i32
  }
  func.func @transform_7(%arg0: i32, %arg1: i32) -> (i32, i32) {
    %c0_i32 = arith.constant 0 : i32
    %c0_i32_0 = arith.constant 0 : i32
    %c0_i32_1 = arith.constant 0 : i32
    return %c0_i32, %c0_i32_0 : i32, i32
  }
  func.func @transform_8(%arg0: i32, %arg1: i32) -> (i32, i32) {
    %c0_i32 = arith.constant 0 : i32
    %c0_i32_0 = arith.constant 0 : i32
    %c0_i32_1 = arith.constant 0 : i32
    return %c0_i32, %c0_i32_0 : i32, i32
  }
  func.func @transform_9(%arg0: i32, %arg1: i32) -> (i32, i32) {
    %c0_i32 = arith.constant 0 : i32
    %c0_i32_0 = arith.constant 0 : i32
    %c0_i32_1 = arith.constant 0 : i32
    return %c0_i32, %c0_i32_0 : i32, i32
  }
  func.func @transform_10(%arg0: i32, %arg1: i32) -> (i32, i32) {
    %c0_i32 = arith.constant 0 : i32
    %c0_i32_0 = arith.constant 0 : i32
    %c0_i32_1 = arith.constant 0 : i32
    return %c0_i32, %c0_i32_0 : i32, i32
  }
  func.func @transform_11(%arg0: i32, %arg1: i32) -> (i32, i32) {
    %c0_i32 = arith.constant 0 : i32
    %c0_i32_0 = arith.constant 0 : i32
    %c0_i32_1 = arith.constant 0 : i32
    return %c0_i32, %c0_i32_0 : i32, i32
  }
  func.func @transform_12(%arg0: i32, %arg1: i32) -> (i32, i32) {
    %c0_i32 = arith.constant 0 : i32
    %c0_i32_0 = arith.constant 0 : i32
    %c0_i32_1 = arith.constant 0 : i32
    return %c0_i32, %c0_i32_0 : i32, i32
  }
  func.func @transform_13(%arg0: i32, %arg1: i32) -> (i32, i32) {
    %c0_i32 = arith.constant 0 : i32
    %c0_i32_0 = arith.constant 0 : i32
    %c0_i32_1 = arith.constant 0 : i32
    return %c0_i32, %c0_i32_0 : i32, i32
  }
  func.func @transform_14(%arg0: i32, %arg1: i32) -> (i32, i32) {
    %c0_i32 = arith.constant 0 : i32
    %c0_i32_0 = arith.constant 0 : i32
    %c0_i32_1 = arith.constant 0 : i32
    return %c0_i32, %c0_i32_0 : i32, i32
  }
  func.func @transform_15(%arg0: i32, %arg1: i32) -> (i32, i32) {
    %c0_i32 = arith.constant 0 : i32
    %c0_i32_0 = arith.constant 0 : i32
    %c0_i32_1 = arith.constant 0 : i32
    return %c0_i32, %c0_i32_0 : i32, i32
  }
  func.func @transform_16(%arg0: i32, %arg1: i32) -> (i32, i32) {
    %c0_i32 = arith.constant 0 : i32
    %c0_i32_0 = arith.constant 0 : i32
    %c0_i32_1 = arith.constant 0 : i32
    return %c0_i32, %c0_i32_0 : i32, i32
  }
  func.func @transform_17(%arg0: i32, %arg1: i32) -> (i32, i32) {
    %c0_i32 = arith.constant 0 : i32
    %c0_i32_0 = arith.constant 0 : i32
    %c0_i32_1 = arith.constant 0 : i32
    return %c0_i32, %c0_i32_0 : i32, i32
  }
  func.func @transform_18(%arg0: i32, %arg1: i32) -> (i32, i32) {
    %c0_i32 = arith.constant 0 : i32
    %c0_i32_0 = arith.constant 0 : i32
    %c0_i32_1 = arith.constant 0 : i32
    return %c0_i32, %c0_i32_0 : i32, i32
  }
  func.func @transform_19(%arg0: i32, %arg1: i32) -> (i32, i32) {
    %c0_i32 = arith.constant 0 : i32
    %c0_i32_0 = arith.constant 0 : i32
    %c0_i32_1 = arith.constant 0 : i32
    return %c0_i32, %c0_i32_0 : i32, i32
  }
  func.func @transform_20(%arg0: i32, %arg1: i32) -> (i32, i32) {
    %c0_i32 = arith.constant 0 : i32
    %c0_i32_0 = arith.constant 0 : i32
    %c0_i32_1 = arith.constant 0 : i32
    return %c0_i32, %c0_i32_0 : i32, i32
  }
  func.func @transform_21(%arg0: i32, %arg1: i32) -> (i32, i32) {
    %c0_i32 = arith.constant 0 : i32
    %c0_i32_0 = arith.constant 0 : i32
    %c0_i32_1 = arith.constant 0 : i32
    return %c0_i32, %c0_i32_0 : i32, i32
  }
  func.func @transform_22(%arg0: i32, %arg1: i32) -> (i32, i32) {
    %c0_i32 = arith.constant 0 : i32
    %c0_i32_0 = arith.constant 0 : i32
    %c0_i32_1 = arith.constant 0 : i32
    return %c0_i32, %c0_i32_0 : i32, i32
  }
  func.func @transform_23(%arg0: i32, %arg1: i32) -> (i32, i32) {
    %c0_i32 = arith.constant 0 : i32
    %c0_i32_0 = arith.constant 0 : i32
    %c0_i32_1 = arith.constant 0 : i32
    return %c0_i32, %c0_i32_0 : i32, i32
  }
  func.func @transform_24(%arg0: i32, %arg1: i32) -> (i32, i32) {
    %c0_i32 = arith.constant 0 : i32
    %c0_i32_0 = arith.constant 0 : i32
    %c0_i32_1 = arith.constant 0 : i32
    return %c0_i32, %c0_i32_0 : i32, i32
  }
  func.func @transform_25(%arg0: i32, %arg1: i32) -> (i32, i32) {
    %c0_i32 = arith.constant 0 : i32
    %c0_i32_0 = arith.constant 0 : i32
    %c0_i32_1 = arith.constant 0 : i32
    return %c0_i32, %c0_i32_0 : i32, i32
  }
  func.func @transform_26(%arg0: i32, %arg1: i32) -> (i32, i32) {
    %c0_i32 = arith.constant 0 : i32
    %c0_i32_0 = arith.constant 0 : i32
    %c0_i32_1 = arith.constant 0 : i32
    return %c0_i32, %c0_i32_0 : i32, i32
  }
  func.func @transform_27(%arg0: i32, %arg1: i32) -> (i32, i32) {
    %c0_i32 = arith.constant 0 : i32
    %c0_i32_0 = arith.constant 0 : i32
    %c0_i32_1 = arith.constant 0 : i32
    return %c0_i32, %c0_i32_0 : i32, i32
  }
  func.func @transform_28(%arg0: i32, %arg1: i32) -> (i32, i32) {
    %c0_i32 = arith.constant 0 : i32
    %c0_i32_0 = arith.constant 0 : i32
    %c0_i32_1 = arith.constant 0 : i32
    return %c0_i32, %c0_i32_0 : i32, i32
  }
  func.func @transform_29(%arg0: i32, %arg1: i32) -> (i32, i32) {
    %c0_i32 = arith.constant 0 : i32
    %c0_i32_0 = arith.constant 0 : i32
    %c0_i32_1 = arith.constant 0 : i32
    return %c0_i32, %c0_i32_0 : i32, i32
  }
  func.func @transform_30(%arg0: i32, %arg1: i32) -> (i32, i32) {
    %c0_i32 = arith.constant 0 : i32
    %c0_i32_0 = arith.constant 0 : i32
    %c0_i32_1 = arith.constant 0 : i32
    return %c0_i32, %c0_i32_0 : i32, i32
  }
  func.func @transform_31(%arg0: i32, %arg1: i32) -> (i32, i32) {
    %c0_i32 = arith.constant 0 : i32
    %c0_i32_0 = arith.constant 0 : i32
    %c0_i32_1 = arith.constant 0 : i32
    return %c0_i32, %c0_i32_0 : i32, i32
  }
  func.func @transform_32(%arg0: i32, %arg1: i32) -> (i32, i32) {
    %c0_i32 = arith.constant 0 : i32
    %c0_i32_0 = arith.constant 0 : i32
    %c0_i32_1 = arith.constant 0 : i32
    return %c0_i32, %c0_i32_0 : i32, i32
  }
  func.func @transform_33(%arg0: i32, %arg1: i32) -> (i32, i32) {
    %c0_i32 = arith.constant 0 : i32
    %c0_i32_0 = arith.constant 0 : i32
    %c0_i32_1 = arith.constant 0 : i32
    return %c0_i32, %c0_i32_0 : i32, i32
  }
  func.func @transform_34(%arg0: i32, %arg1: i32) -> (i32, i32) {
    %c0_i32 = arith.constant 0 : i32
    %c0_i32_0 = arith.constant 0 : i32
    %c0_i32_1 = arith.constant 0 : i32
    return %c0_i32, %c0_i32_0 : i32, i32
  }
  func.func @transform_35(%arg0: i32, %arg1: i32) -> (i32, i32) {
    %c0_i32 = arith.constant 0 : i32
    %c0_i32_0 = arith.constant 0 : i32
    %c0_i32_1 = arith.constant 0 : i32
    return %c0_i32, %c0_i32_0 : i32, i32
  }
  func.func @transform_36(%arg0: i32, %arg1: i32) -> (i32, i32) {
    %c0_i32 = arith.constant 0 : i32
    %c0_i32_0 = arith.constant 0 : i32
    %c0_i32_1 = arith.constant 0 : i32
    return %c0_i32, %c0_i32_0 : i32, i32
  }
  func.func @transform_37(%arg0: i32, %arg1: i32) -> (i32, i32) {
    %c0_i32 = arith.constant 0 : i32
    %c0_i32_0 = arith.constant 0 : i32
    %c0_i32_1 = arith.constant 0 : i32
    return %c0_i32, %c0_i32_0 : i32, i32
  }
  func.func @transform_38(%arg0: i32, %arg1: i32) -> (i32, i32) {
    %c0_i32 = arith.constant 0 : i32
    %c0_i32_0 = arith.constant 0 : i32
    %c0_i32_1 = arith.constant 0 : i32
    return %c0_i32, %c0_i32_0 : i32, i32
  }
  func.func @transform_39(%arg0: i32, %arg1: i32) -> (i32, i32) {
    %c0_i32 = arith.constant 0 : i32
    %c0_i32_0 = arith.constant 0 : i32
    %c0_i32_1 = arith.constant 0 : i32
    return %c0_i32, %c0_i32_0 : i32, i32
  }
  func.func @transform_40(%arg0: i32, %arg1: i32) -> (i32, i32) {
    %c0_i32 = arith.constant 0 : i32
    %c0_i32_0 = arith.constant 0 : i32
    %c0_i32_1 = arith.constant 0 : i32
    return %c0_i32, %c0_i32_0 : i32, i32
  }
  func.func @transform_41(%arg0: i32, %arg1: i32) -> (i32, i32) {
    %c0_i32 = arith.constant 0 : i32
    %c0_i32_0 = arith.constant 0 : i32
    %c0_i32_1 = arith.constant 0 : i32
    return %c0_i32, %c0_i32_0 : i32, i32
  }
  func.func @transform_42(%arg0: i32, %arg1: i32) -> (i32, i32) {
    %c0_i32 = arith.constant 0 : i32
    %c0_i32_0 = arith.constant 0 : i32
    %c0_i32_1 = arith.constant 0 : i32
    return %c0_i32, %c0_i32_0 : i32, i32
  }
  func.func @transform_43(%arg0: i32, %arg1: i32) -> (i32, i32) {
    %c0_i32 = arith.constant 0 : i32
    %c0_i32_0 = arith.constant 0 : i32
    %c0_i32_1 = arith.constant 0 : i32
    return %c0_i32, %c0_i32_0 : i32, i32
  }
  func.func @transform_44(%arg0: i32, %arg1: i32) -> (i32, i32) {
    %c0_i32 = arith.constant 0 : i32
    %c0_i32_0 = arith.constant 0 : i32
    %c0_i32_1 = arith.constant 0 : i32
    return %c0_i32, %c0_i32_0 : i32, i32
  }
  func.func @transform_45(%arg0: i32, %arg1: i32) -> (i32, i32) {
    %c0_i32 = arith.constant 0 : i32
    %c0_i32_0 = arith.constant 0 : i32
    return %arg0, %c0_i32 : i32, i32
  }
}

</mosaic_0001>

<bundles_post_ra>
// kernel: tpu_custom_call.1
= control target key start
LH: loop header
LB: loop body
LE: loop exit
PB: predicated region body
PF: predicated region fallthrough
CT: control target
= control target key end

     0   :  { %s10519_s6 = smov 1   ;;  %s10520_s10 = smov 2   ;;  %s11859_s0 = inlined_call_operand.smem [shape: u32[46], index: -1, kind: input, shape index: {}] }
   0x1   :  { %s10616_s5 = sld [smem:[%s11859_s0]]   ;;  %s10521_s14 = smov 3  }
   0x2   :  { %s10621_s9 = sld [smem:[%s11859_s0 + %s10519_s6]]   ;;  %s10522_s18 = smov 4  }
   0x3   :  { %s10626_s13 = sld [smem:[%s11859_s0 + %s10520_s10]]   ;;  %s10523_s22 = smov 5  }
   0x4   :  { %s10631_s17 = sld [smem:[%s11859_s0 + %s10521_s14]]   ;;  %s10524_s26 = smov 6  }
   0x5   :  { %s10636_s21 = sld [smem:[%s11859_s0 + %s10522_s18]]   ;;  %s10525_s30 = smov 7  }
   0x6   :  { %s10641_s25 = sld [smem:[%s11859_s0 + %s10523_s22]]   ;;  %s10526_s4 = smov 8  }
   0x7   :  { %11936 = sst [smem:[#allocation78_spill]] %s10616_s5  ;;  %s10527_s10 = smov 9  }
   0x8   :  { %11937 = sst [smem:[#allocation79_spill]] %s10621_s9  ;;  %s10528_s15 = smov 10  }
   0x9   :  { %11938 = sst [smem:[#allocation80_spill]] %s10626_s13  ;;  %s10529_s20 = smov 11  }
   0xa   :  { %11939 = sst [smem:[#allocation81_spill]] %s10631_s17  ;;  %s10531_s1 = smov 13  }
   0xb   :  { %11940 = sst [smem:[#allocation82_spill]] %s10636_s21  ;;  %s10532_s7 = smov 14  }
   0xc   :  { %11941 = sst [smem:[#allocation83_spill]] %s10641_s25  ;;  %s10534_s22 = smov 16  }
   0xd   :  { %s10646_s29 = sld [smem:[%s11859_s0 + %s10524_s26]]   ;;  %s10530_s26 = smov 12  }
   0xe   :  { %s10651_s3 = sld [smem:[%s11859_s0 + %s10525_s30]]   ;;  %s10535_s28 = smov 17  }
   0xf   :  { %s10656_s8 = sld [smem:[%s11859_s0 + %s10526_s4]]  }
  0x10   :  { %s10661_s14 = sld [smem:[%s11859_s0 + %s10527_s10]]  }
  0x11   :  { %s10666_s19 = sld [smem:[%s11859_s0 + %s10528_s15]]   ;;  %s10533_s15 = smov 15  }
  0x12   :  { %s10671_s24 = sld [smem:[%s11859_s0 + %s10529_s20]]  }
  0x13   :  { %11942 = sst [smem:[#allocation84_spill]] %s10646_s29 }
  0x14   :  { %11943 = sst [smem:[#allocation85_spill]] %s10651_s3 }
  0x15   :  { %11944 = sst [smem:[#allocation86_spill]] %s10656_s8 }
  0x16   :  { %11945 = sst [smem:[#allocation87_spill]] %s10661_s14 }
  0x17   :  { %11946 = sst [smem:[#allocation88_spill]] %s10666_s19 }
  0x18   :  { %11947 = sst [smem:[#allocation89_spill]] %s10671_s24 }
  0x19   :  { %s10676_s30 = sld [smem:[%s11859_s0 + %s10530_s26]]  }
  0x1a   :  { %s10681_s6 = sld [smem:[%s11859_s0 + %s10531_s1]]  }
  0x1b   :  { %s10686_s12 = sld [smem:[%s11859_s0 + %s10532_s7]]   ;;  %s10536_s7 = smov 18  }
  0x1c   :  { %s10691_s20 = sld [smem:[%s11859_s0 + %s10533_s15]]   ;;  %s10537_s15 = smov 19  }
  0x1d   :  { %s10696_s27 = sld [smem:[%s11859_s0 + %s10534_s22]]   ;;  %s10538_s22 = smov 20  }
  0x1e   :  { %s10701_s4 = sld [smem:[%s11859_s0 + %s10535_s28]]   ;;  %s10539_s28 = smov 21  }
  0x1f   :  { %11948 = sst [smem:[#allocation90_spill]] %s10676_s30 }
  0x20   :  { %11949 = sst [smem:[#allocation91_spill]] %s10681_s6 }
  0x21   :  { %11950 = sst [smem:[#allocation92_spill]] %s10686_s12 }
  0x22   :  { %11951 = sst [smem:[#allocation93_spill]] %s10691_s20 }
  0x23   :  { %11952 = sst [smem:[#allocation94_spill]] %s10696_s27 }
  0x24   :  { %11953 = sst [smem:[#allocation95_spill]] %s10701_s4 }
  0x25   :  { %s10706_s8 = sld [smem:[%s11859_s0 + %s10536_s7]]   ;;  %s10540_s7 = smov 22  }
  0x26   :  { %s10711_s29 = sld [smem:[%s11859_s0 + %s10537_s15]]   ;;  %s10541_s15 = smov 23  }
  0x27   :  { %s10716_s21 = sld [smem:[%s11859_s0 + %s10538_s22]]   ;;  %s10542_s22 = smov 24  }
  0x28   :  { %s10721_s13 = sld [smem:[%s11859_s0 + %s10539_s28]]   ;;  %s10543_s28 = smov 25  }
  0x29   :  { %s10726_s9 = sld [smem:[%s11859_s0 + %s10540_s7]]   ;;  %s10544_s7 = smov 26  }
  0x2a   :  { %s10731_s5 = sld [smem:[%s11859_s0 + %s10541_s15]]   ;;  %s10545_s15 = smov 27  }
  0x2b   :  { %11954 = sst [smem:[#allocation96_spill]] %s10706_s8 }
  0x2c   :  { %s10741_s8 = sld [smem:[%s11859_s0 + %s10543_s28]]   ;;  %s10547_s28 = smov 29  }
  0x2d   :  { %11955 = sst [smem:[#allocation97_spill]] %s10716_s21 }
  0x2e   :  { %11956 = sst [smem:[#allocation98_spill]] %s10721_s13 }
  0x2f   :  { %11957 = sst [smem:[#allocation99_spill]] %s10726_s9 }
  0x30   :  { %11958 = sst [smem:[#allocation100_spill]] %s10731_s5 }
  0x31   :  { %s10736_s21 = sld [smem:[%s11859_s0 + %s10542_s22]]   ;;  %s10546_s22 = smov 28  }
  0x32   :  { %11960 = sst [smem:[#allocation102_spill]] %s10741_s8 }
  0x33   :  { %s10746_s9 = sld [smem:[%s11859_s0 + %s10544_s7]]   ;;  %s10548_s7 = smov 30  }
  0x34   :  { %s10751_s27 = sld [smem:[%s11859_s0 + %s10545_s15]]   ;;  %s10549_s15 = smov 31  }
  0x35   :  { %s10761_s12 = sld [smem:[%s11859_s0 + %s10547_s28]]   ;;  %s10551_s28 = smov 33  }
  0x36   :  { %s10771_s30 = sld [smem:[%s11859_s0 + %s10549_s15]]   ;;  %s10553_s15 = smov 35  }
  0x37   :  { %11959 = sst [smem:[#allocation101_spill]] %s10736_s21 }
  0x38   :  { %s10756_s21 = sld [smem:[%s11859_s0 + %s10546_s22]]   ;;  %s10550_s22 = smov 32  }
  0x39   :  { %11961 = sst [smem:[#allocation103_spill]] %s10746_s9 }
  0x3a   :  { %s10766_s9 = sld [smem:[%s11859_s0 + %s10548_s7]]   ;;  %s10552_s7 = smov 34  }
  0x3b   :  { %11963 = sst [smem:[#allocation105_spill]] %s10761_s12 }
  0x3c   :  { %11965 = sst [smem:[#allocation107_spill]] %s10771_s30 }
  0x3d   :  { %s10781_s19 = sld [smem:[%s11859_s0 + %s10551_s28]]   ;;  %s10555_s28 = smov 37  }
  0x3e   :  { %11962 = sst [smem:[#allocation104_spill]] %s10756_s21 }
  0x3f   :  { %s10776_s21 = sld [smem:[%s11859_s0 + %s10550_s22]]   ;;  %s10554_s22 = smov 36  }
  0x40   :  { %11964 = sst [smem:[#allocation106_spill]] %s10766_s9 }
  0x41   :  { %s10786_s9 = sld [smem:[%s11859_s0 + %s10552_s7]]   ;;  %s10556_s7 = smov 38  }
  0x42   :  { %s10791_s3 = sld [smem:[%s11859_s0 + %s10553_s15]]   ;;  %s10557_s15 = smov 39  }
  0x43   :  { %11967 = sst [smem:[#allocation109_spill]] %s10781_s19 }
  0x44   :  { %s10801_s17 = sld [smem:[%s11859_s0 + %s10555_s28]]   ;;  %s10559_s28 = smov 41  }
  0x45   :  { %11966 = sst [smem:[#allocation108_spill]] %s10776_s21 }
  0x46   :  { %s10796_s21 = sld [smem:[%s11859_s0 + %s10554_s22]]   ;;  %s10558_s22 = smov 40  }
  0x47   :  { %11968 = sst [smem:[#allocation110_spill]] %s10786_s9 }
  0x48   :  { %11969 = sst [smem:[#allocation111_spill]] %s10791_s3 }
  0x49   :  { %s10806_s9 = sld [smem:[%s11859_s0 + %s10556_s7]]   ;;  %s10560_s7 = smov 42  }
  0x4a   :  { %11971 = sst [smem:[#allocation113_spill]] %s10801_s17 }
  0x4b   :  { %s10811_s3 = sld [smem:[%s11859_s0 + %s10557_s15]]   ;;  %s10561_s15 = smov 43  }
  0x4c   :  { %11970 = sst [smem:[#allocation112_spill]] %s10796_s21 }
  0x4d   :  { %s10816_s21 = sld [smem:[%s11859_s0 + %s10558_s22]]   ;;  %s10562_s22 = smov 44  }
  0x4e   :  { %s10821_s17 = sld [smem:[%s11859_s0 + %s10559_s28]]   ;;  %s10563_s28 = smov 45  }
  0x4f   :  { %11972 = sst [smem:[#allocation114_spill]] %s10806_s9 }
  0x50   :  { %s10826_s9 = sld [smem:[%s11859_s0 + %s10560_s7]]  }
  0x51   :  { %11973 = sst [smem:[#allocation115_spill]] %s10811_s3 }
  0x52   :  { %s10831_s3 = sld [smem:[%s11859_s0 + %s10561_s15]]  }
  0x53   :  { %11974 = sst [smem:[#allocation116_spill]] %s10816_s21 }
  0x54   :  { %11975 = sst [smem:[#allocation117_spill]] %s10821_s17 }
  0x55   :  { %s10836_s21 = sld [smem:[%s11859_s0 + %s10562_s22]]  }
  0x56   :  { %11976 = sst [smem:[#allocation118_spill]] %s10826_s9 }
  0x57   :  { %s10841_s17 = sld [smem:[%s11859_s0 + %s10563_s28]]  }
  0x58   :  { %11977 = sst [smem:[#allocation119_spill]] %s10831_s3 }
  0x5b   :  { %11978 = sst [smem:[#allocation120_spill]] %s10836_s21 }
  0x5d   :  { %11979 = sst [smem:[#allocation121_spill]] %s10841_s17 }
  0x5e   :  { %96 = vsyncpa [#allocation4], 0 }
  0x5f   :  { %98 = vsyncpa [#allocation4 + $0x1], 0 }
  0x60   :  { %99 = vsyncpa [#allocation7], 0 }
  0x61   :  { %101 = vsyncpa [#allocation7 + $0x1], 0 }
  0x62   :  { %102 = vsyncpa [#allocation10], 0 }
  0x63   :  { %103 = vsyncpa [#allocation13], 0 }
  0x64   :  { %104 = vsyncpa [#allocation16], 0 }
  0x65   :  { %105 = vsyncpa [#allocation19], 0 }
  0x66   :  { %106 = vsyncpa [#allocation22], 0 }
  0x67   :  { %107 = vsyncpa [#allocation25], 0 }
  0x68   :  { %108 = vsyncpa [#allocation28], 0 }
  0x69   :  { %109 = vsyncpa [#allocation31], 0 }
  0x6a   :  { %110 = vsyncpa [#allocation34], 0 }
  0x6b   :  { %111 = vsyncpa [#allocation37], 0 }
  0x6c   :  { %112 = vsyncpa [#allocation40], 0 }
  0x6d   :  { %113 = vsyncpa [#allocation43], 0 }
  0x6e   :  { %114 = vsyncpa [#allocation46], 0 }
  0x6f   :  { %115 = vsyncpa [#allocation49], 0 }
  0x70   :  { %116 = vsyncpa [#allocation52], 0 }
  0x71   :  { %117 = vsyncpa [#allocation55], 0 }
  0x72   :  { %118 = vsyncpa [#allocation5], 0 }
  0x73   :  { %120 = vsyncpa [#allocation5 + $0x1], 0  ;;  %s10843_s0 = smov 0   ;;  %s10845_s7 = smov 0  }
  0x74   :  { %s10847_s10 = smov 0   ;;  %s10849_s11 = smov 0  }
  0x75   :  { %s10851_s15 = smov 0   ;;  %s10853_s16 = smov 0  }
  0x76   :  { %s10855_s18 = smov 0   ;;  %s10857_s22 = smov 0  }
  0x77   :  { %s10859_s23 = smov 0   ;;  %s10861_s26 = smov 0  }
  0x78   :  { %s10863_s28 = smov 0   ;;  %s10865_s1 = smov 0  }
  0x79   :  { %s10867_s2 = smov 0   ;;  %s10869_s17 = smov 0  }
  0x7a LB: > { %s11980_s24 = sld [smem:[#allocation89_spill]]  ;;  %s11981_s20 = sld [smem:[#allocation93_spill]]  ;;  %s10497_s23 = sphi %s10859_s23, %s12129_s23   ;;  %s10493_s22 = sphi %s10857_s22, %s12128_s22   ;;  %s10489_s18 = sphi %s10855_s18, %s12117_s18   ;;  %s10485_s16 = sphi %s10853_s16, %s12127_s16   ;;  %s10481_s15 = sphi %s10851_s15, %s12126_s15   ;;  %s10477_s11 = sphi %s10849_s11, %s12125_s11   ;;  %s10473_s10 = sphi %s10847_s10, %s12115_s10   ;;  %s10469_s7 = sphi %s10845_s7, %s12124_s7   ;;  %s10465_s0 = sphi %s10843_s0, %s12123_s0   ;;  %s10517_s17 = sphi %s10869_s17, %s126_s17   ;;  %s10513_s2 = sphi %s10867_s2, %s12132_s2   ;;  %s10509_s1 = sphi %s10865_s1, %s12120_s1   ;;  %s10505_s28 = sphi %s10863_s28, %s12131_s28   ;;  %s10501_s26 = sphi %s10861_s26, %s12130_s26  }
  0x7b   : > { %s11982_s14 = sld [smem:[#allocation87_spill]]  ;;  %s11983_s13 = sld [smem:[#allocation98_spill]] }
  0x7c   : > { %s11984_s8 = sld [smem:[#allocation102_spill]]  ;;  %s11985_s6 = sld [smem:[#allocation91_spill]] }
  0x7d   : > { %s11986_s5 = sld [smem:[#allocation100_spill]]  ;;  %s11987_s4 = sld [smem:[#allocation95_spill]] }
  0x7e   : > { %s11988_s25 = sld [smem:[#allocation83_spill]]  ;;  %11989 = sst [smem:[#allocation122_spill]] %s10473_s10 }
  0x7f   : > { %11990 = sst [smem:[#allocation123_spill]] %s10493_s22  ;;  %s10912_s21 = sadd.s32 4294967295, %s10517_s17  }
  0x80   : > { %11991 = sst [smem:[#allocation124_spill]] %s10501_s26  ;;  %s138_s26 = sadd.s32 1, %s10513_s2 }
  0x81   : > { %11992 = sst [smem:[#allocation125_spill]] %s10505_s28  ;;  %s135_s28 = sadd.s32 1, %s10509_s1 }
  0x82   : > { %11993 = sst [smem:[#allocation126_spill]] %s10509_s1  ;;  %p136_p0 = scmp.ge.s32.totalorder %s135_s28, 4 }
  0x83   : > { %s147_s3 = sadd.s32 1, %s10497_s23  ;;  %p154_p1 = scmp.ne.s32.totalorder %s10497_s23, %s10493_s22 }
  0x84   : > { %p155_p2 = scmp.eq.s32.totalorder %s10517_s17, 0  ;;  %s12134_s28 = smov (%p136_p0, %s135_s28), 0 }
  0x85   : > { %11994 = sst [smem:[#allocation127_spill]] %s12134_s28  ;;  %s12136_s26 = smov (!%p136_p0, %s138_s26), %s10513_s2 }
  0x86   : > { %s143_s9 = ssub.s32 %s10509_s1, %s12134_s28  ;;  %p10928_p3 = por %p155_p2, %p154_p1 }
  0x87   : > { %p140_p4 = scmp.ge.s32.totalorder %s12136_s26, 2  ;;  %p160_p5 = scmp.ne.s32.totalorder %s10493_s22, %s10489_s18 }
  0x88   : > { %s11995_s19 = scalar_select %p10928_p3, 1, 0 }
  0x89   : > { %p11931_p6 = scmp.eq.s32.totalorder %s10912_s21, 0  ;;  %p171_p7 = scmp.eq.s32.totalorder %s143_s9, 0 }
  0x8a   : > { %11996 = sst [smem:[#allocation128_spill]] %s11995_s19  ;;  %s12138_s26 = smov (%p140_p4, %s12136_s26), 0 }
  0x8b   : > { %11997 = sst [smem:[#allocation129_spill]] %s12138_s26  ;;  %p10938_p8 = por %p11931_p6, %p160_p5 }
  0x8c   : > { %s173_s19 = sadd.s32 1, %s10485_s16  ;;  %s142_s18 = ssub.s32 %s10513_s2, %s12138_s26 }
  0x8d   : > { %s11998_s28 = scalar_select %p10938_p8, 1, 0 }
  0x8e   : > { %p180_p9 = scmp.ne.s32.totalorder %s10485_s16, %s10481_s15  ;;  %s144_s22 = sor.u32 %s143_s9, %s142_s18 }
  0x8f   : > { %11999 = sst [smem:[#allocation130_spill]] %s11998_s28  ;;  %p186_p10 = scmp.ne.s32.totalorder %s10481_s15, %s10477_s11 }
  0x90   : > { %p145_p11 = scmp.eq.s32.totalorder %s144_s22, 0  ;;  %p10951_p12 = por %p180_p9, %p155_p2 }
  0x91   : > { %s10956_s30 = scalar_select %p171_p7, %s10485_s16, %s173_s19  }
  0x92   : > { %s12000_s1 = scalar_select %p10951_p12, 1, 0 }
  0x93   : > { %12001 = sst [smem:[#allocation131_spill]] %s10956_s30  ;;  %p10963_p13 = por %p186_p10, %p11931_p6 }
  0x94   : > { %s10959_s12 = scalar_select %p145_p11, %s10497_s23, %s147_s3  }
  0x95   : > { %s12003_s28 = scalar_select %p10963_p13, 1, 0 }
  0x96   : > { %12002 = sst [smem:[#allocation132_spill]] %s10959_s12  ;;  %p1100_p0 = scmp.eq.s32.totalorder %s142_s18, 0 }
  0x97   : > { %s1102_s26 = sadd.s32 1, %s10473_s10  ;;  %p1112_p1 = scmp.ne.s32.totalorder %s10473_s10, %s10469_s7 }
  0x98   : > { %s10971_s9 = scalar_select %p1100_p0, %s10473_s10, %s1102_s26  }
  0x99   : > { %p1113_p4 = scmp.eq.s32.totalorder %s10912_s21, 7  ;;  %p1118_p5 = scmp.ne.s32.totalorder %s10469_s7, %s10465_s0 }
  0x9a   : > { %12004 = sst [smem:[#allocation133_spill]] %s10971_s9  ;;  %s12005_s11 = sadd.s32 4294967294, %s10517_s17  }
  0x9b   : > { %p1119_p2 = scmp.eq.s32.totalorder %s12005_s11, 7  ;;  %p5935_p9 = scmp.ge.s32.totalorder %s10517_s17, 1 }
  0x9c   : > { %p10979_p8 = por %p1113_p4, %p1112_p1  ;;  %p1126_p7 = scmp.lt.s32.totalorder %s10517_s17, 9 }
  0x9d   : > { %p10984_p11 = por %p1119_p2, %p1118_p5 }
  0x9e   : > { %s12006_s19 = scalar_select %p10979_p8, 1, 0 }
  0x9f   : > { %s12007_s3 = scalar_select %p10984_p11, 1, 0 }
  0xa0   : > { %p10988_p10 = pnand %p5935_p9, %p1126_p7 }
  0xa1   : > { %12008 = sst [smem:[#allocation134_spill]] %s12007_s3  ;;  %s10564_s26 = smov (!%p10988_p10), [#allocation9]  }
  0xa2   : > { %s12009_s22 = scalar_select %p10988_p10, 1, 0 }
  0xa3   : > { %1130 = sbr.rel (%p10988_p10) target bundleno = 979 (0x3d3), region = 12  ;;  %s1157_s18 = sshll.u32 (!%p10988_p10), %s10564_s26, 4  ;;  %s1158_s18 = int_to_ptr.vmem [resolvable:$true] %s1157_s18 }
  0xa4   : > { %s10565_s11 = smov (!%p10988_p10), [#allocation12]   ;;  %s9381_s30 = scalar_lea.hbm (!%p10988_p10), %s11988_s25, 2048 }
  0xa5   : > { %s1189_s12 = sshll.u32 (!%p10988_p10), %s10565_s11, 4  ;;  %p9382_p0 = scmp.ne.s32.totalorder (!%p10988_p10), %s11988_s25, %s9381_s30  ;;  %s10994_s12 = int_to_ptr.vmem [resolvable:$true] %s1189_s12 }
  0xa6   : > { %p9387_p5 = scmp.lt.u32.totalorder (!%p10988_p10), %s9381_s30, %s11988_s25 }
  0xa7   : > { %p9383_p1 = pnand (!%p10988_p10), %p9382_p0, %p11931_p6 }
  0xa9   : > { %p9384_p4 = pneg (!%p10988_p10), %p9383_p1 }
  0xab   : > { %p9389_p2 = pnand %p9387_p5, %p9384_p4 }
  0xad   : > { %9392 = shalt.err (!%p9389_p2)
}
  0xae   : > { %s9393_s9 = scalar_lea.vmem %s1158_s18, 2048  ;;  %p9400_p8 = scmp.lt.s32.totalorder %s1158_s18, %s1158_s18 }
  0xaf   : > { %p9394_p9 = scmp.ne.s32.totalorder %s1158_s18, %s9393_s9  ;;  %p9401_p13 = scmp.lt.s32.totalorder %s9393_s9, %s9393_s9 }
  0xb1   : > { %p9395_p7 = pnand %p9394_p9, %p11931_p6  ;;  %p9402_p10 = por %p9401_p13, %p9400_p8 }
  0xb3   : > { %p9396_p11 = pneg %p9395_p7 }
  0xb5   : > { %p9403_p12 = pnand %p9402_p10, %p9396_p11 }
  0xb7   : > { %9406 = shalt.err (!%p9403_p12)
}
  0xb8   : > { %s11910_s26 = smov 128   ;;  %s11912_s30 = smov 8  }
  0xb9   : > { %8919 = dma.hbm_to_vmem [thread:$0]  (%p11931_p6), %s11988_s25, 2048, %s1158_s18, [#allocation10], %s11910_s26, %s11910_s26, %s11912_s30  }
  0xba   : > { %s9407_s11 = scalar_lea.hbm %s11982_s14, 2048 }
  0xbb   : > { %p9408_p0 = scmp.ne.s32.totalorder %s11982_s14, %s9407_s11  ;;  %p9413_p13 = scmp.lt.u32.totalorder %s9407_s11, %s11982_s14 }
  0xbd   : > { %p9409_p1 = pnand %p9408_p0, %p11931_p6 }
  0xbf   : > { %p9410_p8 = pneg %p9409_p1 }
  0xc1   : > { %p9415_p12 = pnand %p9413_p13, %p9410_p8 }
  0xc3   : > { %9418 = shalt.err (!%p9415_p12)
}
  0xc4   : > { %s9419_s9 = scalar_lea.vmem %s10994_s12, 2048  ;;  %p9426_p5 = scmp.lt.s32.totalorder %s10994_s12, %s10994_s12 }
  0xc5   : > { %p9420_p11 = scmp.ne.s32.totalorder %s10994_s12, %s9419_s9  ;;  %p9427_p2 = scmp.lt.s32.totalorder %s9419_s9, %s9419_s9 }
  0xc7   : > { %p9421_p10 = pnand %p9420_p11, %p11931_p6  ;;  %p9428_p9 = por %p9427_p2, %p9426_p5 }
  0xc9   : > { %p9422_p4 = pneg %p9421_p10 }
  0xcb   : > { %p9429_p7 = pnand %p9428_p9, %p9422_p4 }
  0xcd   : > { %9432 = shalt.err (!%p9429_p7)
}
  0xce   : > { %8923 = dma.hbm_to_vmem [thread:$0]  (%p11931_p6), %s11982_s14, 2048, %s10994_s12, [#allocation13], %s11910_s26, %s11910_s26, %s11912_s30  }
  0xcf   : > { %s10568_s18 = smov [#allocation15]   ;;  %s10569_s25 = smov [#allocation18]  }
  0xd0   : > { %s1213_s11 = sshll.u32 %s10568_s18, 4  ;;  %s1237_s10 = sshll.u32 %s10569_s25, 4  ;;  %s1214_s11 = int_to_ptr.vmem [resolvable:$true] %s1213_s11  ;;  %s11027_s10 = int_to_ptr.vmem [resolvable:$true] %s1237_s10 }
  0xd1   : > { %s9433_s9 = scalar_lea.hbm %s11980_s24, 2048 }
  0xd2   : > { %p9434_p0 = scmp.ne.s32.totalorder %s11980_s24, %s9433_s9  ;;  %p9439_p13 = scmp.lt.u32.totalorder %s9433_s9, %s11980_s24 }
  0xd4   : > { %p9435_p1 = pnand %p9434_p0, %p11931_p6 }
  0xd6   : > { %p9436_p8 = pneg %p9435_p1 }
  0xd8   : > { %p9441_p12 = pnand %p9439_p13, %p9436_p8 }
  0xda   : > { %9444 = shalt.err (!%p9441_p12)
}
  0xdb   : > { %s9445_s3 = scalar_lea.vmem %s1214_s11, 2048  ;;  %p9452_p5 = scmp.lt.s32.totalorder %s1214_s11, %s1214_s11 }
  0xdc   : > { %p9446_p11 = scmp.ne.s32.totalorder %s1214_s11, %s9445_s3  ;;  %p9453_p2 = scmp.lt.s32.totalorder %s9445_s3, %s9445_s3 }
  0xde   : > { %p9447_p10 = pnand %p9446_p11, %p11931_p6  ;;  %p9454_p9 = por %p9453_p2, %p9452_p5 }
  0xe0   : > { %p9448_p4 = pneg %p9447_p10 }
  0xe2   : > { %p9455_p7 = pnand %p9454_p9, %p9448_p4 }
  0xe4   : > { %9458 = shalt.err (!%p9455_p7)
}
  0xe5   : > { %8927 = dma.hbm_to_vmem [thread:$0]  (%p11931_p6), %s11980_s24, 2048, %s1214_s11, [#allocation16], %s11910_s26, %s11910_s26, %s11912_s30  }
  0xe6   : > { %s9459_s25 = scalar_lea.hbm %s11985_s6, 2048 }
  0xe7   : > { %p9460_p0 = scmp.ne.s32.totalorder %s11985_s6, %s9459_s25  ;;  %p9465_p13 = scmp.lt.u32.totalorder %s9459_s25, %s11985_s6 }
  0xe9   : > { %p9461_p1 = pnand %p9460_p0, %p11931_p6 }
  0xeb   : > { %p9462_p8 = pneg %p9461_p1 }
  0xed   : > { %p9467_p12 = pnand %p9465_p13, %p9462_p8 }
  0xef   : > { %9470 = shalt.err (!%p9467_p12)
}
  0xf0   : > { %s9471_s12 = scalar_lea.vmem %s11027_s10, 2048  ;;  %p9478_p5 = scmp.lt.s32.totalorder %s11027_s10, %s11027_s10 }
  0xf1   : > { %p9472_p11 = scmp.ne.s32.totalorder %s11027_s10, %s9471_s12  ;;  %p9479_p2 = scmp.lt.s32.totalorder %s9471_s12, %s9471_s12 }
  0xf3   : > { %p9473_p10 = pnand %p9472_p11, %p11931_p6  ;;  %p9480_p9 = por %p9479_p2, %p9478_p5 }
  0xf5   : > { %p9474_p4 = pneg %p9473_p10 }
  0xf7   : > { %p9481_p7 = pnand %p9480_p9, %p9474_p4 }
  0xf9   : > { %9484 = shalt.err (!%p9481_p7)
}
  0xfa   : > { %8931 = dma.hbm_to_vmem [thread:$0]  (%p11931_p6), %s11985_s6, 2048, %s11027_s10, [#allocation19], %s11910_s26, %s11910_s26, %s11912_s30  }
  0xfb   : > { %s10570_s3 = smov [#allocation21]   ;;  %s10571_s11 = smov [#allocation24]  }
  0xfc   : > { %s1261_s18 = sshll.u32 %s10570_s3, 4  ;;  %s1285_s9 = sshll.u32 %s10571_s11, 4  ;;  %s1262_s18 = int_to_ptr.vmem [resolvable:$true] %s1261_s18  ;;  %s11060_s9 = int_to_ptr.vmem [resolvable:$true] %s1285_s9 }
  0xfd   : > { %s9485_s25 = scalar_lea.hbm %s11981_s20, 4096 }
  0xfe   : > { %p9486_p0 = scmp.ne.s32.totalorder %s11981_s20, %s9485_s25  ;;  %p9491_p13 = scmp.lt.u32.totalorder %s9485_s25, %s11981_s20 }
 0x100   : > { %p9487_p1 = pnand %p9486_p0, %p11931_p6 }
 0x102   : > { %p9488_p8 = pneg %p9487_p1 }
 0x104   : > { %p9493_p12 = pnand %p9491_p13, %p9488_p8 }
 0x106   : > { %9496 = shalt.err (!%p9493_p12)
}
 0x107   : > { %s9497_s12 = scalar_lea.vmem %s1262_s18, 4096  ;;  %p9504_p5 = scmp.lt.s32.totalorder %s1262_s18, %s1262_s18 }
 0x108   : > { %p9498_p11 = scmp.ne.s32.totalorder %s1262_s18, %s9497_s12  ;;  %p9505_p2 = scmp.lt.s32.totalorder %s9497_s12, %s9497_s12 }
 0x10a   : > { %p9499_p10 = pnand %p9498_p11, %p11931_p6  ;;  %p9506_p9 = por %p9505_p2, %p9504_p5 }
 0x10c   : > { %p9500_p4 = pneg %p9499_p10 }
 0x10e   : > { %p9507_p7 = pnand %p9506_p9, %p9500_p4 }
 0x110   : > { %9510 = shalt.err (!%p9507_p7)
}
 0x111   : > { %8935 = dma.hbm_to_vmem [thread:$0]  (%p11931_p6), %s11981_s20, 4096, %s1262_s18, [#allocation22], %s11910_s26, %s11910_s26, %s11912_s30  }
 0x112   : > { %s9511_s10 = scalar_lea.hbm %s11987_s4, 2048 }
 0x113   : > { %p9512_p0 = scmp.ne.s32.totalorder %s11987_s4, %s9511_s10  ;;  %p9517_p13 = scmp.lt.u32.totalorder %s9511_s10, %s11987_s4 }
 0x115   : > { %p9513_p1 = pnand %p9512_p0, %p11931_p6 }
 0x117   : > { %p9514_p8 = pneg %p9513_p1 }
 0x119   : > { %p9519_p12 = pnand %p9517_p13, %p9514_p8 }
 0x11b   : > { %9522 = shalt.err (!%p9519_p12)
}
 0x11c   : > { %s9523_s3 = scalar_lea.vmem %s11060_s9, 2048  ;;  %p9530_p5 = scmp.lt.s32.totalorder %s11060_s9, %s11060_s9 }
 0x11d   : > { %p9524_p11 = scmp.ne.s32.totalorder %s11060_s9, %s9523_s3  ;;  %p9531_p2 = scmp.lt.s32.totalorder %s9523_s3, %s9523_s3 }
 0x11f   : > { %p9525_p10 = pnand %p9524_p11, %p11931_p6  ;;  %p9532_p9 = por %p9531_p2, %p9530_p5 }
 0x121   : > { %p9526_p4 = pneg %p9525_p10 }
 0x123   : > { %p9533_p7 = pnand %p9532_p9, %p9526_p4 }
 0x125   : > { %9536 = shalt.err (!%p9533_p7)
}
 0x126   : > { %8939 = dma.hbm_to_vmem [thread:$0]  (%p11931_p6), %s11987_s4, 2048, %s11060_s9, [#allocation25], %s11910_s26, %s11910_s26, %s11912_s30  }
 0x127   : > { %s10572_s18 = smov [#allocation27]   ;;  %s10573_s25 = smov [#allocation30]  }
 0x128   : > { %s1309_s11 = sshll.u32 %s10572_s18, 4  ;;  %s1333_s12 = sshll.u32 %s10573_s25, 4  ;;  %s1310_s11 = int_to_ptr.vmem [resolvable:$true] %s1309_s11  ;;  %s11093_s12 = int_to_ptr.vmem [resolvable:$true] %s1333_s12 }
 0x129   : > { %s9537_s10 = scalar_lea.hbm %s10711_s29, 2048 }
 0x12a   : > { %p9538_p0 = scmp.ne.s32.totalorder %s10711_s29, %s9537_s10  ;;  %p9543_p13 = scmp.lt.u32.totalorder %s9537_s10, %s10711_s29 }
 0x12c   : > { %p9539_p1 = pnand %p9538_p0, %p11931_p6 }
 0x12e   : > { %p9540_p8 = pneg %p9539_p1 }
 0x130   : > { %p9545_p12 = pnand %p9543_p13, %p9540_p8 }
 0x132   : > { %9548 = shalt.err (!%p9545_p12)
}
 0x133   : > { %s9549_s3 = scalar_lea.vmem %s1310_s11, 2048  ;;  %p9556_p5 = scmp.lt.s32.totalorder %s1310_s11, %s1310_s11 }
 0x134   : > { %p9550_p11 = scmp.ne.s32.totalorder %s1310_s11, %s9549_s3  ;;  %p9557_p2 = scmp.lt.s32.totalorder %s9549_s3, %s9549_s3 }
 0x136   : > { %p9551_p10 = pnand %p9550_p11, %p11931_p6  ;;  %p9558_p9 = por %p9557_p2, %p9556_p5 }
 0x138   : > { %p9552_p4 = pneg %p9551_p10 }
 0x13a   : > { %p9559_p7 = pnand %p9558_p9, %p9552_p4 }
 0x13c   : > { %9562 = shalt.err (!%p9559_p7)
}
 0x13d   : > { %8943 = dma.hbm_to_vmem [thread:$0]  (%p11931_p6), %s10711_s29, 2048, %s1310_s11, [#allocation28], %s11910_s26, %s11910_s26, %s11912_s30  }
 0x13e   : > { %s9563_s9 = scalar_lea.hbm %s11983_s13, 2048 }
 0x13f   : > { %p9564_p0 = scmp.ne.s32.totalorder %s11983_s13, %s9563_s9  ;;  %p9569_p13 = scmp.lt.u32.totalorder %s9563_s9, %s11983_s13 }
 0x141   : > { %p9565_p1 = pnand %p9564_p0, %p11931_p6 }
 0x143   : > { %p9566_p8 = pneg %p9565_p1 }
 0x145   : > { %p9571_p12 = pnand %p9569_p13, %p9566_p8 }
 0x147   : > { %9574 = shalt.err (!%p9571_p12)
}
 0x148   : > { %s9575_s18 = scalar_lea.vmem %s11093_s12, 2048  ;;  %p9582_p5 = scmp.lt.s32.totalorder %s11093_s12, %s11093_s12 }
 0x149   : > { %p9576_p11 = scmp.ne.s32.totalorder %s11093_s12, %s9575_s18  ;;  %p9583_p2 = scmp.lt.s32.totalorder %s9575_s18, %s9575_s18 }
 0x14b   : > { %p9577_p10 = pnand %p9576_p11, %p11931_p6  ;;  %p9584_p9 = por %p9583_p2, %p9582_p5 }
 0x14d   : > { %p9578_p4 = pneg %p9577_p10 }
 0x14f   : > { %p9585_p7 = pnand %p9584_p9, %p9578_p4 }
 0x151   : > { %9588 = shalt.err (!%p9585_p7)
}
 0x152   : > { %8947 = dma.hbm_to_vmem [thread:$0]  (%p11931_p6), %s11983_s13, 2048, %s11093_s12, [#allocation31], %s11910_s26, %s11910_s26, %s11912_s30  }
 0x153   : > { %s10574_s11 = smov [#allocation33]   ;;  %s10575_s10 = smov [#allocation36]  }
 0x154   : > { %s1357_s25 = sshll.u32 %s10574_s11, 4  ;;  %s1381_s3 = sshll.u32 %s10575_s10, 4  ;;  %s1358_s25 = int_to_ptr.vmem [resolvable:$true] %s1357_s25  ;;  %s11126_s3 = int_to_ptr.vmem [resolvable:$true] %s1381_s3 }
 0x155   : > { %s9589_s9 = scalar_lea.hbm %s11986_s5, 6144 }
 0x156   : > { %p9590_p0 = scmp.ne.s32.totalorder %s11986_s5, %s9589_s9  ;;  %p9595_p13 = scmp.lt.u32.totalorder %s9589_s9, %s11986_s5 }
 0x158   : > { %p9591_p1 = pnand %p9590_p0, %p11931_p6 }
 0x15a   : > { %p9592_p8 = pneg %p9591_p1 }
 0x15c   : > { %p9597_p12 = pnand %p9595_p13, %p9592_p8 }
 0x15e   : > { %9600 = shalt.err (!%p9597_p12)
}
 0x15f   : > { %s9601_s18 = scalar_lea.vmem %s1358_s25, 6144  ;;  %p9608_p5 = scmp.lt.s32.totalorder %s1358_s25, %s1358_s25 }
 0x160   : > { %p9602_p11 = scmp.ne.s32.totalorder %s1358_s25, %s9601_s18  ;;  %p9609_p2 = scmp.lt.s32.totalorder %s9601_s18, %s9601_s18 }
 0x162   : > { %p9603_p10 = pnand %p9602_p11, %p11931_p6  ;;  %p9610_p9 = por %p9609_p2, %p9608_p5 }
 0x164   : > { %p9604_p4 = pneg %p9603_p10 }
 0x166   : > { %p9611_p7 = pnand %p9610_p9, %p9604_p4 }
 0x168   : > { %9614 = shalt.err (!%p9611_p7)
}
 0x169   : > { %8951 = dma.hbm_to_vmem [thread:$0]  (%p11931_p6), %s11986_s5, 6144, %s1358_s25, [#allocation34], %s11910_s26, %s11910_s26, %s11912_s30  }
 0x16a   : > { %s9615_s12 = scalar_lea.hbm %s11984_s8, 2048 }
 0x16b   : > { %p9616_p0 = scmp.ne.s32.totalorder %s11984_s8, %s9615_s12  ;;  %p9621_p13 = scmp.lt.u32.totalorder %s9615_s12, %s11984_s8 }
 0x16d   : > { %p9617_p1 = pnand %p9616_p0, %p11931_p6 }
 0x16f   : > { %p9618_p8 = pneg %p9617_p1 }
 0x171   : > { %p9623_p12 = pnand %p9621_p13, %p9618_p8 }
 0x173   : > { %9626 = shalt.err (!%p9623_p12)
}
 0x174   : > { %s9627_s11 = scalar_lea.vmem %s11126_s3, 2048  ;;  %p9634_p5 = scmp.lt.s32.totalorder %s11126_s3, %s11126_s3 }
 0x175   : > { %p9628_p11 = scmp.ne.s32.totalorder %s11126_s3, %s9627_s11  ;;  %p9635_p2 = scmp.lt.s32.totalorder %s9627_s11, %s9627_s11 }
 0x177   : > { %p9629_p10 = pnand %p9628_p11, %p11931_p6  ;;  %p9636_p9 = por %p9635_p2, %p9634_p5 }
 0x179   : > { %p9630_p4 = pneg %p9629_p10 }
 0x17b   : > { %p9637_p7 = pnand %p9636_p9, %p9630_p4 }
 0x17d   : > { %9640 = shalt.err (!%p9637_p7)
}
 0x17e   : > { %8955 = dma.hbm_to_vmem [thread:$0]  (%p11931_p6), %s11984_s8, 2048, %s11126_s3, [#allocation37], %s11910_s26, %s11910_s26, %s11912_s30  }
 0x17f   : > { %s10576_s25 = smov [#allocation39]   ;;  %s10577_s9 = smov [#allocation42]  }
 0x180   : > { %s1405_s10 = sshll.u32 %s10576_s25, 4  ;;  %s1429_s18 = sshll.u32 %s10577_s9, 4  ;;  %s1406_s10 = int_to_ptr.vmem [resolvable:$true] %s1405_s10  ;;  %s11159_s18 = int_to_ptr.vmem [resolvable:$true] %s1429_s18 }
 0x181   : > { %s9641_s12 = scalar_lea.hbm %s10751_s27, 2048 }
 0x182   : > { %p9642_p0 = scmp.ne.s32.totalorder %s10751_s27, %s9641_s12  ;;  %p9647_p13 = scmp.lt.u32.totalorder %s9641_s12, %s10751_s27 }
 0x184   : > { %p9643_p1 = pnand %p9642_p0, %p11931_p6 }
 0x186   : > { %p9644_p8 = pneg %p9643_p1 }
 0x188   : > { %p9649_p12 = pnand %p9647_p13, %p9644_p8 }
 0x18a   : > { %9652 = shalt.err (!%p9649_p12)
}
 0x18b   : > { %s9653_s11 = scalar_lea.vmem %s1406_s10, 2048  ;;  %p9660_p5 = scmp.lt.s32.totalorder %s1406_s10, %s1406_s10 }
 0x18c   : > { %p9654_p11 = scmp.ne.s32.totalorder %s1406_s10, %s9653_s11  ;;  %p9661_p2 = scmp.lt.s32.totalorder %s9653_s11, %s9653_s11 }
 0x18e   : > { %p9655_p10 = pnand %p9654_p11, %p11931_p6  ;;  %p9662_p9 = por %p9661_p2, %p9660_p5 }
 0x190   : > { %p9656_p4 = pneg %p9655_p10 }
 0x192   : > { %p9663_p7 = pnand %p9662_p9, %p9656_p4 }
 0x194   : > { %9666 = shalt.err (!%p9663_p7)
}
 0x195   : > { %s12010_s3 = sld [smem:[#allocation105_spill]] }
 0x196   : > { %8959 = dma.hbm_to_vmem [thread:$0]  (%p11931_p6), %s10751_s27, 2048, %s1406_s10, [#allocation40], %s11910_s26, %s11910_s26, %s11912_s30  }
 0x19b   : > { %s9667_s25 = scalar_lea.hbm %s12010_s3, 2048 }
 0x19c   : > { %p9668_p0 = scmp.ne.s32.totalorder %s12010_s3, %s9667_s25  ;;  %p9673_p13 = scmp.lt.u32.totalorder %s9667_s25, %s12010_s3 }
 0x19e   : > { %p9669_p1 = pnand %p9668_p0, %p11931_p6 }
 0x1a0   : > { %p9670_p8 = pneg %p9669_p1 }
 0x1a2   : > { %p9675_p12 = pnand %p9673_p13, %p9670_p8 }
 0x1a4   : > { %9678 = shalt.err (!%p9675_p12)
}
 0x1a5   : > { %s9679_s9 = scalar_lea.vmem %s11159_s18, 2048  ;;  %p9686_p5 = scmp.lt.s32.totalorder %s11159_s18, %s11159_s18 }
 0x1a6   : > { %p9680_p11 = scmp.ne.s32.totalorder %s11159_s18, %s9679_s9  ;;  %p9687_p2 = scmp.lt.s32.totalorder %s9679_s9, %s9679_s9 }
 0x1a8   : > { %p9681_p10 = pnand %p9680_p11, %p11931_p6  ;;  %p9688_p9 = por %p9687_p2, %p9686_p5 }
 0x1aa   : > { %p9682_p4 = pneg %p9681_p10 }
 0x1ac   : > { %p9689_p7 = pnand %p9688_p9, %p9682_p4 }
 0x1ae   : > { %9692 = shalt.err (!%p9689_p7)
}
 0x1af   : > { %s12011_s10 = sld [smem:[#allocation107_spill]]  ;;  %s10578_s11 = smov [#allocation45]  }
 0x1b0   : > { %8963 = dma.hbm_to_vmem [thread:$0]  (%p11931_p6), %s12010_s3, 2048, %s11159_s18, [#allocation43], %s11910_s26, %s11910_s26, %s11912_s30  }
 0x1b1   : > { %s1453_s25 = sshll.u32 %s10578_s11, 4  ;;  %s10579_s4 = smov [#allocation48]   ;;  %s1454_s25 = int_to_ptr.vmem [resolvable:$true] %s1453_s25 }
 0x1b2   : > { %s1477_s5 = sshll.u32 %s10579_s4, 4  ;;  %s11192_s5 = int_to_ptr.vmem [resolvable:$true] %s1477_s5 }
 0x1b5   : > { %s12012_s12 = smov %s12011_s10  ;;  %s9693_s9 = scalar_lea.hbm %s12011_s10, 8192 }
 0x1b6   : > { %p9694_p0 = scmp.ne.s32.totalorder %s12012_s12, %s9693_s9  ;;  %p9699_p13 = scmp.lt.u32.totalorder %s9693_s9, %s12012_s12 }
 0x1b8   : > { %p9695_p1 = pnand %p9694_p0, %p11931_p6 }
 0x1ba   : > { %p9696_p8 = pneg %p9695_p1 }
 0x1bc   : > { %p9701_p12 = pnand %p9699_p13, %p9696_p8 }
 0x1be   : > { %9704 = shalt.err (!%p9701_p12)
}
 0x1bf   : > { %s9705_s6 = scalar_lea.vmem %s1454_s25, 8192  ;;  %p9712_p5 = scmp.lt.s32.totalorder %s1454_s25, %s1454_s25 }
 0x1c0   : > { %p9706_p11 = scmp.ne.s32.totalorder %s1454_s25, %s9705_s6  ;;  %p9713_p2 = scmp.lt.s32.totalorder %s9705_s6, %s9705_s6 }
 0x1c2   : > { %p9707_p10 = pnand %p9706_p11, %p11931_p6  ;;  %p9714_p9 = por %p9713_p2, %p9712_p5 }
 0x1c4   : > { %p9708_p4 = pneg %p9707_p10 }
 0x1c6   : > { %p9715_p7 = pnand %p9714_p9, %p9708_p4 }
 0x1c8   : > { %9718 = shalt.err (!%p9715_p7)
}
 0x1c9   : > { %s12013_s4 = sld [smem:[#allocation109_spill]] }
 0x1ca   : > { %8967 = dma.hbm_to_vmem [thread:$0]  (%p11931_p6), %s12012_s12, 8192, %s1454_s25, [#allocation46], %s11910_s26, %s11910_s26, %s11912_s30  }
 0x1cf   : > { %s9719_s18 = scalar_lea.hbm %s12013_s4, 2048 }
 0x1d0   : > { %p9720_p0 = scmp.ne.s32.totalorder %s12013_s4, %s9719_s18  ;;  %p9725_p13 = scmp.lt.u32.totalorder %s9719_s18, %s12013_s4 }
 0x1d2   : > { %p9721_p1 = pnand %p9720_p0, %p11931_p6 }
 0x1d4   : > { %p9722_p8 = pneg %p9721_p1 }
 0x1d6   : > { %p9727_p12 = pnand %p9725_p13, %p9722_p8 }
 0x1d8   : > { %9730 = shalt.err (!%p9727_p12)
}
 0x1d9   : > { %s9731_s6 = scalar_lea.vmem %s11192_s5, 2048  ;;  %p9738_p5 = scmp.lt.s32.totalorder %s11192_s5, %s11192_s5 }
 0x1da   : > { %p9732_p11 = scmp.ne.s32.totalorder %s11192_s5, %s9731_s6  ;;  %p9739_p2 = scmp.lt.s32.totalorder %s9731_s6, %s9731_s6 }
 0x1dc   : > { %p9733_p10 = pnand %p9732_p11, %p11931_p6  ;;  %p9740_p9 = por %p9739_p2, %p9738_p5 }
 0x1de   : > { %p9734_p4 = pneg %p9733_p10 }
 0x1e0   : > { %p9741_p7 = pnand %p9740_p9, %p9734_p4 }
 0x1e2   : > { %9744 = shalt.err (!%p9741_p7)
}
 0x1e3   : > { %s12014_s10 = sld [smem:[#allocation113_spill]]  ;;  %s10580_s11 = smov [#allocation51]  }
 0x1e4   : > { %8971 = dma.hbm_to_vmem [thread:$0]  (%p11931_p6), %s12013_s4, 2048, %s11192_s5, [#allocation49], %s11910_s26, %s11910_s26, %s11912_s30  }
 0x1e5   : > { %s1507_s9 = sshll.u32 %s10580_s11, 4  ;;  %s10581_s18 = smov [#allocation54]   ;;  %s1508_s9 = int_to_ptr.vmem [resolvable:$true] %s1507_s9 }
 0x1e6   : > { %s1539_s3 = sshll.u32 %s10581_s18, 4  ;;  %s11225_s3 = int_to_ptr.vmem [resolvable:$true] %s1539_s3 }
 0x1e9   : > { %s12015_s25 = smov %s12014_s10  ;;  %s9745_s6 = scalar_lea.hbm %s12014_s10, 2048 }
 0x1ea   : > { %p9746_p0 = scmp.ne.s32.totalorder %s12015_s25, %s9745_s6  ;;  %p9751_p13 = scmp.lt.u32.totalorder %s9745_s6, %s12015_s25 }
 0x1ec   : > { %p9747_p1 = pnand %p9746_p0, %p11931_p6 }
 0x1ee   : > { %p9748_p8 = pneg %p9747_p1 }
 0x1f0   : > { %p9753_p12 = pnand %p9751_p13, %p9748_p8 }
 0x1f2   : > { %9756 = shalt.err (!%p9753_p12)
}
 0x1f3   : > { %s9757_s8 = scalar_lea.vmem %s1508_s9, 2048  ;;  %p9764_p5 = scmp.lt.s32.totalorder %s1508_s9, %s1508_s9 }
 0x1f4   : > { %p9758_p11 = scmp.ne.s32.totalorder %s1508_s9, %s9757_s8  ;;  %p9765_p2 = scmp.lt.s32.totalorder %s9757_s8, %s9757_s8 }
 0x1f6   : > { %p9759_p10 = pnand %p9758_p11, %p11931_p6  ;;  %p9766_p9 = por %p9765_p2, %p9764_p5 }
 0x1f8   : > { %p9760_p4 = pneg %p9759_p10 }
 0x1fa   : > { %p9767_p7 = pnand %p9766_p9, %p9760_p4 }
 0x1fc   : > { %9770 = shalt.err (!%p9767_p7)
}
 0x1fd   : > { %s12016_s5 = sld [smem:[#allocation117_spill]] }
 0x1fe   : > { %8975 = dma.hbm_to_vmem [thread:$0]  (%p11931_p6), %s12015_s25, 2048, %s1508_s9, [#allocation52], %s11910_s26, %s11910_s26, %s11912_s30  }
 0x203   : > { %s9771_s10 = scalar_lea.hbm %s12016_s5, 2048 }
 0x204   : > { %p9772_p0 = scmp.ne.s32.totalorder %s12016_s5, %s9771_s10  ;;  %p9777_p13 = scmp.lt.u32.totalorder %s9771_s10, %s12016_s5 }
 0x206   : > { %p9773_p1 = pnand %p9772_p0, %p11931_p6 }
 0x208   : > { %p9774_p8 = pneg %p9773_p1 }
 0x20a   : > { %p9779_p12 = pnand %p9777_p13, %p9774_p8 }
 0x20c   : > { %9782 = shalt.err (!%p9779_p12)
}
 0x20d   : > { %s9783_s8 = scalar_lea.vmem %s11225_s3, 2048  ;;  %p9790_p5 = scmp.lt.s32.totalorder %s11225_s3, %s11225_s3 }
 0x20e   : > { %p9784_p11 = scmp.ne.s32.totalorder %s11225_s3, %s9783_s8  ;;  %p9791_p2 = scmp.lt.s32.totalorder %s9783_s8, %s9783_s8 }
 0x210   : > { %p9785_p10 = pnand %p9784_p11, %p11931_p6  ;;  %p9792_p9 = por %p9791_p2, %p9790_p5 }
 0x212   : > { %p9786_p4 = pneg %p9785_p10 }
 0x214   : > { %p9793_p7 = pnand %p9792_p9, %p9786_p4 }
 0x216   : > { %9796 = shalt.err (!%p9793_p7)
}
 0x217   : > { %s12017_s11 = sld [smem:[#allocation81_spill]]  ;;  %s10582_s18 = smov [#allocation8]  }
 0x218   : > { %8979 = dma.hbm_to_vmem [thread:$0]  (%p11931_p6), %s12016_s5, 2048, %s11225_s3, [#allocation55], %s11910_s26, %s11910_s26, %s11912_s30  }
 0x219   : > { %s1141_s6 = sshll.u32 %s10582_s18, 4  ;;  %s10583_s10 = smov [#allocation11]   ;;  %s1142_s6 = int_to_ptr.vmem [resolvable:$true] %s1141_s6 }
 0x21a   : > { %s1173_s8 = sshll.u32 %s10583_s10, 4  ;;  %s1174_s8 = int_to_ptr.vmem [resolvable:$true] %s1173_s8 }
 0x21d   : > { %s12018_s9 = smov %s12017_s11  ;;  %s9797_s4 = scalar_lea.hbm %s12017_s11, 2048 }
 0x21e   : > { %p9798_p0 = scmp.ne.s32.totalorder %s12018_s9, %s9797_s4  ;;  %p9803_p13 = scmp.lt.u32.totalorder %s9797_s4, %s12018_s9 }
 0x220   : > { %p9799_p1 = pnand %p9798_p0, %p11931_p6 }
 0x222   : > { %p9800_p8 = pneg %p9799_p1 }
 0x224   : > { %p9805_p12 = pnand %p9803_p13, %p9800_p8 }
 0x226   : > { %9808 = shalt.err (!%p9805_p12)
}
 0x227   : > { %s9809_s12 = scalar_lea.vmem %s1142_s6, 2048  ;;  %p9816_p5 = scmp.lt.s32.totalorder %s1142_s6, %s1142_s6 }
 0x228   : > { %p9810_p11 = scmp.ne.s32.totalorder %s1142_s6, %s9809_s12  ;;  %p9817_p2 = scmp.lt.s32.totalorder %s9809_s12, %s9809_s12 }
 0x22a   : > { %p9811_p10 = pnand %p9810_p11, %p11931_p6  ;;  %p9818_p9 = por %p9817_p2, %p9816_p5 }
 0x22c   : > { %p9812_p4 = pneg %p9811_p10 }
 0x22e   : > { %p9819_p7 = pnand %p9818_p9, %p9812_p4 }
 0x230   : > { %9822 = shalt.err (!%p9819_p7)
}
 0x231   : > { %s12019_s3 = sld [smem:[#allocation85_spill]] }
 0x232   : > { %8917 = dma.hbm_to_vmem [thread:$0]  (%p11931_p6), %s12018_s9, 2048, %s1142_s6, [#allocation7], %s11910_s26, %s11910_s26, %s11912_s30  }
 0x237   : > { %s9823_s4 = scalar_lea.hbm %s12019_s3, 2048 }
 0x238   : > { %p9824_p0 = scmp.ne.s32.totalorder %s12019_s3, %s9823_s4  ;;  %p9829_p13 = scmp.lt.u32.totalorder %s9823_s4, %s12019_s3 }
 0x23a   : > { %p9825_p1 = pnand %p9824_p0, %p11931_p6 }
 0x23c   : > { %p9826_p8 = pneg %p9825_p1 }
 0x23e   : > { %p9831_p12 = pnand %p9829_p13, %p9826_p8 }
 0x240   : > { %9834 = shalt.err (!%p9831_p12)
}
 0x241   : > { %s9835_s12 = scalar_lea.vmem %s1174_s8, 2048  ;;  %p9842_p5 = scmp.lt.s32.totalorder %s1174_s8, %s1174_s8 }
 0x242   : > { %p9836_p11 = scmp.ne.s32.totalorder %s1174_s8, %s9835_s12  ;;  %p9843_p2 = scmp.lt.s32.totalorder %s9835_s12, %s9835_s12 }
 0x244   : > { %p9837_p10 = pnand %p9836_p11, %p11931_p6  ;;  %p9844_p9 = por %p9843_p2, %p9842_p5 }
 0x246   : > { %p9838_p4 = pneg %p9837_p10 }
 0x248   : > { %p9845_p7 = pnand %p9844_p9, %p9838_p4 }
 0x24a   : > { %9848 = shalt.err (!%p9845_p7)
}
 0x24b   : > { %s12020_s11 = sld [smem:[#allocation88_spill]]  ;;  %s10584_s18 = smov [#allocation14]  }
 0x24c   : > { %8921 = dma.hbm_to_vmem [thread:$0]  (%p11931_p6), %s12019_s3, 2048, %s1174_s8, [#allocation10], %s11910_s26, %s11910_s26, %s11912_s30  }
 0x24d   : > { %s1203_s10 = sshll.u32 %s10584_s18, 4  ;;  %s10585_s4 = smov [#allocation17]   ;;  %s1204_s10 = int_to_ptr.vmem [resolvable:$true] %s1203_s10 }
 0x24e   : > { %s1227_s5 = sshll.u32 %s10585_s4, 4  ;;  %s1228_s5 = int_to_ptr.vmem [resolvable:$true] %s1227_s5 }
 0x251   : > { %s12021_s6 = smov %s12020_s11  ;;  %s9849_s12 = scalar_lea.hbm %s12020_s11, 16 }
 0x252   : > { %p9850_p0 = scmp.ne.s32.totalorder %s12021_s6, %s9849_s12  ;;  %p9855_p13 = scmp.lt.u32.totalorder %s9849_s12, %s12021_s6 }
 0x254   : > { %p9851_p1 = pnand %p9850_p0, %p11931_p6 }
 0x256   : > { %p9852_p8 = pneg %p9851_p1 }
 0x258   : > { %p9857_p12 = pnand %p9855_p13, %p9852_p8 }
 0x25a   : > { %9860 = shalt.err (!%p9857_p12)
}
 0x25b   : > { %s9861_s9 = scalar_lea.vmem %s1204_s10, 16  ;;  %s9867_s8 = scalar_lea.vmem %s1204_s10, 32 }
 0x25c   : > { %p9862_p11 = scmp.ne.s32.totalorder %s1204_s10, %s9861_s9  ;;  %p9868_p5 = scmp.lt.s32.totalorder %s1204_s10, %s1204_s10 }
 0x25d   : > { %p9869_p2 = scmp.lt.s32.totalorder %s9867_s8, %s9861_s9 }
 0x25e   : > { %p9863_p10 = pnand %p9862_p11, %p11931_p6 }
 0x25f   : > { %p9870_p9 = por %p9869_p2, %p9868_p5 }
 0x260   : > { %p9864_p4 = pneg %p9863_p10 }
 0x262   : > { %p9871_p7 = pnand %p9870_p9, %p9864_p4 }
 0x264   : > { %9874 = shalt.err (!%p9871_p7)
}
 0x265   : > { %s12022_s11 = sld [smem:[#allocation90_spill]] }
 0x266   : > { %8925 = dma.hbm_to_vmem [thread:$0]  (%p11931_p6), %s12021_s6, 16, %s1204_s10, [#allocation13]  }
 0x26b   : > { %s12023_s4 = smov %s12022_s11  ;;  %s9875_s18 = scalar_lea.hbm %s12022_s11, 16 }
 0x26c   : > { %p9876_p0 = scmp.ne.s32.totalorder %s12023_s4, %s9875_s18  ;;  %p9881_p13 = scmp.lt.u32.totalorder %s9875_s18, %s12023_s4 }
 0x26e   : > { %p9877_p1 = pnand %p9876_p0, %p11931_p6 }
 0x270   : > { %p9878_p8 = pneg %p9877_p1 }
 0x272   : > { %p9883_p12 = pnand %p9881_p13, %p9878_p8 }
 0x274   : > { %9886 = shalt.err (!%p9883_p12)
}
 0x275   : > { %s9887_s9 = scalar_lea.vmem %s1228_s5, 16  ;;  %s9893_s12 = scalar_lea.vmem %s1228_s5, 32 }
 0x276   : > { %p9888_p11 = scmp.ne.s32.totalorder %s1228_s5, %s9887_s9  ;;  %p9894_p5 = scmp.lt.s32.totalorder %s1228_s5, %s1228_s5 }
 0x277   : > { %p9895_p2 = scmp.lt.s32.totalorder %s9893_s12, %s9887_s9 }
 0x278   : > { %p9889_p10 = pnand %p9888_p11, %p11931_p6 }
 0x279   : > { %p9896_p9 = por %p9895_p2, %p9894_p5 }
 0x27a   : > { %p9890_p4 = pneg %p9889_p10 }
 0x27c   : > { %p9897_p7 = pnand %p9896_p9, %p9890_p4 }
 0x27e   : > { %9900 = shalt.err (!%p9897_p7)
}
 0x27f   : > { %s12024_s10 = sld [smem:[#allocation92_spill]]  ;;  %s10586_s11 = smov [#allocation20]  }
 0x280   : > { %8929 = dma.hbm_to_vmem [thread:$0]  (%p11931_p6), %s12023_s4, 16, %s1228_s5, [#allocation16]  }
 0x281   : > { %s1251_s18 = sshll.u32 %s10586_s11, 4  ;;  %s10587_s26 = smov [#allocation23]   ;;  %s1252_s18 = int_to_ptr.vmem [resolvable:$true] %s1251_s18 }
 0x282   : > { %s1275_s30 = sshll.u32 %s10587_s26, 4  ;;  %s1276_s30 = int_to_ptr.vmem [resolvable:$true] %s1275_s30 }
 0x285   : > { %s12025_s8 = smov %s12024_s10  ;;  %s9901_s3 = scalar_lea.hbm %s12024_s10, 16 }
 0x286   : > { %p9902_p0 = scmp.ne.s32.totalorder %s12025_s8, %s9901_s3  ;;  %p9907_p13 = scmp.lt.u32.totalorder %s9901_s3, %s12025_s8 }
 0x288   : > { %p9903_p1 = pnand %p9902_p0, %p11931_p6 }
 0x28a   : > { %p9904_p8 = pneg %p9903_p1 }
 0x28c   : > { %p9909_p12 = pnand %p9907_p13, %p9904_p8 }
 0x28e   : > { %9912 = shalt.err (!%p9909_p12)
}
 0x28f   : > { %s9913_s9 = scalar_lea.vmem %s1252_s18, 16  ;;  %s9919_s5 = scalar_lea.vmem %s1252_s18, 32 }
 0x290   : > { %p9914_p11 = scmp.ne.s32.totalorder %s1252_s18, %s9913_s9  ;;  %p9920_p5 = scmp.lt.s32.totalorder %s1252_s18, %s1252_s18 }
 0x291   : > { %p9921_p2 = scmp.lt.s32.totalorder %s9919_s5, %s9913_s9 }
 0x292   : > { %p9915_p10 = pnand %p9914_p11, %p11931_p6 }
 0x293   : > { %p9922_p9 = por %p9921_p2, %p9920_p5 }
 0x294   : > { %p9916_p4 = pneg %p9915_p10 }
 0x296   : > { %p9923_p7 = pnand %p9922_p9, %p9916_p4 }
 0x298   : > { %9926 = shalt.err (!%p9923_p7)
}
 0x299   : > { %s12026_s26 = sld [smem:[#allocation94_spill]] }
 0x29a   : > { %8933 = dma.hbm_to_vmem [thread:$0]  (%p11931_p6), %s12025_s8, 16, %s1252_s18, [#allocation19]  }
 0x29f   : > { %s12027_s12 = smov %s12026_s26  ;;  %s9927_s3 = scalar_lea.hbm %s12026_s26, 16 }
 0x2a0   : > { %p9928_p0 = scmp.ne.s32.totalorder %s12027_s12, %s9927_s3  ;;  %p9933_p13 = scmp.lt.u32.totalorder %s9927_s3, %s12027_s12 }
 0x2a2   : > { %p9929_p1 = pnand %p9928_p0, %p11931_p6 }
 0x2a4   : > { %p9930_p8 = pneg %p9929_p1 }
 0x2a6   : > { %p9935_p12 = pnand %p9933_p13, %p9930_p8 }
 0x2a8   : > { %9938 = shalt.err (!%p9935_p12)
}
 0x2a9   : > { %s9939_s10 = scalar_lea.vmem %s1276_s30, 16  ;;  %s9945_s11 = scalar_lea.vmem %s1276_s30, 32 }
 0x2aa   : > { %p9940_p11 = scmp.ne.s32.totalorder %s1276_s30, %s9939_s10  ;;  %p9946_p5 = scmp.lt.s32.totalorder %s1276_s30, %s1276_s30 }
 0x2ab   : > { %p9947_p2 = scmp.lt.s32.totalorder %s9945_s11, %s9939_s10 }
 0x2ac   : > { %p9941_p10 = pnand %p9940_p11, %p11931_p6 }
 0x2ad   : > { %p9948_p9 = por %p9947_p2, %p9946_p5 }
 0x2ae   : > { %p9942_p4 = pneg %p9941_p10 }
 0x2b0   : > { %p9949_p7 = pnand %p9948_p9, %p9942_p4 }
 0x2b2   : > { %9952 = shalt.err (!%p9949_p7)
}
 0x2b3   : > { %s12028_s18 = sld [smem:[#allocation96_spill]]  ;;  %s10588_s5 = smov [#allocation26]  }
 0x2b4   : > { %8937 = dma.hbm_to_vmem [thread:$0]  (%p11931_p6), %s12027_s12, 16, %s1276_s30, [#allocation22]  }
 0x2b5   : > { %s1299_s26 = sshll.u32 %s10588_s5, 4  ;;  %s10589_s3 = smov [#allocation29]   ;;  %s1300_s26 = int_to_ptr.vmem [resolvable:$true] %s1299_s26 }
 0x2b6   : > { %s1323_s4 = sshll.u32 %s10589_s3, 4  ;;  %s1324_s4 = int_to_ptr.vmem [resolvable:$true] %s1323_s4 }
 0x2b9   : > { %s12029_s9 = smov %s12028_s18  ;;  %s9953_s6 = scalar_lea.hbm %s12028_s18, 16 }
 0x2ba   : > { %p9954_p0 = scmp.ne.s32.totalorder %s12029_s9, %s9953_s6  ;;  %p9959_p13 = scmp.lt.u32.totalorder %s9953_s6, %s12029_s9 }
 0x2bc   : > { %p9955_p1 = pnand %p9954_p0, %p11931_p6 }
 0x2be   : > { %p9956_p8 = pneg %p9955_p1 }
 0x2c0   : > { %p9961_p12 = pnand %p9959_p13, %p9956_p8 }
 0x2c2   : > { %9964 = shalt.err (!%p9961_p12)
}
 0x2c3   : > { %s9965_s10 = scalar_lea.vmem %s1300_s26, 16  ;;  %s9971_s30 = scalar_lea.vmem %s1300_s26, 32 }
 0x2c4   : > { %p9966_p11 = scmp.ne.s32.totalorder %s1300_s26, %s9965_s10  ;;  %p9972_p5 = scmp.lt.s32.totalorder %s1300_s26, %s1300_s26 }
 0x2c5   : > { %p9973_p2 = scmp.lt.s32.totalorder %s9971_s30, %s9965_s10 }
 0x2c6   : > { %p9967_p10 = pnand %p9966_p11, %p11931_p6 }
 0x2c7   : > { %p9974_p9 = por %p9973_p2, %p9972_p5 }
 0x2c8   : > { %p9968_p4 = pneg %p9967_p10 }
 0x2ca   : > { %p9975_p7 = pnand %p9974_p9, %p9968_p4 }
 0x2cc   : > { %9978 = shalt.err (!%p9975_p7)
}
 0x2cd   : > { %s12030_s11 = sld [smem:[#allocation97_spill]] }
 0x2ce   : > { %8941 = dma.hbm_to_vmem [thread:$0]  (%p11931_p6), %s12029_s9, 16, %s1300_s26, [#allocation25]  }
 0x2d3   : > { %s12031_s5 = smov %s12030_s11  ;;  %s9979_s6 = scalar_lea.hbm %s12030_s11, 16 }
 0x2d4   : > { %p9980_p0 = scmp.ne.s32.totalorder %s12031_s5, %s9979_s6  ;;  %p9985_p13 = scmp.lt.u32.totalorder %s9979_s6, %s12031_s5 }
 0x2d6   : > { %p9981_p1 = pnand %p9980_p0, %p11931_p6 }
 0x2d8   : > { %p9982_p8 = pneg %p9981_p1 }
 0x2da   : > { %p9987_p12 = pnand %p9985_p13, %p9982_p8 }
 0x2dc   : > { %9990 = shalt.err (!%p9987_p12)
}
 0x2dd   : > { %s9991_s18 = scalar_lea.vmem %s1324_s4, 16  ;;  %s9997_s3 = scalar_lea.vmem %s1324_s4, 32 }
 0x2de   : > { %p9992_p11 = scmp.ne.s32.totalorder %s1324_s4, %s9991_s18  ;;  %p9998_p5 = scmp.lt.s32.totalorder %s1324_s4, %s1324_s4 }
 0x2df   : > { %p9999_p2 = scmp.lt.s32.totalorder %s9997_s3, %s9991_s18 }
 0x2e0   : > { %p9993_p10 = pnand %p9992_p11, %p11931_p6 }
 0x2e1   : > { %p10000_p9 = por %p9999_p2, %p9998_p5 }
 0x2e2   : > { %p9994_p4 = pneg %p9993_p10 }
 0x2e4   : > { %p10001_p7 = pnand %p10000_p9, %p9994_p4 }
 0x2e6   : > { %10004 = shalt.err (!%p10001_p7)
}
 0x2e7   : > { %s12032_s26 = sld [smem:[#allocation99_spill]]  ;;  %s10590_s10 = smov [#allocation32]  }
 0x2e8   : > { %8945 = dma.hbm_to_vmem [thread:$0]  (%p11931_p6), %s12031_s5, 16, %s1324_s4, [#allocation28]  }
 0x2e9   : > { %s1347_s11 = sshll.u32 %s10590_s10, 4  ;;  %s10591_s6 = smov [#allocation35]   ;;  %s1348_s11 = int_to_ptr.vmem [resolvable:$true] %s1347_s11 }
 0x2ea   : > { %s1371_s8 = sshll.u32 %s10591_s6, 4  ;;  %s1372_s8 = int_to_ptr.vmem [resolvable:$true] %s1371_s8 }
 0x2ed   : > { %s12033_s30 = smov %s12032_s26  ;;  %s10005_s9 = scalar_lea.hbm %s12032_s26, 16 }
 0x2ee   : > { %p10006_p0 = scmp.ne.s32.totalorder %s12033_s30, %s10005_s9  ;;  %p10011_p13 = scmp.lt.u32.totalorder %s10005_s9, %s12033_s30 }
 0x2f0   : > { %p10007_p1 = pnand %p10006_p0, %p11931_p6 }
 0x2f2   : > { %p10008_p8 = pneg %p10007_p1 }
 0x2f4   : > { %p10013_p12 = pnand %p10011_p13, %p10008_p8 }
 0x2f6   : > { %10016 = shalt.err (!%p10013_p12)
}
 0x2f7   : > { %s10017_s18 = scalar_lea.vmem %s1348_s11, 16  ;;  %s10023_s4 = scalar_lea.vmem %s1348_s11, 32 }
 0x2f8   : > { %p10018_p11 = scmp.ne.s32.totalorder %s1348_s11, %s10017_s18  ;;  %p10024_p5 = scmp.lt.s32.totalorder %s1348_s11, %s1348_s11 }
 0x2f9   : > { %p10025_p2 = scmp.lt.s32.totalorder %s10023_s4, %s10017_s18 }
 0x2fa   : > { %p10019_p10 = pnand %p10018_p11, %p11931_p6 }
 0x2fb   : > { %p10026_p9 = por %p10025_p2, %p10024_p5 }
 0x2fc   : > { %p10020_p4 = pneg %p10019_p10 }
 0x2fe   : > { %p10027_p7 = pnand %p10026_p9, %p10020_p4 }
 0x300   : > { %10030 = shalt.err (!%p10027_p7)
}
 0x301   : > { %s12034_s3 = sld [smem:[#allocation101_spill]] }
 0x302   : > { %8949 = dma.hbm_to_vmem [thread:$0]  (%p11931_p6), %s12033_s30, 16, %s1348_s11, [#allocation31]  }
 0x307   : > { %s10031_s9 = scalar_lea.hbm %s12034_s3, 16 }
 0x308   : > { %p10032_p0 = scmp.ne.s32.totalorder %s12034_s3, %s10031_s9  ;;  %p10037_p13 = scmp.lt.u32.totalorder %s10031_s9, %s12034_s3 }
 0x30a   : > { %p10033_p1 = pnand %p10032_p0, %p11931_p6 }
 0x30c   : > { %p10034_p8 = pneg %p10033_p1 }
 0x30e   : > { %p10039_p12 = pnand %p10037_p13, %p10034_p8 }
 0x310   : > { %10042 = shalt.err (!%p10039_p12)
}
 0x311   : > { %s10043_s26 = scalar_lea.vmem %s1372_s8, 16  ;;  %s10049_s10 = scalar_lea.vmem %s1372_s8, 32 }
 0x312   : > { %p10044_p11 = scmp.ne.s32.totalorder %s1372_s8, %s10043_s26  ;;  %p10050_p5 = scmp.lt.s32.totalorder %s1372_s8, %s1372_s8 }
 0x313   : > { %p10051_p2 = scmp.lt.s32.totalorder %s10049_s10, %s10043_s26 }
 0x314   : > { %p10045_p10 = pnand %p10044_p11, %p11931_p6 }
 0x315   : > { %p10052_p9 = por %p10051_p2, %p10050_p5 }
 0x316   : > { %p10046_p4 = pneg %p10045_p10 }
 0x318   : > { %p10053_p7 = pnand %p10052_p9, %p10046_p4 }
 0x31a   : > { %10056 = shalt.err (!%p10053_p7)
}
 0x31b   : > { %s12035_s11 = sld [smem:[#allocation103_spill]]  ;;  %s10592_s18 = smov [#allocation38]  }
 0x31c   : > { %8953 = dma.hbm_to_vmem [thread:$0]  (%p11931_p6), %s12034_s3, 16, %s1372_s8, [#allocation34]  }
 0x31d   : > { %s1395_s4 = sshll.u32 %s10592_s18, 4  ;;  %s10593_s9 = smov [#allocation41]   ;;  %s1396_s4 = int_to_ptr.vmem [resolvable:$true] %s1395_s4 }
 0x31e   : > { %s1419_s5 = sshll.u32 %s10593_s9, 4  ;;  %s1420_s5 = int_to_ptr.vmem [resolvable:$true] %s1419_s5 }
 0x321   : > { %s12036_s6 = smov %s12035_s11  ;;  %s10057_s12 = scalar_lea.hbm %s12035_s11, 16 }
 0x322   : > { %p10058_p0 = scmp.ne.s32.totalorder %s12036_s6, %s10057_s12  ;;  %p10063_p13 = scmp.lt.u32.totalorder %s10057_s12, %s12036_s6 }
 0x324   : > { %p10059_p1 = pnand %p10058_p0, %p11931_p6 }
 0x326   : > { %p10060_p8 = pneg %p10059_p1 }
 0x328   : > { %p10065_p12 = pnand %p10063_p13, %p10060_p8 }
 0x32a   : > { %10068 = shalt.err (!%p10065_p12)
}
 0x32b   : > { %s10069_s26 = scalar_lea.vmem %s1396_s4, 16  ;;  %s10075_s8 = scalar_lea.vmem %s1396_s4, 32 }
 0x32c   : > { %p10070_p11 = scmp.ne.s32.totalorder %s1396_s4, %s10069_s26  ;;  %p10076_p5 = scmp.lt.s32.totalorder %s1396_s4, %s1396_s4 }
 0x32d   : > { %p10077_p2 = scmp.lt.s32.totalorder %s10075_s8, %s10069_s26 }
 0x32e   : > { %p10071_p10 = pnand %p10070_p11, %p11931_p6 }
 0x32f   : > { %p10078_p9 = por %p10077_p2, %p10076_p5 }
 0x330   : > { %p10072_p4 = pneg %p10071_p10 }
 0x332   : > { %p10079_p7 = pnand %p10078_p9, %p10072_p4 }
 0x334   : > { %10082 = shalt.err (!%p10079_p7)
}
 0x335   : > { %s12037_s10 = sld [smem:[#allocation104_spill]] }
 0x336   : > { %8957 = dma.hbm_to_vmem [thread:$0]  (%p11931_p6), %s12036_s6, 16, %s1396_s4, [#allocation37]  }
 0x33b   : > { %s12038_s9 = smov %s12037_s10  ;;  %s10083_s12 = scalar_lea.hbm %s12037_s10, 16 }
 0x33c   : > { %p10084_p0 = scmp.ne.s32.totalorder %s12038_s9, %s10083_s12  ;;  %p10089_p13 = scmp.lt.u32.totalorder %s10083_s12, %s12038_s9 }
 0x33e   : > { %p10085_p1 = pnand %p10084_p0, %p11931_p6 }
 0x340   : > { %p10086_p8 = pneg %p10085_p1 }
 0x342   : > { %p10091_p12 = pnand %p10089_p13, %p10086_p8 }
 0x344   : > { %10094 = shalt.err (!%p10091_p12)
}
 0x345   : > { %s10095_s11 = scalar_lea.vmem %s1420_s5, 16  ;;  %s10101_s18 = scalar_lea.vmem %s1420_s5, 32 }
 0x346   : > { %p10096_p11 = scmp.ne.s32.totalorder %s1420_s5, %s10095_s11  ;;  %p10102_p5 = scmp.lt.s32.totalorder %s1420_s5, %s1420_s5 }
 0x347   : > { %p10103_p2 = scmp.lt.s32.totalorder %s10101_s18, %s10095_s11 }
 0x348   : > { %p10097_p10 = pnand %p10096_p11, %p11931_p6 }
 0x349   : > { %p10104_p9 = por %p10103_p2, %p10102_p5 }
 0x34a   : > { %p10098_p4 = pneg %p10097_p10 }
 0x34c   : > { %p10105_p7 = pnand %p10104_p9, %p10098_p4 }
 0x34e   : > { %10108 = shalt.err (!%p10105_p7)
}
 0x34f   : > { %s12039_s4 = sld [smem:[#allocation106_spill]]  ;;  %s10594_s26 = smov [#allocation44]  }
 0x350   : > { %8961 = dma.hbm_to_vmem [thread:$0]  (%p11931_p6), %s12038_s9, 16, %s1420_s5, [#allocation40]  }
 0x351   : > { %s1443_s8 = sshll.u32 %s10594_s26, 4  ;;  %s10595_s10 = smov [#allocation47]   ;;  %s1444_s8 = int_to_ptr.vmem [resolvable:$true] %s1443_s8 }
 0x352   : > { %s1467_s12 = sshll.u32 %s10595_s10, 4  ;;  %s1468_s12 = int_to_ptr.vmem [resolvable:$true] %s1467_s12 }
 0x355   : > { %s10109_s3 = scalar_lea.hbm %s12039_s4, 16 }
 0x356   : > { %p10110_p0 = scmp.ne.s32.totalorder %s12039_s4, %s10109_s3  ;;  %p10115_p13 = scmp.lt.u32.totalorder %s10109_s3, %s12039_s4 }
 0x358   : > { %p10111_p1 = pnand %p10110_p0, %p11931_p6 }
 0x35a   : > { %p10112_p8 = pneg %p10111_p1 }
 0x35c   : > { %p10117_p12 = pnand %p10115_p13, %p10112_p8 }
 0x35e   : > { %10120 = shalt.err (!%p10117_p12)
}
 0x35f   : > { %s10121_s11 = scalar_lea.vmem %s1444_s8, 16  ;;  %s10127_s5 = scalar_lea.vmem %s1444_s8, 32 }
 0x360   : > { %p10122_p11 = scmp.ne.s32.totalorder %s1444_s8, %s10121_s11  ;;  %p10128_p5 = scmp.lt.s32.totalorder %s1444_s8, %s1444_s8 }
 0x361   : > { %p10129_p2 = scmp.lt.s32.totalorder %s10127_s5, %s10121_s11 }
 0x362   : > { %p10123_p10 = pnand %p10122_p11, %p11931_p6 }
 0x363   : > { %p10130_p9 = por %p10129_p2, %p10128_p5 }
 0x364   : > { %p10124_p4 = pneg %p10123_p10 }
 0x366   : > { %p10131_p7 = pnand %p10130_p9, %p10124_p4 }
 0x368   : > { %10134 = shalt.err (!%p10131_p7)
}
 0x369   : > { %s12040_s18 = sld [smem:[#allocation108_spill]] }
 0x36a   : > { %8965 = dma.hbm_to_vmem [thread:$0]  (%p11931_p6), %s12039_s4, 16, %s1444_s8, [#allocation43]  }
 0x36f   : > { %s12041_s6 = smov %s12040_s18  ;;  %s10135_s3 = scalar_lea.hbm %s12040_s18, 16 }
 0x370   : > { %p10136_p0 = scmp.ne.s32.totalorder %s12041_s6, %s10135_s3  ;;  %p10141_p13 = scmp.lt.u32.totalorder %s10135_s3, %s12041_s6 }
 0x372   : > { %p10137_p1 = pnand %p10136_p0, %p11931_p6 }
 0x374   : > { %p10138_p8 = pneg %p10137_p1 }
 0x376   : > { %p10143_p12 = pnand %p10141_p13, %p10138_p8 }
 0x378   : > { %10146 = shalt.err (!%p10143_p12)
}
 0x379   : > { %s10147_s26 = scalar_lea.vmem %s1468_s12, 16  ;;  %s10153_s10 = scalar_lea.vmem %s1468_s12, 32 }
 0x37a   : > { %p10148_p11 = scmp.ne.s32.totalorder %s1468_s12, %s10147_s26  ;;  %p10154_p5 = scmp.lt.s32.totalorder %s1468_s12, %s1468_s12 }
 0x37b   : > { %p10155_p2 = scmp.lt.s32.totalorder %s10153_s10, %s10147_s26 }
 0x37c   : > { %p10149_p10 = pnand %p10148_p11, %p11931_p6 }
 0x37d   : > { %p10156_p9 = por %p10155_p2, %p10154_p5 }
 0x37e   : > { %p10150_p4 = pneg %p10149_p10 }
 0x380   : > { %p10157_p7 = pnand %p10156_p9, %p10150_p4 }
 0x382   : > { %10160 = shalt.err (!%p10157_p7)
}
 0x383   : > { %s12042_s8 = sld [smem:[#allocation110_spill]]  ;;  %s10596_s11 = smov [#allocation50]  }
 0x384   : > { %8969 = dma.hbm_to_vmem [thread:$0]  (%p11931_p6), %s12041_s6, 16, %s1468_s12, [#allocation46]  }
 0x385   : > { %s1491_s5 = sshll.u32 %s10596_s11, 4  ;;  %s10597_s18 = smov [#allocation53]   ;;  %s1492_s5 = int_to_ptr.vmem [resolvable:$true] %s1491_s5 }
 0x386   : > { %s1523_s3 = sshll.u32 %s10597_s18, 4  ;;  %s1524_s3 = int_to_ptr.vmem [resolvable:$true] %s1523_s3 }
 0x389   : > { %s10161_s4 = scalar_lea.hbm %s12042_s8, 16 }
 0x38a   : > { %p10162_p0 = scmp.ne.s32.totalorder %s12042_s8, %s10161_s4  ;;  %p10167_p13 = scmp.lt.u32.totalorder %s10161_s4, %s12042_s8 }
 0x38c   : > { %p10163_p1 = pnand %p10162_p0, %p11931_p6 }
 0x38e   : > { %p10164_p8 = pneg %p10163_p1 }
 0x390   : > { %p10169_p12 = pnand %p10167_p13, %p10164_p8 }
 0x392   : > { %10172 = shalt.err (!%p10169_p12)
}
 0x393   : > { %s10173_s26 = scalar_lea.vmem %s1492_s5, 16  ;;  %s10179_s12 = scalar_lea.vmem %s1492_s5, 32 }
 0x394   : > { %p10174_p11 = scmp.ne.s32.totalorder %s1492_s5, %s10173_s26  ;;  %p10180_p5 = scmp.lt.s32.totalorder %s1492_s5, %s1492_s5 }
 0x395   : > { %p10181_p2 = scmp.lt.s32.totalorder %s10179_s12, %s10173_s26 }
 0x396   : > { %p10175_p10 = pnand %p10174_p11, %p11931_p6 }
 0x397   : > { %p10182_p9 = por %p10181_p2, %p10180_p5 }
 0x398   : > { %p10176_p4 = pneg %p10175_p10 }
 0x39a   : > { %p10183_p7 = pnand %p10182_p9, %p10176_p4 }
 0x39c   : > { %10186 = shalt.err (!%p10183_p7)
}
 0x39d   : > { %s12043_s10 = sld [smem:[#allocation115_spill]] }
 0x39e   : > { %8973 = dma.hbm_to_vmem [thread:$0]  (%p11931_p6), %s12042_s8, 16, %s1492_s5, [#allocation49]  }
 0x3a3   : > { %s12044_s6 = smov %s12043_s10  ;;  %s10187_s4 = scalar_lea.hbm %s12043_s10, 10240 }
 0x3a4   : > { %p10188_p0 = scmp.ne.s32.totalorder %s12044_s6, %s10187_s4  ;;  %p10193_p13 = scmp.lt.u32.totalorder %s10187_s4, %s12044_s6 }
 0x3a6   : > { %p10189_p1 = pnand %p10188_p0, %p11931_p6 }
 0x3a8   : > { %p10190_p8 = pneg %p10189_p1 }
 0x3aa   : > { %p10195_p12 = pnand %p10193_p13, %p10190_p8 }
 0x3ac   : > { %10198 = shalt.err (!%p10195_p12)
}
 0x3ad   : > { %s10199_s11 = scalar_lea.vmem %s1524_s3, 10240  ;;  %p10206_p5 = scmp.lt.s32.totalorder %s1524_s3, %s1524_s3 }
 0x3ae   : > { %p10200_p11 = scmp.ne.s32.totalorder %s1524_s3, %s10199_s11  ;;  %p10207_p2 = scmp.lt.s32.totalorder %s10199_s11, %s10199_s11 }
 0x3b0   : > { %p10201_p10 = pnand %p10200_p11, %p11931_p6  ;;  %p10208_p9 = por %p10207_p2, %p10206_p5 }
 0x3b2   : > { %p10202_p4 = pneg %p10201_p10 }
 0x3b4   : > { %p10209_p7 = pnand %p10208_p9, %p10202_p4 }
 0x3b6   : > { %10212 = shalt.err (!%p10209_p7)
}
 0x3b7   : > { %s12045_s5 = smov 8   ;;  %s12046_s18 = smov 128  }
 0x3b8   : > { %s12047_s26 = sld [smem:[#allocation119_spill]]  ;;  %s10598_s10 = smov [#allocation56]  }
 0x3b9   : > { %8977 = dma.hbm_to_vmem [thread:$0]  (%p11931_p6), %s12044_s6, 10240, %s1524_s3, [#allocation52], %s12046_s18, %s12046_s18, %s12045_s5  }
 0x3ba   : > { %s1555_s4 = sshll.u32 %s10598_s10, 4  ;;  %s1556_s4 = int_to_ptr.vmem [resolvable:$true] %s1555_s4 }
 0x3be   : > { %s12048_s12 = smov %s12047_s26  ;;  %s10213_s8 = scalar_lea.hbm %s12047_s26, 2048 }
 0x3bf   : > { %p10214_p0 = scmp.ne.s32.totalorder %s12048_s12, %s10213_s8  ;;  %p10219_p13 = scmp.lt.u32.totalorder %s10213_s8, %s12048_s12 }
 0x3c1   : > { %p10215_p1 = pnand %p10214_p0, %p11931_p6 }
 0x3c3   : > { %p10216_p8 = pneg %p10215_p1 }
 0x3c5   : > { %p10221_p12 = pnand %p10219_p13, %p10216_p8 }
 0x3c7   : > { %10224 = shalt.err (!%p10221_p12)
}
 0x3c8   : > { %s10225_s11 = scalar_lea.vmem %s1556_s4, 2048  ;;  %p10232_p5 = scmp.lt.s32.totalorder %s1556_s4, %s1556_s4 }
 0x3c9   : > { %p10226_p11 = scmp.ne.s32.totalorder %s1556_s4, %s10225_s11  ;;  %p10233_p2 = scmp.lt.s32.totalorder %s10225_s11, %s10225_s11 }
 0x3cb   : > { %p10227_p10 = pnand %p10226_p11, %p11931_p6  ;;  %p10234_p9 = por %p10233_p2, %p10232_p5 }
 0x3cd   : > { %p10228_p4 = pneg %p10227_p10 }
 0x3cf   : > { %p10235_p7 = pnand %p10234_p9, %p10228_p4 }
 0x3d1   : > { %10238 = shalt.err (!%p10235_p7)
}
 0x3d2   : > { %8981 = dma.hbm_to_vmem [thread:$0]  (%p11931_p6), %s12048_s12, 2048, %s1556_s4, [#allocation55], %s12046_s18, %s12046_s18, %s12045_s5  }
 0x3d3 PF: > { %s12049_s8 = sld [smem:[#allocation126_spill]]  ;;  %s12050_s3 = sld [smem:[#allocation78_spill]] }
 0x3d4   : > { %p11932_p0 = scmp.lt.s32.totalorder %s10517_s17, 8  ;;  %s1572_s10 = sand.u32 1, %s10497_s23  }
 0x3d5   : > { %s6052_s11 = sshll.u32 %s10513_s2, 4  ;;  %s5970_s6 = sshll.u32 %s1572_s10, 4 }
 0x3d6   : > { %s1576_s14 = scalar_lea.vmem [#allocation3], %s5970_s6  ;;  %p11453_p1 = pnand %p11932_p0, %p10928_p3 }
 0x3d7   : > { %s1585_s20 = sshll.u32 %s1576_s14, 4  ;;  %s11447_s20 = int_to_ptr.vmem [resolvable:$true] %s1585_s20 }
 0x3d8   : > { %p10241_p13 = pneg %p11453_p1 }
 0x3d9   : > { %s1582_s9 = sadd.s32 %s12049_s8, %s6052_s11 }
 0x3da   : > { %s5973_s13 = sshll.u32 %s1582_s9, 6  ;;  %s11458_s9 = scalar_lea.sflag [#allocation4], %s1572_s10 }
 0x3db   : > { %s11445_s5 = scalar_lea.hbm %s12050_s3, %s5973_s13  ;;  %s10244_s13 = scalar_lea.hbm %s12050_s3, 2048 }
 0x3dc   : > { %s10239_s14 = scalar_lea.hbm %s11445_s5, 256  ;;  %p10245_p10 = scmp.lt.u32.totalorder %s11445_s5, %s12050_s3 }
 0x3dd   : > { %p10240_p8 = scmp.ne.s32.totalorder %s11445_s5, %s10239_s14  ;;  %p10246_p4 = scmp.lt.u32.totalorder %s10244_s13, %s10239_s14 }
 0x3de   : > { %p10248_p5 = scmp.lt.u32.totalorder %s10239_s14, %s11445_s5 }
 0x3df   : > { %p10242_p12 = pnand %p10241_p13, %p10240_p8  ;;  %p10247_p3 = por %p10246_p4, %p10245_p10 }
 0x3e1   : > { %p10243_p11 = pneg %p10242_p12  ;;  %p10249_p2 = por %p10248_p5, %p10247_p3 }
 0x3e3   : > { %p10250_p9 = pnand %p10249_p2, %p10243_p11 }
 0x3e5   : > { %10253 = shalt.err (!%p10250_p9)
}
 0x3e6   : > { %s10254_s6 = scalar_lea.vmem %s11447_s20, 256  ;;  %s10599_s26 = smov [#allocation3]  }
 0x3e7   : > { %p10255_p7 = scmp.ne.s32.totalorder %s11447_s20, %s10254_s6  ;;  %s10259_s10 = sshll.u32 %s10599_s26, 4  ;;  %s10260_s10 = int_to_ptr.vmem [resolvable:$false] %s10259_s10 }
 0x3e8   : > { %s10261_s11 = scalar_lea.vmem %s10260_s10, 512  ;;  %p10262_p8 = scmp.lt.s32.totalorder %s11447_s20, %s10260_s10 }
 0x3e9   : > { %p10257_p6 = pnand %p10255_p7, %p10241_p13  ;;  %p10263_p12 = scmp.lt.s32.totalorder %s10261_s11, %s10254_s6 }
 0x3eb   : > { %p10258_p0 = pneg %p10257_p6  ;;  %p10264_p10 = por %p10263_p12, %p10262_p8 }
 0x3ed   : > { %p10265_p4 = pnand %p10264_p10, %p10258_p0 }
 0x3ef   : > { %10268 = shalt.err (!%p10265_p4)
}
 0x3f0   : > { %s10600_s14 = smov 256   ;;  %s12053_s13 = sld [smem:[#allocation79_spill]] }
 0x3f1   : > { %s10601_s4 = smov 64   ;;  %s10602_s26 = smov 4  }
 0x3f2   : > { %9057 = dma.hbm_to_vmem [thread:$0]  (!%p11453_p1), %s11445_s5, 256, %s11447_s20, %s11458_s9, %s10600_s14, %s10601_s4, %s10602_s26  }
 0x3f3   : > { %s1597_s6 = sand.u32 1, %s10485_s16   ;;  %s6053_s11 = sshll.u32 %s12049_s8, 10 }
 0x3f4   : > { %s5974_s10 = sshll.u32 %s1597_s6, 6  ;;  %p12054_p6 = scmp.ne.s32.totalorder %s12000_s1, 0 }
 0x3f5   : > { %s1599_s12 = scalar_lea.vmem [#allocation6], %s5974_s10  ;;  %p12055_p0 = scmp.lt.s32.totalorder %s10517_s17, 8 }
 0x3f6   : > { %s11487_s3 = scalar_lea.hbm %s12053_s13, %s6053_s11  ;;  %s1606_s24 = sshll.u32 %s1599_s12, 4  ;;  %s11497_s24 = int_to_ptr.vmem [resolvable:$true] %s1606_s24 }
 0x3f7   : > { %p11493_p13 = pnand %p12055_p0, %p12054_p6  ;;  %s12057_s20 = sand.u32 1, %s10517_s17  }
 0x3f8   : > { %s11501_s8 = scalar_lea.sflag [#allocation7], %s12057_s20  ;;  %s10269_s5 = scalar_lea.hbm %s11487_s3, 1024 }
 0x3f9   : > { %p10270_p1 = scmp.ne.s32.totalorder %s11487_s3, %s10269_s5  ;;  %p10271_p11 = pneg %p11493_p13 }
 0x3fa   : > { %s10274_s1 = scalar_lea.hbm %s12053_s13, 4096  ;;  %p10275_p2 = scmp.lt.u32.totalorder %s11487_s3, %s12053_s13 }
 0x3fb   : > { %p10272_p3 = pnand %p10271_p11, %p10270_p1  ;;  %p10276_p9 = scmp.lt.u32.totalorder %s10274_s1, %s10269_s5 }
 0x3fc   : > { %p10278_p8 = scmp.lt.u32.totalorder %s10269_s5, %s11487_s3 }
 0x3fd   : > { %p10273_p5 = pneg %p10272_p3  ;;  %p10277_p7 = por %p10276_p9, %p10275_p2 }
 0x3ff   : > { %p10279_p12 = por %p10278_p8, %p10277_p7 }
 0x401   : > { %p10280_p10 = pnand %p10279_p12, %p10273_p5 }
 0x403   : > { %10283 = shalt.err (!%p10280_p10)
}
 0x404   : > { %s10284_s12 = scalar_lea.vmem %s11497_s24, 1024  ;;  %s10603_s9 = smov [#allocation6]  }
 0x405   : > { %p10285_p4 = scmp.ne.s32.totalorder %s11497_s24, %s10284_s12  ;;  %s10289_s14 = sshll.u32 %s10603_s9, 4  ;;  %s10290_s14 = int_to_ptr.vmem [resolvable:$false] %s10289_s14 }
 0x406   : > { %s10291_s6 = scalar_lea.vmem %s10290_s14, 2048  ;;  %p10292_p1 = scmp.lt.s32.totalorder %s11497_s24, %s10290_s14 }
 0x407   : > { %p10287_p6 = pnand %p10285_p4, %p10271_p11  ;;  %p10293_p3 = scmp.lt.s32.totalorder %s10291_s6, %s10284_s12 }
 0x409   : > { %p10288_p0 = pneg %p10287_p6  ;;  %p10294_p2 = por %p10293_p3, %p10292_p1 }
 0x40b   : > { %p10295_p9 = pnand %p10294_p2, %p10288_p0 }
 0x40d   : > { %10298 = shalt.err (!%p10295_p9)
}
 0x40e   : > { %9060 = dma.hbm_to_vmem [thread:$0]  (!%p11493_p13), %s11487_s3, 1024, %s11497_s24, %s11501_s8, %s10601_s4, %s10601_s4, %s10602_s26  }
 0x40f   : > { %p12058_p11 = scmp.ne.s32.totalorder %s12009_s22, 0 }
 0x410   : > { %s12059_s10 = sld [smem:[#allocation123_spill]] (!%p12058_p11)  ;;  %s12060_s11 = sld [smem:[#allocation130_spill]] (!%p12058_p11) }
 0x411   : > { %1618 = sbr.rel (%p12058_p11) target bundleno = 6057 (0x17a9), region = 200 }
 0x416   : > { %s1620_s20 = sand.u32 (!%p12058_p11), 1, %s12059_s10   ;;  %p12061_p5 = scmp.ne.s32.totalorder (!%p12058_p11), %s12060_s11, 0 }
 0x417   : > { %s11531_s5 = sshll.u32 (!%p12058_p11), %s1620_s20, 4  ;;  %s1621_s1 = scalar_lea.sflag (!%p12058_p11), [#allocation4], %s1620_s20 }
 0x418   : > { %s1624_s12 = scalar_lea.vmem [#allocation3], %s11531_s5 }
 0x419   : > { %10384 = dma.done.wait (%p12061_p5), %s1621_s1, 256  }
 0x41a   : > { %10386 = vsyncadd (%p12061_p5), %s1621_s1, 4294967040  ;;  %s1629_s24 = sand.u32 1, %s10912_s21   ;;  %s1631_s3 = sand.u32 1, %s10481_s15  }
 0x41b   : > { %s5979_s22 = sshll.u32 %s1631_s3, 6  ;;  %s1630_s4 = scalar_lea.sflag [#allocation7], %s1629_s24 }
 0x41c   : > { %s11540_s26 = scalar_lea.vmem [#allocation6], %s5979_s22  ;;  %p12062_p13 = scmp.ne.s32.totalorder %s12003_s28, 0 }
 0x41e   : > { %10388 = dma.done.wait (%p12062_p13), %s1630_s4, 1024  }
 0x41f   : > { %10390 = vsyncadd (%p12062_p13), %s1630_s4, 4294966272  ;;  %p12063_p7 = scmp.eq.s32.totalorder %s10912_s21, 0 }
 0x421   : > { %10392 = dma.done.wait (%p12063_p7), [#allocation7], 2048   ;;  %p12064_p8 = pmov %p12063_p7 }
 0x422   : > { %p12065_p12 = pmov %p12063_p7 }
 0x423   : > { %10394 = vsyncadd (%p12064_p8), [#allocation7], 4294965248 }
 0x424   : > { %10396 = dma.done.wait (%p12065_p12), [#allocation10], 4096   ;;  %p12066_p10 = pmov %p12063_p7 }
 0x425   : > { %p12067_p4 = pmov %p12063_p7 }
 0x426   : > { %10398 = vsyncadd (%p12066_p10), [#allocation10], 4294963200 }
 0x427   : > { %10400 = dma.done.wait (%p12067_p4), [#allocation13], 2064   ;;  %p12068_p6 = pmov %p12067_p4 }
 0x428   : > { %p12069_p0 = pmov %p12067_p4 }
 0x429   : > { %10402 = vsyncadd (%p12068_p6), [#allocation13], 4294965232 }
 0x42a   : > { %10404 = dma.done.wait (%p12069_p0), [#allocation16], 2064   ;;  %p12070_p1 = pmov %p12069_p0 }
 0x42b   : > { %p12071_p3 = pmov %p12069_p0 }
 0x42c   : > { %10406 = vsyncadd (%p12070_p1), [#allocation16], 4294965232 }
 0x42d   : > { %10408 = dma.done.wait (%p12071_p3), [#allocation19], 2064   ;;  %p12072_p2 = pmov %p12069_p0 }
 0x42e   : > { %p12073_p9 = pmov %p12069_p0 }
 0x42f   : > { %10410 = vsyncadd (%p12072_p2), [#allocation19], 4294965232 }
 0x430   : > { %10412 = dma.done.wait (%p12073_p9), [#allocation22], 4112   ;;  %p12074_p11 = pmov %p12069_p0 }
 0x431   : > { %p12075_p5 = pmov %p12069_p0 }
 0x432   : > { %10414 = vsyncadd (%p12074_p11), [#allocation22], 4294963184 }
 0x433   : > { %10416 = dma.done.wait (%p12075_p5), [#allocation25], 2064   ;;  %p12076_p13 = pmov %p12069_p0 }
 0x434   : > { %p12077_p7 = pmov %p12069_p0 }
 0x435   : > { %10418 = vsyncadd (%p12076_p13), [#allocation25], 4294965232 }
 0x436   : > { %10420 = dma.done.wait (%p12077_p7), [#allocation28], 2064   ;;  %p12078_p8 = pmov %p12069_p0 }
 0x437   : > { %p12079_p12 = pmov %p12069_p0 }
 0x438   : > { %10422 = vsyncadd (%p12078_p8), [#allocation28], 4294965232 }
 0x439   : > { %10424 = dma.done.wait (%p12079_p12), [#allocation31], 2064   ;;  %p12080_p10 = pmov %p12069_p0 }
 0x43a   : > { %p12081_p4 = pmov %p12069_p0 }
 0x43b   : > { %10426 = vsyncadd (%p12080_p10), [#allocation31], 4294965232 }
 0x43c   : > { %10428 = dma.done.wait (%p12081_p4), [#allocation34], 6160   ;;  %p12082_p6 = pmov %p12069_p0 }
 0x43e   : > { %10430 = vsyncadd (%p12082_p6), [#allocation34], 4294961136 }
 0x43f   : > { %10432 = dma.done.wait (%p12069_p0), [#allocation37], 2064   ;;  %p12083_p1 = pmov %p12069_p0 }
 0x440   : > { %p12084_p3 = pmov %p12069_p0 }
 0x441   : > { %10434 = vsyncadd (%p12083_p1), [#allocation37], 4294965232 }
 0x442   : > { %10436 = dma.done.wait (%p12084_p3), [#allocation40], 2064   ;;  %p12085_p2 = pmov %p12069_p0 }
 0x443   : > { %p12086_p9 = pmov %p12069_p0 }
 0x444   : > { %10438 = vsyncadd (%p12085_p2), [#allocation40], 4294965232 }
 0x445   : > { %10440 = dma.done.wait (%p12086_p9), [#allocation43], 2064   ;;  %p12087_p11 = pmov %p12069_p0 }
 0x446   : > { %p12088_p5 = pmov %p12069_p0 }
 0x447   : > { %10442 = vsyncadd (%p12087_p11), [#allocation43], 4294965232 }
 0x448   : > { %10444 = dma.done.wait (%p12088_p5), [#allocation46], 8208   ;;  %p12089_p13 = pmov %p12069_p0 }
 0x449   : > { %p12090_p7 = pmov %p12069_p0 }
 0x44a   : > { %10446 = vsyncadd (%p12089_p13), [#allocation46], 4294959088 }
 0x44b   : > { %10448 = dma.done.wait (%p12090_p7), [#allocation49], 2064   ;;  %p12091_p8 = pmov %p12069_p0 }
 0x44c   : > { %p12092_p12 = pmov %p12069_p0 }
 0x44d   : > { %10450 = vsyncadd (%p12091_p8), [#allocation49], 4294965232 }
 0x44e   : > { %10452 = dma.done.wait (%p12092_p12), [#allocation52], 12288   ;;  %p12093_p10 = pmov %p12069_p0 }
 0x44f   : > { %p12094_p4 = pmov %p12069_p0 }
 0x450   : > { %10454 = vsyncadd (%p12093_p10), [#allocation52], 4294955008 }
 0x451   : > { %10456 = dma.done.wait (%p12094_p4), [#allocation55], 4096   ;;  %p12095_p6 = pmov %p12069_p0 }
 0x452   : > { %s1874_s28 = sand.u32 1, %s10469_s7   ;;  %s12096_s9 = sld [smem:[#allocation124_spill]] }
 0x453   : > { %10458 = vsyncadd (%p12095_p6), [#allocation55], 4294963200  ;;  %s8914_s18 = smul.u32 160, %s1874_s28 }
 0x455   : > { %s11617_s8 = scalar_lea.vmem [#allocation57], %s8914_s18 }
 0x458   : > { %p6013_p0 = scmp.ne.s32.totalorder %s12096_s9, 0 }
 0x459   : > { %v10604_v0 = vmov (!%p6013_p0), 0.0  }
 0x45a   : > { %1884 = sbr.rel (%p6013_p0) target bundleno = 1121 (0x461), region = 344  ;;  %1885 = vst [vmem:[#allocation2] sm:$0xff] (!%p6013_p0), %v10604_v0  ;;  %1886 = vst [vmem:[#allocation2 + $0x8] sm:$0xff] (!%p6013_p0), %v10604_v0 }
 0x45b   : > { %1887 = vst [vmem:[#allocation2 + $0x10] sm:$0xff] (!%p6013_p0), %v10604_v0  ;;  %1888 = vst [vmem:[#allocation2 + $0x18] sm:$0xff] (!%p6013_p0), %v10604_v0 }
 0x461 PF: > { %v9331_v1 = vld [vmem:[%s11540_s26] sm:$0xff]   ;;  %v9332_v2 = vld [vmem:[%s11540_s26 + $0x8] sm:$0xff]   ;;  %v9333_v3 = vld [vmem:[%s11540_s26 + $0x10] sm:$0xff]   ;;  %s12097_s21 = sld [smem:[#allocation124_spill]] }
 0x462   : > { %6684 = vmatprep.subr.bf16.mxu0 %v9331_v1  ;;  %v9334_v4 = vld [vmem:[%s11540_s26 + $0x18] sm:$0xff]   ;;  %v9339_v5 = vld [vmem:[%s1624_s12] sm:$0xff]   ;;  %v9336_v7 = vld [vmem:[%s11540_s26 + $0x28] sm:$0xff]  }
 0x463   : > { %6685 = vmatpush3.bf16.msra.mxu0 %v9331_v1  ;;  %6700 = vmatprep.mubr.bf16.mxu0 %v9339_v5  ;;  %v9335_v6 = vld [vmem:[%s11540_s26 + $0x20] sm:$0xff]   ;;  %v9337_v8 = vld [vmem:[%s11540_s26 + $0x30] sm:$0xff]   ;;  %v9338_v9 = vld [vmem:[%s11540_s26 + $0x38] sm:$0xff]  }
 0x464   : > { %6686 = vmatprep.subr.bf16.mxu0 %v9332_v2  ;;  %v9340_v10 = vld [vmem:[%s1624_s12 + $0x8] sm:$0xff]   ;;  %v1891_v11 = vld [vmem:[#allocation2 + $0x10] sm:$0xff]  ;;  %v1889_v12 = vld [vmem:[#allocation2] sm:$0xff] }
 0x465   : > { %v1892_v14 = vld [vmem:[#allocation2 + $0x18] sm:$0xff]  ;;  %v1890_v17 = vld [vmem:[#allocation2 + $0x8] sm:$0xff] }
 0x467   : > { %6687 = vmatpush3.bf16.msra.mxu0 %v9332_v2  ;;  %p6024_p1 = scmp.ne.s32.totalorder %s12097_s21, 3 }
 0x468   : > { %6688 = vmatprep.subr.bf16.mxu0 %v9333_v3  ;;  %v2053_v23 = vld [vmem:[#allocation8] sm:$0xff] (!%p6024_p1)  ;;  %s12098_s14 = sld [smem:[#allocation80_spill]] (!%p6024_p1)  ;;  %v2054_v24 = vld [vmem:[#allocation8 + $0x8] sm:$0xff] (!%p6024_p1)  ;;  %v2055_v25 = vld [vmem:[#allocation8 + $0x10] sm:$0xff] (!%p6024_p1)  ;;  %s12099_s6 = sld [smem:[#allocation82_spill]] (!%p6024_p1) }
 0x469   : > { %v7882_v26 = vpack.c.bf16 (!%p6024_p1), %v2054_v24, %v2053_v23  ;;  %v2056_v27 = vld [vmem:[#allocation8 + $0x18] sm:$0xff] (!%p6024_p1)  ;;  %v2057_v29 = vld [vmem:[#allocation8 + $0x20] sm:$0xff] (!%p6024_p1)  ;;  %v2058_v30 = vld [vmem:[#allocation8 + $0x28] sm:$0xff] (!%p6024_p1)  ;;  %s12100_s10 = sld [smem:[#allocation84_spill]] (!%p6024_p1)  ;;  %s12101_s11 = sld [smem:[#allocation86_spill]] (!%p6024_p1) }
 0x46a   : > { %v7886_v28 = vpack.c.bf16 (!%p6024_p1), %v2056_v27, %v2055_v25  ;;  %v7890_v31 = vpack.c.bf16 (!%p6024_p1), %v2058_v30, %v2057_v29  ;;  %v2059_v34 = vld [vmem:[#allocation8 + $0x30] sm:$0xff] (!%p6024_p1)  ;;  %v2060_v35 = vld [vmem:[#allocation8 + $0x38] sm:$0xff] (!%p6024_p1)  ;;  %v2061_v39 = vld [vmem:[#allocation8 + $0x40] sm:$0xff] (!%p6024_p1)  ;;  %s12102_s20 = sld [smem:[#allocation111_spill]] (!%p6024_p1)  ;;  %s12103_s5 = sld [smem:[#allocation112_spill]] (!%p6024_p1) }
 0x46b   : > { %6689 = vmatpush3.bf16.msra.mxu0 %v9333_v3  ;;  %7883 = vmatprep.subr.bf16.mxu1 (!%p6024_p1), %v7882_v26  ;;  %v7894_v38 = vpack.c.bf16 (!%p6024_p1), %v2060_v35, %v2059_v34  ;;  %v2062_v40 = vld [vmem:[#allocation8 + $0x48] sm:$0xff] (!%p6024_p1)  ;;  %v2063_v42 = vld [vmem:[#allocation8 + $0x50] sm:$0xff] (!%p6024_p1)  ;;  %v2064_v43 = vld [vmem:[#allocation8 + $0x58] sm:$0xff] (!%p6024_p1)  ;;  %s12104_s1 = sld [smem:[#allocation114_spill]] (!%p6024_p1)  ;;  %s12105_s12 = sld [smem:[#allocation116_spill]] (!%p6024_p1) }
 0x46c   : > { %6690 = vmatprep.subr.bf16.mxu0 %v9334_v4  ;;  %7885 = vmatpush3.bf16.msra.mxu1 (!%p6024_p1), %v7882_v26  ;;  %v7898_v41 = vpack.c.bf16 (!%p6024_p1), %v2062_v40, %v2061_v39  ;;  %v7902_v44 = vpack.c.bf16 (!%p6024_p1), %v2064_v43, %v2063_v42  ;;  %v2065_v45 = vld [vmem:[#allocation8 + $0x60] sm:$0xff] (!%p6024_p1)  ;;  %v2066_v46 = vld [vmem:[#allocation8 + $0x68] sm:$0xff] (!%p6024_p1)  ;;  %v2067_v48 = vld [vmem:[#allocation8 + $0x70] sm:$0xff] (!%p6024_p1)  ;;  %s12106_s24 = sld [smem:[#allocation118_spill]] (!%p6024_p1)  ;;  %s12107_s3 = sld [smem:[#allocation120_spill]] (!%p6024_p1) }
 0x46d   : > { %7887 = vmatprep.subr.bf16.mxu1 (!%p6024_p1), %v7886_v28  ;;  %v7906_v47 = vpack.c.bf16 (!%p6024_p1), %v2066_v46, %v2065_v45  ;;  %v2068_v49 = vld [vmem:[#allocation8 + $0x78] sm:$0xff] (!%p6024_p1)  ;;  %v2165_v53 = vld [vmem:[#allocation9] sm:$0xff] (!%p6024_p1)  ;;  %v2166_v54 = vld [vmem:[#allocation9 + $0x8] sm:$0xff] (!%p6024_p1) }
 0x46e   : > { %v6025_v33 = vld [vmem:[%s12098_s14] ss:$0 sm:$0xff] (!%p6024_p1)  ;;  %v7910_v51 = vpack.c.bf16 (!%p6024_p1), %v2068_v49, %v2067_v48  ;;  %v7914_v58 = vpack.c.bf16 (!%p6024_p1), %v2166_v54, %v2165_v53  ;;  %v2167_v59 = vld [vmem:[#allocation9 + $0x10] sm:$0xff] (!%p6024_p1)  ;;  %v2168_v60 = vld [vmem:[#allocation9 + $0x18] sm:$0xff] (!%p6024_p1) }
 0x46f   : > { %6691 = vmatpush3.bf16.msra.mxu0 %v9334_v4  ;;  %v7918_v0 = vpack.c.bf16 (!%p6024_p1), %v2168_v60, %v2167_v59  ;;  %v2169_v1 = vld [vmem:[#allocation9 + $0x20] sm:$0xff] (!%p6024_p1)  ;;  %v2170_v2 = vld [vmem:[#allocation9 + $0x28] sm:$0xff] (!%p6024_p1)  ;;  %v2171_v5 = vld [vmem:[#allocation9 + $0x30] sm:$0xff] (!%p6024_p1) }
 0x470   : > { %6692 = vmatprep.subr.bf16.mxu0 %v9335_v6  ;;  %7889 = vmatpush3.bf16.msra.mxu1 (!%p6024_p1), %v7886_v28  ;;  %v7922_v4 = vpack.c.bf16 (!%p6024_p1), %v2170_v2, %v2169_v1  ;;  %v2276_v24 = vld [vmem:[#allocation11 + $0x18] sm:$0xff] (!%p6024_p1)  ;;  %v2277_v26 = vld [vmem:[#allocation11 + $0x20] sm:$0xff] (!%p6024_p1)  ;;  %v2278_v27 = vld [vmem:[#allocation11 + $0x28] sm:$0xff] (!%p6024_p1) }
 0x471   : > { %7891 = vmatprep.subr.bf16.mxu1 (!%p6024_p1), %v7890_v31  ;;  %v7954_v28 = vpack.c.bf16 (!%p6024_p1), %v2278_v27, %v2277_v26  ;;  %v2279_v29 = vld [vmem:[#allocation11 + $0x30] sm:$0xff] (!%p6024_p1)  ;;  %v2280_v30 = vld [vmem:[#allocation11 + $0x38] sm:$0xff] (!%p6024_p1)  ;;  %v2286_v39 = vld [vmem:[#allocation11 + $0x68] sm:$0xff] (!%p6024_p1) }
 0x472   : > { %v2283_v35 = vld [vmem:[#allocation11 + $0x50] sm:$0xff] (!%p6024_p1)  ;;  %v2497_v26 = vld [vmem:[#allocation15] sm:$0xff] (!%p6024_p1) }
 0x473   : > { %6693 = vmatpush3.bf16.msra.mxu0 %v9335_v6  ;;  %v2172_v6 = vld [vmem:[#allocation9 + $0x38] sm:$0xff] (!%p6024_p1)  ;;  %v2287_v54 = vld [vmem:[#allocation11 + $0x70] sm:$0xff] (!%p6024_p1) }
 0x474   : > { %6694 = vmatprep.subr.bf16.mxu0 %v9336_v7  ;;  %7893 = vmatpush3.bf16.msra.mxu1 (!%p6024_p1), %v7890_v31  ;;  %v7958_v31 = vpack.c.bf16 (!%p6024_p1), %v2280_v30, %v2279_v29  ;;  %v2387_v59 = vld [vmem:[#allocation12 + $0x10] sm:$0xff] (!%p6024_p1)  ;;  %v2500_v30 = vld [vmem:[#allocation15 + $0x18] sm:$0xff] (!%p6024_p1) }
 0x475   : > { %7895 = vmatprep.subr.bf16.mxu1 (!%p6024_p1), %v7894_v38  ;;  %v2391_v2 = vld [vmem:[#allocation12 + $0x30] sm:$0xff] (!%p6024_p1) }
 0x476   : > { %v2498_v27 = vld [vmem:[#allocation15 + $0x8] sm:$0xff] (!%p6024_p1) }
 0x477   : > { %6695 = vmatpush3.bf16.msra.mxu0 %v9336_v7  ;;  %v7926_v7 = vpack.c.bf16 (!%p6024_p1), %v2172_v6, %v2171_v5  ;;  %v2393_v5 = vld [vmem:[#allocation12 + $0x40] sm:$0xff] (!%p6024_p1)  ;;  %v2394_v6 = vld [vmem:[#allocation12 + $0x48] sm:$0xff] (!%p6024_p1)  ;;  %v8010_v29 = vpack.c.bf16 (!%p6024_p1), %v2498_v27, %v2497_v26 }
 0x478   : > { %6696 = vmatprep.subr.bf16.mxu0 %v9337_v8  ;;  %7897 = vmatpush3.bf16.msra.mxu1 (!%p6024_p1), %v7894_v38  ;;  %v2285_v38 = vld [vmem:[#allocation11 + $0x60] sm:$0xff] (!%p6024_p1) }
 0x479   : > { %7899 = vmatprep.subr.bf16.mxu1 (!%p6024_p1), %v7898_v41  ;;  %v7970_v40 = vpack.c.bf16 (!%p6024_p1), %v2286_v39, %v2285_v38  ;;  %v6028_v38 = vld [vmem:[%s12101_s11] ss:$0 sm:$0xff] (!%p6024_p1) }
 0x47b   : > { %6697 = vmatpush3.bf16.msra.mxu0 %v9337_v8  ;;  %v2173_v8 = vld [vmem:[#allocation9 + $0x40] sm:$0xff] (!%p6024_p1) }
 0x47c   : > { %6698 = vmatprep.subr.bf16.mxu0 %v9338_v9  ;;  %7901 = vmatpush3.bf16.msra.mxu1 (!%p6024_p1), %v7898_v41  ;;  %v6026_v41 = vld [vmem:[%s12099_s6] ss:$0 sm:$0xff] (!%p6024_p1) }
 0x47d   : > { %7903 = vmatprep.subr.bf16.mxu1 (!%p6024_p1), %v7902_v44 }
 0x47f   : > { %6699 = vmatpush3.bf16.msra.mxu0 %v9338_v9  ;;  %v2174_v9 = vld [vmem:[#allocation9 + $0x48] sm:$0xff] (!%p6024_p1) }
 0x480   : > { %7905 = vmatpush3.bf16.msra.mxu1 (!%p6024_p1), %v7902_v44 }
 0x481   : > { %7907 = vmatprep.subr.bf16.mxu1 (!%p6024_p1), %v7906_v47 }
 0x482   : > { %6701 = vmatmul.mubr.bf16.vlgmr.msra.gmra.mrb[0].mxu0 %v9340_v10  ;;  %v7930_v10 = vpack.c.bf16 (!%p6024_p1), %v2174_v9, %v2173_v8  ;;  %v2395_v8 = vld [vmem:[#allocation12 + $0x50] sm:$0xff] (!%p6024_p1)  ;;  %v2396_v9 = vld [vmem:[#allocation12 + $0x58] sm:$0xff] (!%p6024_p1) }
 0x484   : > { %7909 = vmatpush3.bf16.msra.mxu1 (!%p6024_p1), %v7906_v47 }
 0x485   : > { %7911 = vmatprep.subr.bf16.mxu1 (!%p6024_p1), %v7910_v51 }
 0x488   : > { %7913 = vmatpush3.bf16.msra.mxu1 (!%p6024_p1), %v7910_v51 }
 0x489   : > { %7915 = vmatprep.subr.bf16.mxu1 (!%p6024_p1), %v7914_v58 }
 0x555   : > { %v6702_v13 = vpop.f32.mrb[0].mxu0  ;;  %2033 = sbr.rel (%p6024_p1) target bundleno = 6030 (0x178e), region = 348 }
 0x556   : > { %v2024_v15 = vadd.f32 %v6702_v13, %v1891_v11  ;;  %v2007_v16 = vpop.f32.mrb[1].mxu0  ;;  %v2175_v11 = vld [vmem:[#allocation9 + $0x50] sm:$0xff] (!%p6024_p1) }
 0x557   : > { %v2022_v18 = vadd.f32 %v2007_v16, %v1889_v12  ;;  %v6703_v19 = vpop.f32.mrb[2].mxu0  ;;  %v2176_v12 = vld [vmem:[#allocation9 + $0x58] sm:$0xff] (!%p6024_p1) }
 0x558   : > { %2028 = vst [vmem:[#allocation2 + $0x10] sm:$0xff] %v2024_v15  ;;  %v2025_v20 = vadd.f32 %v6703_v19, %v1892_v14  ;;  %v2010_v21 = vpop.f32.mrb[3].mxu0  ;;  %v7934_v13 = vpack.c.bf16 (!%p6024_p1), %v2176_v12, %v2175_v11  ;;  %v2177_v14 = vld [vmem:[#allocation9 + $0x60] sm:$0xff] (!%p6024_p1)  ;;  %v2178_v15 = vld [vmem:[#allocation9 + $0x68] sm:$0xff] (!%p6024_p1) }
 0x559   : > { %2026 = vst [vmem:[#allocation2] sm:$0xff] %v2022_v18  ;;  %v2023_v22 = vadd.f32 %v2010_v21, %v1890_v17  ;;  %v7938_v16 = vpack.c.bf16 (!%p6024_p1), %v2178_v15, %v2177_v14  ;;  %v2179_v17 = vld [vmem:[#allocation9 + $0x70] sm:$0xff] (!%p6024_p1)  ;;  %v2180_v18 = vld [vmem:[#allocation9 + $0x78] sm:$0xff] (!%p6024_p1)  ;;  %v2274_v21 = vld [vmem:[#allocation11 + $0x8] sm:$0xff] (!%p6024_p1) }
 0x55a   : > { %2029 = vst [vmem:[#allocation2 + $0x18] sm:$0xff] %v2025_v20  ;;  %v7942_v19 = vpack.c.bf16 (!%p6024_p1), %v2180_v18, %v2179_v17  ;;  %v2273_v20 = vld [vmem:[#allocation11] sm:$0xff] (!%p6024_p1)  ;;  %v2398_v12 = vld [vmem:[#allocation12 + $0x68] sm:$0xff] (!%p6024_p1) }
 0x55b   : > { %2027 = vst [vmem:[#allocation2 + $0x8] sm:$0xff] %v2023_v22  ;;  %v2275_v22 = vld [vmem:[#allocation11 + $0x10] sm:$0xff] (!%p6024_p1)  ;;  %v7946_v23 = vpack.c.bf16 (!%p6024_p1), %v2274_v21, %v2273_v20  ;;  %v2397_v11 = vld [vmem:[#allocation12 + $0x60] sm:$0xff] (!%p6024_p1) }
 0x55c   : > { %v7950_v25 = vpack.c.bf16 %v2276_v24, %v2275_v22  ;;  %v6027_v14 = vld [vmem:[%s12100_s10] ss:$0 sm:$0xff]  ;;  %v2400_v24 = vld [vmem:[#allocation12 + $0x78] sm:$0xff] }
 0x55d   : > { %7947 = vmatprep.subr.bf16.mxu0 %v7946_v23 }
 0x55e   : > { %7949 = vmatpush3.bf16.msra.mxu0 %v7946_v23  ;;  %v2399_v23 = vld [vmem:[#allocation12 + $0x70] sm:$0xff] }
 0x55f   : > { %v2036_v52 = vld [vmem:[#allocation2 + $0x10] sm:$0xff]  ;;  %7951 = vmatprep.subr.bf16.mxu0 %v7950_v25 }
 0x560   : > { %v2034_v32 = vld [vmem:[#allocation2] sm:$0xff]  ;;  %v2047_v56 = vadd.f32 %v6025_v33, %v2036_v52 }
 0x561   : > { %v2045_v36 = vadd.f32 %v6025_v33, %v2034_v32  ;;  %v2037_v57 = vld [vmem:[#allocation2 + $0x18] sm:$0xff]  ;;  %v2281_v32 = vld [vmem:[#allocation11 + $0x40] sm:$0xff] }
 0x562   : > { %v2035_v50 = vld [vmem:[#allocation2 + $0x8] sm:$0xff]  ;;  %v2048_v62 = vadd.f32 %v6025_v33, %v2037_v57  ;;  %v2051_v63 = vmax.f32 %v2047_v56, 0.0  ;;  %7953 = vmatpush3.bf16.msra.mxu0 %v7950_v25  ;;  %v2385_v57 = vld [vmem:[#allocation12] sm:$0xff]  ;;  %v8006_v25 = vpack.c.bf16 %v2400_v24, %v2399_v23 }
 0x563   : > { %v2049_v37 = vmax.f32 %v2045_v36, 0.0  ;;  %v2046_v55 = vadd.f32 %v6025_v33, %v2035_v50  ;;  %7955 = vmatprep.subr.bf16.mxu0 %v7954_v28  ;;  %v2282_v33 = vld [vmem:[#allocation11 + $0x48] sm:$0xff]  ;;  %v2284_v36 = vld [vmem:[#allocation11 + $0x58] sm:$0xff]  ;;  %v6029_v24 = vld [vmem:[#allocation14] ss:$0 sm:$0xff] }
 0x564   : > { %v2052_v3 = vmax.f32 %v2048_v62, 0.0  ;;  %v7962_v34 = vpack.c.bf16 %v2282_v33, %v2281_v32  ;;  %v2501_v32 = vld [vmem:[#allocation15 + $0x20] sm:$0xff]  ;;  %v2502_v33 = vld [vmem:[#allocation15 + $0x28] sm:$0xff] }
 0x565   : > { %6736 = vmatprep.mubr.f32.mxu1 %v2049_v37  ;;  %v2050_v61 = vmax.f32 %v2046_v55, 0.0  ;;  %v7966_v37 = vpack.c.bf16 %v2284_v36, %v2283_v35  ;;  %v2288_v55 = vld [vmem:[#allocation11 + $0x78] sm:$0xff] }
 0x566   : > { %7957 = vmatpush3.bf16.msra.mxu0 %v7954_v28  ;;  %v7974_v56 = vpack.c.bf16 %v2288_v55, %v2287_v54  ;;  %v2499_v28 = vld [vmem:[#allocation15 + $0x10] sm:$0xff]  ;;  %v2504_v36 = vld [vmem:[#allocation15 + $0x38] sm:$0xff] }
 0x567   : > { %6737 = vmatmul.mubr.f32.vlgmr.msra.gmra.mrb[0].mxu1 %v2050_v61  ;;  %7959 = vmatprep.subr.bf16.mxu0 %v7958_v31  ;;  %v2388_v61 = vld [vmem:[#allocation12 + $0x18] sm:$0xff] }
 0x568   : > { %6739 = vmatprep.mubr.f32.mxu1 %v2051_v63  ;;  %7917 = vmatpush3.bf16.msra.mxu1 %v7914_v58  ;;  %v2386_v58 = vld [vmem:[#allocation12 + $0x8] sm:$0xff]  ;;  %v7982_v62 = vpack.c.bf16 %v2388_v61, %v2387_v59  ;;  %v2389_v63 = vld [vmem:[#allocation12 + $0x20] sm:$0xff]  ;;  %v2503_v35 = vld [vmem:[#allocation15 + $0x30] sm:$0xff] }
 0x569   : > { %7919 = vmatprep.subr.bf16.mxu1 %v7918_v0  ;;  %v7978_v60 = vpack.c.bf16 %v2386_v58, %v2385_v57  ;;  %v2507_v54 = vld [vmem:[#allocation15 + $0x50] sm:$0xff]  ;;  %v2508_v55 = vld [vmem:[#allocation15 + $0x58] sm:$0xff]  ;;  %v2509_v57 = vld [vmem:[#allocation15 + $0x60] sm:$0xff] }
 0x56a   : > { %7961 = vmatpush3.bf16.msra.mxu0 %v7958_v31  ;;  %v8014_v31 = vpack.c.bf16 %v2500_v30, %v2499_v28  ;;  %v2510_v58 = vld [vmem:[#allocation15 + $0x68] sm:$0xff]  ;;  %v2512_v61 = vld [vmem:[#allocation15 + $0x78] sm:$0xff] }
 0x56b   : > { %6740 = vmatmul.mubr.f32.gmra.mrb[2].mxu1 %v2052_v3  ;;  %7963 = vmatprep.subr.bf16.mxu0 %v7962_v34  ;;  %v2392_v3 = vld [vmem:[#allocation12 + $0x38] sm:$0xff]  ;;  %v8034_v59 = vpack.c.bf16 %v2510_v58, %v2509_v57  ;;  %v2745_v58 = vld [vmem:[#allocation21 + $0xe0] sm:$0xff] }
 0x56c   : > { %7921 = vmatpush3.bf16.msra.mxu1 %v7918_v0  ;;  %v2390_v0 = vld [vmem:[#allocation12 + $0x28] sm:$0xff] }
 0x56d   : > { %7923 = vmatprep.subr.bf16.mxu1 %v7922_v4  ;;  %v7986_v1 = vpack.c.bf16 %v2390_v0, %v2389_v63  ;;  %v2605_v63 = vld [vmem:[#allocation18] sm:$0xff]  ;;  %v2606_v0 = vld [vmem:[#allocation18 + $0x8] sm:$0xff] }
 0x56e   : > { %7965 = vmatpush3.bf16.msra.mxu0 %v7962_v34  ;;  %v8018_v34 = vpack.c.bf16 %v2502_v33, %v2501_v32 }
 0x56f   : > { %7967 = vmatprep.subr.bf16.mxu0 %v7966_v37 }
 0x570   : > { %7925 = vmatpush3.bf16.msra.mxu1 %v7922_v4  ;;  %v7990_v4 = vpack.c.bf16 %v2392_v3, %v2391_v2  ;;  %v8042_v2 = vpack.c.bf16 %v2606_v0, %v2605_v63  ;;  %v2608_v3 = vld [vmem:[#allocation18 + $0x18] sm:$0xff] }
 0x571   : > { %7927 = vmatprep.subr.bf16.mxu1 %v7926_v7 }
 0x572   : > { %7969 = vmatpush3.bf16.msra.mxu0 %v7966_v37  ;;  %v8022_v37 = vpack.c.bf16 %v2504_v36, %v2503_v35 }
 0x573   : > { %7971 = vmatprep.subr.bf16.mxu0 %v7970_v40 }
 0x574   : > { %7929 = vmatpush3.bf16.msra.mxu1 %v7926_v7  ;;  %v7994_v7 = vpack.c.bf16 %v2394_v6, %v2393_v5  ;;  %v2609_v5 = vld [vmem:[#allocation18 + $0x20] sm:$0xff]  ;;  %v2610_v6 = vld [vmem:[#allocation18 + $0x28] sm:$0xff] }
 0x575   : > { %7931 = vmatprep.subr.bf16.mxu1 %v7930_v10 }
 0x576   : > { %7973 = vmatpush3.bf16.msra.mxu0 %v7970_v40 }
 0x577   : > { %7975 = vmatprep.subr.bf16.mxu0 %v7974_v56 }
 0x578   : > { %7933 = vmatpush3.bf16.msra.mxu1 %v7930_v10  ;;  %v7998_v10 = vpack.c.bf16 %v2396_v9, %v2395_v8  ;;  %v2611_v8 = vld [vmem:[#allocation18 + $0x30] sm:$0xff]  ;;  %v2612_v9 = vld [vmem:[#allocation18 + $0x38] sm:$0xff] }
 0x579   : > { %7935 = vmatprep.subr.bf16.mxu1 %v7934_v13 }
 0x57a   : > { %7977 = vmatpush3.bf16.msra.mxu0 %v7974_v56  ;;  %v8030_v56 = vpack.c.bf16 %v2508_v55, %v2507_v54  ;;  %v2743_v55 = vld [vmem:[#allocation21 + $0xd0] sm:$0xff] }
 0x57b   : > { %8011 = vmatprep.subr.bf16.mxu0 %v8010_v29 }
 0x57c   : > { %7937 = vmatpush3.bf16.msra.mxu1 %v7934_v13  ;;  %v8002_v13 = vpack.c.bf16 %v2398_v12, %v2397_v11  ;;  %v2613_v11 = vld [vmem:[#allocation18 + $0x40] sm:$0xff]  ;;  %v2614_v12 = vld [vmem:[#allocation18 + $0x48] sm:$0xff] }
 0x57d   : > { %7939 = vmatprep.subr.bf16.mxu1 %v7938_v16 }
 0x580   : > { %7941 = vmatpush3.bf16.msra.mxu1 %v7938_v16 }
 0x581   : > { %7943 = vmatprep.subr.bf16.mxu1 %v7942_v19 }
 0x584   : > { %7945 = vmatpush3.bf16.msra.mxu1 %v7942_v19 }
 0x585   : > { %7979 = vmatprep.subr.bf16.mxu1 %v7978_v60 }
 0x63a   : > { %v6738_v42 = vpop.f32.mrb[0].mxu1 }
 0x63b   : > { %v2148_v43 = vadd.f32 %v6738_v42, %v6026_v41  ;;  %v2142_v44 = vpop.f32.mrb[1].mxu1 }
 0x63c   : > { %v2143_v45 = vadd.f32 %v6026_v41, %v2142_v44 }
 0x63d   : > { %v2162_v48 = vmax.f32 %v2148_v43, 0.0 }
 0x63e   : > { %v2161_v46 = vmax.f32 %v2143_v45, 0.0  ;;  %v6741_v47 = vpop.f32.mrb[2].mxu1 }
 0x63f   : > { %v2158_v49 = vadd.f32 %v6741_v47, %v6026_v41  ;;  %v2152_v50 = vpop.f32.mrb[3].mxu1 }
 0x640   : > { %v2153_v51 = vadd.f32 %v6026_v41, %v2152_v50  ;;  %6774 = vmatprep.mubr.f32.mxu1 %v2161_v46 }
 0x641   : > { %v2164_v52 = vmax.f32 %v2158_v49, 0.0  ;;  %6775 = vmatmul.mubr.f32.vlgmr.msra.gmra.mrb[4].mxu1 %v2162_v48 }
 0x642   : > { %v2163_v53 = vmax.f32 %v2153_v51, 0.0  ;;  %7981 = vmatpush3.bf16.msra.mxu1 %v7978_v60  ;;  %v2505_v51 = vld [vmem:[#allocation15 + $0x40] sm:$0xff]  ;;  %v2511_v60 = vld [vmem:[#allocation15 + $0x70] sm:$0xff] }
 0x643   : > { %7983 = vmatprep.subr.bf16.mxu1 %v7982_v62 }
 0x644   : > { %6777 = vmatprep.mubr.f32.mxu1 %v2163_v53 }
 0x645   : > { %6778 = vmatmul.mubr.f32.gmra.mrb[6].mxu1 %v2164_v52  ;;  %v2506_v52 = vld [vmem:[#allocation15 + $0x48] sm:$0xff] }
 0x646   : > { %7985 = vmatpush3.bf16.msra.mxu1 %v7982_v62  ;;  %v8026_v53 = vpack.c.bf16 %v2506_v52, %v2505_v51  ;;  %v8038_v62 = vpack.c.bf16 %v2512_v61, %v2511_v60  ;;  %v2741_v52 = vld [vmem:[#allocation21 + $0xc0] sm:$0xff]  ;;  %v6030_v61 = vld [vmem:[#allocation17] ss:$0 sm:$0xff] }
 0x647   : > { %7987 = vmatprep.subr.bf16.mxu1 %v7986_v1 }
 0x64a   : > { %7989 = vmatpush3.bf16.msra.mxu1 %v7986_v1  ;;  %v2607_v1 = vld [vmem:[#allocation18 + $0x10] sm:$0xff] }
 0x64b   : > { %7991 = vmatprep.subr.bf16.mxu1 %v7990_v4 }
 0x64e   : > { %7993 = vmatpush3.bf16.msra.mxu1 %v7990_v4  ;;  %v8046_v4 = vpack.c.bf16 %v2608_v3, %v2607_v1 }
 0x64f   : > { %7995 = vmatprep.subr.bf16.mxu1 %v7994_v7 }
 0x652   : > { %7997 = vmatpush3.bf16.msra.mxu1 %v7994_v7  ;;  %v8050_v7 = vpack.c.bf16 %v2610_v6, %v2609_v5  ;;  %v2747_v6 = vld [vmem:[#allocation21 + $0xf0] sm:$0xff] }
 0x653   : > { %7999 = vmatprep.subr.bf16.mxu1 %v7998_v10 }
 0x656   : > { %8001 = vmatpush3.bf16.msra.mxu1 %v7998_v10  ;;  %v8054_v10 = vpack.c.bf16 %v2612_v9, %v2611_v8  ;;  %v2717_v9 = vld [vmem:[#allocation21] sm:$0xff] }
 0x657   : > { %8003 = vmatprep.subr.bf16.mxu1 %v8002_v13 }
 0x65a   : > { %8005 = vmatpush3.bf16.msra.mxu1 %v8002_v13  ;;  %v8058_v13 = vpack.c.bf16 %v2614_v12, %v2613_v11  ;;  %v2934_v12 = vld [vmem:[#allocation24] sm:$0xff] }
 0x65b   : > { %8007 = vmatprep.subr.bf16.mxu1 %v8006_v25 }
 0x65e   : > { %8009 = vmatpush3.bf16.msra.mxu1 %v8006_v25 }
 0x65f   : > { %8043 = vmatprep.subr.bf16.mxu1 %v8042_v2 }
 0x714   : > { %v6776_v15 = vpop.f32.mrb[4].mxu1 }
 0x715   : > { %v2254_v16 = vpop.f32.mrb[5].mxu1  ;;  %v11638_v18 = vadd.f32 %v6776_v15, %v6027_v14  ;;  %v2616_v15 = vld [vmem:[#allocation18 + $0x58] sm:$0xff] }
 0x716   : > { %v11636_v17 = vadd.f32 %v6027_v14, %v2254_v16 }
 0x718   : > { %v6779_v19 = vpop.f32.mrb[6].mxu1  ;;  %6812 = vmatprep.mubr.f32.mxu0 %v11636_v17 }
 0x719   : > { %v11641_v20 = vadd.f32 %v6779_v19, %v6027_v14  ;;  %v2264_v21 = vpop.f32.mrb[7].mxu1  ;;  %6813 = vmatmul.mubr.f32.vlgmr.msra.gmra.mrb[0].mxu0 %v11638_v18  ;;  %v2617_v19 = vld [vmem:[#allocation18 + $0x60] sm:$0xff] }
 0x71a   : > { %v11644_v22 = vadd.f32 %v6027_v14, %v2264_v21  ;;  %8013 = vmatpush3.bf16.msra.mxu0 %v8010_v29  ;;  %v2615_v14 = vld [vmem:[#allocation18 + $0x50] sm:$0xff]  ;;  %v2618_v21 = vld [vmem:[#allocation18 + $0x68] sm:$0xff] }
 0x71b   : > { %8015 = vmatprep.subr.bf16.mxu0 %v8014_v31  ;;  %v8062_v16 = vpack.c.bf16 %v2616_v15, %v2615_v14  ;;  %v8066_v23 = vpack.c.bf16 %v2618_v21, %v2617_v19  ;;  %v2936_v14 = vld [vmem:[#allocation24 + $0x10] sm:$0xff]  ;;  %v2938_v21 = vld [vmem:[#allocation24 + $0x20] sm:$0xff] }
 0x71c   : > { %6815 = vmatprep.mubr.f32.mxu0 %v11644_v22 }
 0x71d   : > { %6816 = vmatmul.mubr.f32.gmra.mrb[2].mxu0 %v11641_v20 }
 0x71e   : > { %8017 = vmatpush3.bf16.msra.mxu0 %v8014_v31 }
 0x71f   : > { %8019 = vmatprep.subr.bf16.mxu0 %v8018_v34 }
 0x722   : > { %8021 = vmatpush3.bf16.msra.mxu0 %v8018_v34 }
 0x723   : > { %8023 = vmatprep.subr.bf16.mxu0 %v8022_v37 }
 0x726   : > { %8025 = vmatpush3.bf16.msra.mxu0 %v8022_v37  ;;  %v2619_v37 = vld [vmem:[#allocation18 + $0x70] sm:$0xff] }
 0x727   : > { %8027 = vmatprep.subr.bf16.mxu0 %v8026_v53 }
 0x72a   : > { %8029 = vmatpush3.bf16.msra.mxu0 %v8026_v53  ;;  %v2742_v53 = vld [vmem:[#allocation21 + $0xc8] sm:$0xff] }
 0x72b   : > { %8031 = vmatprep.subr.bf16.mxu0 %v8030_v56  ;;  %v8090_v54 = vpack.c.bf16 %v2742_v53, %v2741_v52  ;;  %v2722_v52 = vld [vmem:[#allocation21 + $0x28] sm:$0xff] }
 0x72e   : > { %8033 = vmatpush3.bf16.msra.mxu0 %v8030_v56  ;;  %v2744_v56 = vld [vmem:[#allocation21 + $0xd8] sm:$0xff] }
 0x72f   : > { %8035 = vmatprep.subr.bf16.mxu0 %v8034_v59  ;;  %v8094_v57 = vpack.c.bf16 %v2744_v56, %v2743_v55  ;;  %v2723_v56 = vld [vmem:[#allocation21 + $0x30] sm:$0xff] }
 0x732   : > { %8037 = vmatpush3.bf16.msra.mxu0 %v8034_v59  ;;  %v2746_v59 = vld [vmem:[#allocation21 + $0xe8] sm:$0xff] }
 0x733   : > { %8039 = vmatprep.subr.bf16.mxu0 %v8038_v62  ;;  %v8098_v60 = vpack.c.bf16 %v2746_v59, %v2745_v58  ;;  %v2725_v59 = vld [vmem:[#allocation21 + $0x40] sm:$0xff] }
 0x736   : > { %8041 = vmatpush3.bf16.msra.mxu0 %v8038_v62 }
 0x7ec   : > { %v6814_v39 = vpop.f32.mrb[0].mxu0 }
 0x7ed   : > { %v2368_v40 = vadd.f32 %v6814_v39, %v6028_v38  ;;  %v2362_v41 = vpop.f32.mrb[1].mxu0 }
 0x7ee   : > { %v2363_v42 = vadd.f32 %v6028_v38, %v2362_v41  ;;  %v2734_v41 = vld [vmem:[#allocation21 + $0x88] sm:$0xff] }
 0x7ef   : > { %v2382_v45 = vmax.f32 %v2368_v40, 0.0  ;;  %v2733_v40 = vld [vmem:[#allocation21 + $0x80] sm:$0xff] }
 0x7f0   : > { %v2381_v43 = vmax.f32 %v2363_v42, 0.0  ;;  %v6817_v44 = vpop.f32.mrb[2].mxu0  ;;  %v2735_v42 = vld [vmem:[#allocation21 + $0x90] sm:$0xff] }
 0x7f1   : > { %v2378_v46 = vadd.f32 %v6817_v44, %v6028_v38  ;;  %v2372_v47 = vpop.f32.mrb[3].mxu0  ;;  %v2736_v44 = vld [vmem:[#allocation21 + $0x98] sm:$0xff] }
 0x7f2   : > { %v2373_v48 = vadd.f32 %v6028_v38, %v2372_v47  ;;  %6850 = vmatprep.mubr.f32.mxu1 %v2381_v43  ;;  %v2620_v38 = vld [vmem:[#allocation18 + $0x78] sm:$0xff]  ;;  %v8074_v43 = vpack.c.bf16 %v2734_v41, %v2733_v40  ;;  %v2738_v47 = vld [vmem:[#allocation21 + $0xa8] sm:$0xff] }
 0x7f3   : > { %v2384_v49 = vmax.f32 %v2378_v46, 0.0  ;;  %6851 = vmatmul.mubr.f32.vlgmr.msra.gmra.mrb[8].mxu1 %v2382_v45  ;;  %v8070_v39 = vpack.c.bf16 %v2620_v38, %v2619_v37  ;;  %v8078_v45 = vpack.c.bf16 %v2736_v44, %v2735_v42  ;;  %v2737_v46 = vld [vmem:[#allocation21 + $0xa0] sm:$0xff]  ;;  %v6031_v37 = vld [vmem:[#allocation20] ss:$0 sm:$0xff]  ;;  %v2719_v42 = vld [vmem:[#allocation21 + $0x10] sm:$0xff] }
 0x7f4   : > { %v2383_v50 = vmax.f32 %v2373_v48, 0.0  ;;  %8045 = vmatpush3.bf16.msra.mxu1 %v8042_v2  ;;  %8075 = vmatprep.subr.bf16.mxu0 %v8074_v43  ;;  %v8082_v48 = vpack.c.bf16 %v2738_v47, %v2737_v46 }
 0x7f5   : > { %8047 = vmatprep.subr.bf16.mxu1 %v8046_v4 }
 0x7f6   : > { %6853 = vmatprep.mubr.f32.mxu1 %v2383_v50  ;;  %v2740_v50 = vld [vmem:[#allocation21 + $0xb8] sm:$0xff] }
 0x7f7   : > { %6854 = vmatmul.mubr.f32.gmra.mrb[10].mxu1 %v2384_v49  ;;  %v2739_v49 = vld [vmem:[#allocation21 + $0xb0] sm:$0xff] }
 0x7f8   : > { %8049 = vmatpush3.bf16.msra.mxu1 %v8046_v4  ;;  %v8086_v51 = vpack.c.bf16 %v2740_v50, %v2739_v49 }
 0x7f9   : > { %8051 = vmatprep.subr.bf16.mxu1 %v8050_v7 }
 0x7fc   : > { %8053 = vmatpush3.bf16.msra.mxu1 %v8050_v7  ;;  %v2748_v7 = vld [vmem:[#allocation21 + $0xf8] sm:$0xff] }
 0x7fd   : > { %8055 = vmatprep.subr.bf16.mxu1 %v8054_v10  ;;  %v8102_v8 = vpack.c.bf16 %v2748_v7, %v2747_v6  ;;  %v2948_v7 = vld [vmem:[#allocation24 + $0x70] sm:$0xff] }
 0x800   : > { %8057 = vmatpush3.bf16.msra.mxu1 %v8054_v10  ;;  %v2718_v10 = vld [vmem:[#allocation21 + $0x8] sm:$0xff] }
 0x801   : > { %8059 = vmatprep.subr.bf16.mxu1 %v8058_v13  ;;  %v8106_v11 = vpack.c.bf16 %v2718_v10, %v2717_v9  ;;  %v3046_v10 = vld [vmem:[#allocation27] sm:$0xff] }
 0x804   : > { %8061 = vmatpush3.bf16.msra.mxu1 %v8058_v13  ;;  %v2935_v13 = vld [vmem:[#allocation24 + $0x8] sm:$0xff] }
 0x805   : > { %8063 = vmatprep.subr.bf16.mxu1 %v8062_v16  ;;  %v8138_v15 = vpack.c.bf16 %v2935_v13, %v2934_v12  ;;  %v6032_v13 = vld [vmem:[#allocation23] ss:$0 sm:$0xff] }
 0x808   : > { %8065 = vmatpush3.bf16.msra.mxu1 %v8062_v16  ;;  %v2937_v16 = vld [vmem:[#allocation24 + $0x18] sm:$0xff] }
 0x809   : > { %8067 = vmatprep.subr.bf16.mxu1 %v8066_v23  ;;  %v8142_v19 = vpack.c.bf16 %v2937_v16, %v2936_v14 }
 0x80c   : > { %8069 = vmatpush3.bf16.msra.mxu1 %v8066_v23  ;;  %v2939_v23 = vld [vmem:[#allocation24 + $0x28] sm:$0xff] }
 0x80d   : > { %8071 = vmatprep.subr.bf16.mxu1 %v8070_v39 }
 0x810   : > { %8073 = vmatpush3.bf16.msra.mxu1 %v8070_v39 }
 0x811   : > { %8139 = vmatprep.subr.bf16.mxu1 %v8138_v15 }
 0x8c6   : > { %v6852_v25 = vpop.f32.mrb[8].mxu1 }
 0x8c7   : > { %v2480_v26 = vadd.f32 %v6852_v25, %v6029_v24  ;;  %v2474_v27 = vpop.f32.mrb[9].mxu1  ;;  %v2940_v25 = vld [vmem:[#allocation24 + $0x30] sm:$0xff] }
 0x8c8   : > { %v2475_v28 = vadd.f32 %v6029_v24, %v2474_v27 }
 0x8ca   : > { %9341 = vtanh.f32 %v2475_v28  ;;  %v6855_v29 = vpop.f32.mrb[10].mxu1  ;;  %v2942_v28 = vld [vmem:[#allocation24 + $0x40] sm:$0xff] }
 0x8cb   : > { %9343 = vtanh.f32 %v2480_v26  ;;  %v2490_v30 = vadd.f32 %v6855_v29, %v6029_v24  ;;  %v2484_v31 = vpop.f32.mrb[11].mxu1  ;;  %v2941_v26 = vld [vmem:[#allocation24 + $0x38] sm:$0xff]  ;;  %v2943_v29 = vld [vmem:[#allocation24 + $0x48] sm:$0xff] }
 0x8cc   : > { %v2485_v32 = vadd.f32 %v6029_v24, %v2484_v31  ;;  %v8146_v24 = vpack.c.bf16 %v2939_v23, %v2938_v21  ;;  %v8150_v27 = vpack.c.bf16 %v2941_v26, %v2940_v25  ;;  %v2944_v31 = vld [vmem:[#allocation24 + $0x50] sm:$0xff]  ;;  %v3049_v23 = vld [vmem:[#allocation27 + $0x18] sm:$0xff] }
 0x8cd   : > { %9345 = vtanh.f32 %v2490_v30  ;;  %v8154_v30 = vpack.c.bf16 %v2943_v29, %v2942_v28  ;;  %v3048_v21 = vld [vmem:[#allocation27 + $0x10] sm:$0xff] }
 0x8ce   : > { %9347 = vtanh.f32 %v2485_v32  ;;  %v2945_v32 = vld [vmem:[#allocation24 + $0x58] sm:$0xff]  ;;  %v8174_v29 = vpack.c.bf16 %v3049_v23, %v3048_v21 }
 0x8d4   : > { %v9342_v33 = vpop.eup %9341 }
 0x8d5   : > { %v9344_v34 = vpop.eup %9343  ;;  %6888 = vmatprep.mubr.f32.mxu0 %v9342_v33  ;;  %v8158_v33 = vpack.c.bf16 %v2945_v32, %v2944_v31  ;;  %v3050_v31 = vld [vmem:[#allocation27 + $0x20] sm:$0xff]  ;;  %v3051_v32 = vld [vmem:[#allocation27 + $0x28] sm:$0xff] }
 0x8d6   : > { %6889 = vmatmul.mubr.f32.vlgmr.msra.gmra.mrb[4].mxu0 %v9344_v34  ;;  %v2946_v34 = vld [vmem:[#allocation24 + $0x60] sm:$0xff] }
 0x8d7   : > { %v9346_v35 = vpop.eup %9345  ;;  %8077 = vmatpush3.bf16.msra.mxu0 %v8074_v43  ;;  %v2720_v43 = vld [vmem:[#allocation21 + $0x18] sm:$0xff] }
 0x8d8   : > { %v9348_v36 = vpop.eup %9347  ;;  %8079 = vmatprep.subr.bf16.mxu0 %v8078_v45  ;;  %v8110_v49 = vpack.c.bf16 %v2720_v43, %v2719_v42  ;;  %v3056_v42 = vld [vmem:[#allocation27 + $0x50] sm:$0xff]  ;;  %v3057_v43 = vld [vmem:[#allocation27 + $0x58] sm:$0xff] }
 0x8d9   : > { %6891 = vmatprep.mubr.f32.mxu0 %v9348_v36 }
 0x8da   : > { %6892 = vmatmul.mubr.f32.gmra.mrb[6].mxu0 %v9346_v35  ;;  %v2947_v35 = vld [vmem:[#allocation24 + $0x68] sm:$0xff] }
 0x8db   : > { %8081 = vmatpush3.bf16.msra.mxu0 %v8078_v45  ;;  %v8162_v36 = vpack.c.bf16 %v2947_v35, %v2946_v34  ;;  %v8178_v35 = vpack.c.bf16 %v3051_v32, %v3050_v31 }
 0x8dc   : > { %8083 = vmatprep.subr.bf16.mxu0 %v8082_v48 }
 0x8df   : > { %8085 = vmatpush3.bf16.msra.mxu0 %v8082_v48 }
 0x8e0   : > { %8087 = vmatprep.subr.bf16.mxu0 %v8086_v51 }
 0x8e3   : > { %8089 = vmatpush3.bf16.msra.mxu0 %v8086_v51  ;;  %v2721_v51 = vld [vmem:[#allocation21 + $0x20] sm:$0xff] }
 0x8e4   : > { %8091 = vmatprep.subr.bf16.mxu0 %v8090_v54  ;;  %v8114_v55 = vpack.c.bf16 %v2722_v52, %v2721_v51  ;;  %v3061_v51 = vld [vmem:[#allocation27 + $0x78] sm:$0xff] }
 0x8e7   : > { %8093 = vmatpush3.bf16.msra.mxu0 %v8090_v54 }
 0x8e8   : > { %8095 = vmatprep.subr.bf16.mxu0 %v8094_v57 }
 0x8eb   : > { %8097 = vmatpush3.bf16.msra.mxu0 %v8094_v57  ;;  %v2724_v57 = vld [vmem:[#allocation21 + $0x38] sm:$0xff] }
 0x8ec   : > { %8099 = vmatprep.subr.bf16.mxu0 %v8098_v60  ;;  %v8118_v58 = vpack.c.bf16 %v2724_v57, %v2723_v56  ;;  %v3283_v56 = vld [vmem:[#allocation33 + $0x88] sm:$0xff] }
 0x8ef   : > { %8101 = vmatpush3.bf16.msra.mxu0 %v8098_v60  ;;  %v2726_v60 = vld [vmem:[#allocation21 + $0x48] sm:$0xff] }
 0x8f0   : > { %8103 = vmatprep.subr.bf16.mxu0 %v8102_v8 }
 0x8f3   : > { %8105 = vmatpush3.bf16.msra.mxu0 %v8102_v8  ;;  %v2949_v8 = vld [vmem:[#allocation24 + $0x78] sm:$0xff] }
 0x8f4   : > { %8107 = vmatprep.subr.bf16.mxu0 %v8106_v11  ;;  %v8166_v9 = vpack.c.bf16 %v2949_v8, %v2948_v7  ;;  %v3163_v7 = vld [vmem:[#allocation30 + $0x48] sm:$0xff] }
 0x9a9   : > { %v6890_v62 = vpop.f32.mrb[4].mxu0 }
 0x9aa   : > { %v2592_v63 = vadd.f32 %v6890_v62, %v6030_v61  ;;  %v2586_v0 = vpop.f32.mrb[5].mxu0  ;;  %v2727_v62 = vld [vmem:[#allocation21 + $0x50] sm:$0xff] }
 0x9ab   : > { %v2587_v1 = vadd.f32 %v6030_v61, %v2586_v0 }
 0x9ac   : > { %5432 = vst [vmem:[%s11617_s8 + $0x28] sm:$0xff] %v2592_v63 }
 0x9ad   : > { %5431 = vst [vmem:[%s11617_s8] sm:$0xff] %v2587_v1  ;;  %v6893_v2 = vpop.f32.mrb[6].mxu0  ;;  %6926 = vmatprep.mubr.f32.mxu1 %v2587_v1  ;;  %v2729_v1 = vld [vmem:[#allocation21 + $0x60] sm:$0xff] }
 0x9ae   : > { %v2602_v3 = vadd.f32 %v6893_v2, %v6030_v61  ;;  %v2596_v4 = vpop.f32.mrb[7].mxu0  ;;  %6927 = vmatmul.mubr.f32.vlgmr.msra.gmra.mrb[12].mxu1 %v2592_v63  ;;  %v2728_v63 = vld [vmem:[#allocation21 + $0x58] sm:$0xff]  ;;  %v2730_v2 = vld [vmem:[#allocation21 + $0x68] sm:$0xff] }
 0x9af   : > { %v2597_v5 = vadd.f32 %v6030_v61, %v2596_v4  ;;  %8141 = vmatpush3.bf16.msra.mxu1 %v8138_v15  ;;  %v8122_v61 = vpack.c.bf16 %v2726_v60, %v2725_v59  ;;  %v8126_v0 = vpack.c.bf16 %v2728_v63, %v2727_v62  ;;  %v2731_v4 = vld [vmem:[#allocation21 + $0x70] sm:$0xff]  ;;  %v3157_v62 = vld [vmem:[#allocation30 + $0x18] sm:$0xff] }
 0x9b0   : > { %5434 = vst [vmem:[%s11617_s8 + $0x78] sm:$0xff] %v2602_v3  ;;  %8143 = vmatprep.subr.bf16.mxu1 %v8142_v19  ;;  %v3155_v59 = vld [vmem:[#allocation30 + $0x8] sm:$0xff]  ;;  %v3156_v60 = vld [vmem:[#allocation30 + $0x10] sm:$0xff] }
 0x9b1   : > { %5433 = vst [vmem:[%s11617_s8 + $0x50] sm:$0xff] %v2597_v5  ;;  %6929 = vmatprep.mubr.f32.mxu1 %v2597_v5  ;;  %v2732_v5 = vld [vmem:[#allocation21 + $0x78] sm:$0xff]  ;;  %v8206_v63 = vpack.c.bf16 %v3157_v62, %v3156_v60 }
 0x9b2   : > { %6930 = vmatmul.mubr.f32.gmra.mrb[14].mxu1 %v2602_v3  ;;  %v8130_v3 = vpack.c.bf16 %v2730_v2, %v2729_v1  ;;  %v8134_v6 = vpack.c.bf16 %v2732_v5, %v2731_v4  ;;  %v3159_v1 = vld [vmem:[#allocation30 + $0x28] sm:$0xff]  ;;  %v3161_v4 = vld [vmem:[#allocation30 + $0x38] sm:$0xff] }
 0x9b3   : > { %8145 = vmatpush3.bf16.msra.mxu1 %v8142_v19  ;;  %v3268_v60 = vld [vmem:[#allocation33 + $0x10] sm:$0xff] }
 0x9b4   : > { %8147 = vmatprep.subr.bf16.mxu1 %v8146_v24 }
 0x9b7   : > { %8149 = vmatpush3.bf16.msra.mxu1 %v8146_v24 }
 0x9b8   : > { %8151 = vmatprep.subr.bf16.mxu1 %v8150_v27 }
 0x9bb   : > { %8153 = vmatpush3.bf16.msra.mxu1 %v8150_v27 }
 0x9bc   : > { %8155 = vmatprep.subr.bf16.mxu1 %v8154_v30 }
 0x9bf   : > { %8157 = vmatpush3.bf16.msra.mxu1 %v8154_v30 }
 0x9c0   : > { %8159 = vmatprep.subr.bf16.mxu1 %v8158_v33 }
 0x9c3   : > { %8161 = vmatpush3.bf16.msra.mxu1 %v8158_v33 }
 0x9c4   : > { %8163 = vmatprep.subr.bf16.mxu1 %v8162_v36 }
 0x9c7   : > { %8165 = vmatpush3.bf16.msra.mxu1 %v8162_v36  ;;  %v3052_v36 = vld [vmem:[#allocation27 + $0x30] sm:$0xff] }
 0x9c8   : > { %8167 = vmatprep.subr.bf16.mxu1 %v8166_v9 }
 0x9cb   : > { %8169 = vmatpush3.bf16.msra.mxu1 %v8166_v9  ;;  %v3164_v9 = vld [vmem:[#allocation30 + $0x50] sm:$0xff] }
 0xa81   : > { %v6928_v38 = vpop.f32.mrb[12].mxu1 }
 0xa82   : > { %v2700_v39 = vadd.f32 %v6928_v38, %v6031_v37  ;;  %v2694_v40 = vpop.f32.mrb[13].mxu1 }
 0xa83   : > { %v2695_v41 = vadd.f32 %v6031_v37, %v2694_v40  ;;  %v3055_v40 = vld [vmem:[#allocation27 + $0x48] sm:$0xff] }
 0xa84   : > { %v11655_v46 = vmax.f32 %v2700_v39, 0.0  ;;  %v3054_v39 = vld [vmem:[#allocation27 + $0x40] sm:$0xff] }
 0xa85   : > { %v11653_v44 = vmax.f32 %v2695_v41, 0.0  ;;  %v6931_v45 = vpop.f32.mrb[14].mxu1  ;;  %v8186_v41 = vpack.c.bf16 %v3055_v40, %v3054_v39  ;;  %v3289_v39 = vld [vmem:[#allocation33 + $0xb8] sm:$0xff] }
 0xa86   : > { %v2710_v47 = vadd.f32 %v6931_v45, %v6031_v37  ;;  %v2704_v48 = vpop.f32.mrb[15].mxu1  ;;  %v8190_v45 = vpack.c.bf16 %v3057_v43, %v3056_v42  ;;  %v3291_v42 = vld [vmem:[#allocation33 + $0xc8] sm:$0xff] }
 0xa87   : > { %v2705_v50 = vadd.f32 %v6031_v37, %v2704_v48  ;;  %6964 = vmatprep.mubr.f32.mxu0 %v11653_v44  ;;  %v3053_v37 = vld [vmem:[#allocation27 + $0x38] sm:$0xff]  ;;  %v3059_v48 = vld [vmem:[#allocation27 + $0x68] sm:$0xff] }
 0xa88   : > { %v11658_v53 = vmax.f32 %v2710_v47, 0.0  ;;  %6965 = vmatmul.mubr.f32.vlgmr.msra.gmra.mrb[8].mxu0 %v11655_v46  ;;  %v8182_v38 = vpack.c.bf16 %v3053_v37, %v3052_v36  ;;  %v3058_v47 = vld [vmem:[#allocation27 + $0x60] sm:$0xff] }
 0xa89   : > { %v11661_v54 = vmax.f32 %v2705_v50, 0.0  ;;  %8109 = vmatpush3.bf16.msra.mxu0 %v8106_v11  ;;  %v3047_v11 = vld [vmem:[#allocation27 + $0x8] sm:$0xff]  ;;  %v3060_v50 = vld [vmem:[#allocation27 + $0x70] sm:$0xff] }
 0xa8a   : > { %8111 = vmatprep.subr.bf16.mxu0 %v8110_v49  ;;  %v8170_v12 = vpack.c.bf16 %v3047_v11, %v3046_v10  ;;  %v8198_v52 = vpack.c.bf16 %v3061_v51, %v3060_v50  ;;  %v3165_v10 = vld [vmem:[#allocation30 + $0x58] sm:$0xff]  ;;  %v3295_v50 = vld [vmem:[#allocation33 + $0xe8] sm:$0xff] }
 0xa8b   : > { %6967 = vmatprep.mubr.f32.mxu0 %v11661_v54  ;;  %v8222_v11 = vpack.c.bf16 %v3165_v10, %v3164_v9  ;;  %v3277_v9 = vld [vmem:[#allocation33 + $0x58] sm:$0xff] }
 0xa8c   : > { %6968 = vmatmul.mubr.f32.gmra.mrb[10].mxu0 %v11658_v53  ;;  %8171 = vmatprep.subr.bf16.mxu1 %v8170_v12 }
 0xa8d   : > { %8113 = vmatpush3.bf16.msra.mxu0 %v8110_v49  ;;  %7002 = vmatprep.mubr.f32.mxu0 %v11636_v17  ;;  %v8194_v49 = vpack.c.bf16 %v3059_v48, %v3058_v47  ;;  %v3293_v47 = vld [vmem:[#allocation33 + $0xd8] sm:$0xff] }
 0xa8e   : > { %8115 = vmatprep.subr.bf16.mxu0 %v8114_v55 }
 0xa91   : > { %8117 = vmatpush3.bf16.msra.mxu0 %v8114_v55  ;;  %v3282_v55 = vld [vmem:[#allocation33 + $0x80] sm:$0xff] }
 0xa92   : > { %8119 = vmatprep.subr.bf16.mxu0 %v8118_v58  ;;  %v8234_v57 = vpack.c.bf16 %v3283_v56, %v3282_v55  ;;  %v3297_v55 = vld [vmem:[#allocation33 + $0xf8] sm:$0xff] }
 0xa95   : > { %8121 = vmatpush3.bf16.msra.mxu0 %v8118_v58  ;;  %v3154_v58 = vld [vmem:[#allocation30] sm:$0xff] }
 0xa96   : > { %8123 = vmatprep.subr.bf16.mxu0 %v8122_v61 }
 0xa99   : > { %8125 = vmatpush3.bf16.msra.mxu0 %v8122_v61  ;;  %v8202_v61 = vpack.c.bf16 %v3155_v59, %v3154_v58  ;;  %v3267_v58 = vld [vmem:[#allocation33 + $0x8] sm:$0xff] }
 0xa9a   : > { %8127 = vmatprep.subr.bf16.mxu0 %v8126_v0 }
 0xa9d   : > { %8129 = vmatpush3.bf16.msra.mxu0 %v8126_v0  ;;  %v3158_v0 = vld [vmem:[#allocation30 + $0x20] sm:$0xff] }
 0xa9e   : > { %8131 = vmatprep.subr.bf16.mxu0 %v8130_v3  ;;  %v8210_v2 = vpack.c.bf16 %v3159_v1, %v3158_v0  ;;  %v3271_v0 = vld [vmem:[#allocation33 + $0x28] sm:$0xff] }
 0xaa1   : > { %8133 = vmatpush3.bf16.msra.mxu0 %v8130_v3  ;;  %v3160_v3 = vld [vmem:[#allocation30 + $0x30] sm:$0xff] }
 0xaa2   : > { %8135 = vmatprep.subr.bf16.mxu0 %v8134_v6  ;;  %v8214_v5 = vpack.c.bf16 %v3161_v4, %v3160_v3  ;;  %v3273_v3 = vld [vmem:[#allocation33 + $0x38] sm:$0xff] }
 0xaa5   : > { %8137 = vmatpush3.bf16.msra.mxu0 %v8134_v6  ;;  %v3162_v6 = vld [vmem:[#allocation30 + $0x40] sm:$0xff] }
 0xaa6   : > { %8203 = vmatprep.subr.bf16.mxu0 %v8202_v61  ;;  %v8218_v8 = vpack.c.bf16 %v3163_v7, %v3162_v6  ;;  %v3275_v6 = vld [vmem:[#allocation33 + $0x48] sm:$0xff] }
 0xaa8   : > { %7003 = vmatmul.mubr.f32.vlgmr.msra.gmra.mrb[8].mxu0 %v11638_v18 }
 0xaa9   : > { %7005 = vmatprep.mubr.f32.mxu0 %v11644_v22  ;;  %8205 = vmatpush3.bf16.msra.mxu0 %v8202_v61  ;;  %v3269_v61 = vld [vmem:[#allocation33 + $0x18] sm:$0xff] }
 0xaaa   : > { %8207 = vmatprep.subr.bf16.mxu0 %v8206_v63  ;;  %v8270_v62 = vpack.c.bf16 %v3269_v61, %v3268_v60  ;;  %v3936_v61 = vld [vmem:[#allocation45 + $0x80] sm:$0xff] }
 0xaac   : > { %7006 = vmatmul.mubr.f32.gmra.mrb[10].mxu0 %v11641_v20 }
 0xaad   : > { %8209 = vmatpush3.bf16.msra.mxu0 %v8206_v63  ;;  %v3270_v63 = vld [vmem:[#allocation33 + $0x20] sm:$0xff] }
 0xaae   : > { %8211 = vmatprep.subr.bf16.mxu0 %v8210_v2  ;;  %v8274_v1 = vpack.c.bf16 %v3271_v0, %v3270_v63  ;;  %v3588_v0 = vld [vmem:[#allocation36] sm:$0xff] }
 0xab1   : > { %8213 = vmatpush3.bf16.msra.mxu0 %v8210_v2  ;;  %v3272_v2 = vld [vmem:[#allocation33 + $0x30] sm:$0xff] }
 0xab2   : > { %8215 = vmatprep.subr.bf16.mxu0 %v8214_v5  ;;  %v8278_v4 = vpack.c.bf16 %v3273_v3, %v3272_v2  ;;  %v3590_v2 = vld [vmem:[#allocation36 + $0x10] sm:$0xff] }
 0xab5   : > { %8217 = vmatpush3.bf16.msra.mxu0 %v8214_v5  ;;  %v3274_v5 = vld [vmem:[#allocation33 + $0x40] sm:$0xff] }
 0xab6   : > { %8219 = vmatprep.subr.bf16.mxu0 %v8218_v8  ;;  %v8282_v7 = vpack.c.bf16 %v3275_v6, %v3274_v5  ;;  %v3592_v6 = vld [vmem:[#allocation36 + $0x20] sm:$0xff] }
 0xab9   : > { %8221 = vmatpush3.bf16.msra.mxu0 %v8218_v8  ;;  %v3276_v8 = vld [vmem:[#allocation33 + $0x50] sm:$0xff] }
 0xaba   : > { %8223 = vmatprep.subr.bf16.mxu0 %v8222_v11  ;;  %v8286_v10 = vpack.c.bf16 %v3277_v9, %v3276_v8  ;;  %v3594_v9 = vld [vmem:[#allocation36 + $0x30] sm:$0xff] }
 0xabd   : > { %8225 = vmatpush3.bf16.msra.mxu0 %v8222_v11  ;;  %v3278_v11 = vld [vmem:[#allocation33 + $0x60] sm:$0xff] }
 0xb7b   : > { %v7004_v14 = vpop.f32.mrb[8].mxu0 }
 0xb7c   : > { %v2927_v15 = vadd.f32 %v7004_v14, %v6032_v13  ;;  %v2900_v16 = vpop.f32.mrb[9].mxu0 }
 0xb7d   : > { %v2926_v19 = vadd.f32 %v6032_v13, %v2900_v16 }
 0xb7e   : > { %v2931_v26 = vmax.f32 %v2927_v15, 0.0  ;;  %v6033_v15 = vld [vmem:[#allocation26] ss:$0 sm:$0xff] }
 0xb7f   : > { %v2930_v24 = vmax.f32 %v2926_v19, 0.0  ;;  %v7007_v25 = vpop.f32.mrb[10].mxu0 }
 0xb80   : > { %v2929_v27 = vadd.f32 %v7007_v25, %v6032_v13  ;;  %v2910_v28 = vpop.f32.mrb[11].mxu0 }
 0xb81   : > { %v2928_v30 = vadd.f32 %v6032_v13, %v2910_v28  ;;  %7040 = vmatprep.mubr.f32.mxu1 %v2930_v24  ;;  %v3167_v13 = vld [vmem:[#allocation30 + $0x68] sm:$0xff]  ;;  %v3284_v28 = vld [vmem:[#allocation33 + $0x90] sm:$0xff] }
 0xb82   : > { %7041 = vmatmul.mubr.f32.vlgmr.msra.gmra.mrb[16].mxu1 %v2931_v26  ;;  %v2933_v34 = vmax.f32 %v2929_v27, 0.0 }
 0xb83   : > { %v2932_v33 = vmax.f32 %v2928_v30, 0.0  ;;  %8173 = vmatpush3.bf16.msra.mxu1 %v8170_v12  ;;  %v3166_v12 = vld [vmem:[#allocation30 + $0x60] sm:$0xff] }
 0xb84   : > { %8175 = vmatprep.subr.bf16.mxu1 %v8174_v29  ;;  %v8226_v14 = vpack.c.bf16 %v3167_v13, %v3166_v12  ;;  %v3279_v12 = vld [vmem:[#allocation33 + $0x68] sm:$0xff] }
 0xb85   : > { %7043 = vmatprep.mubr.f32.mxu1 %v2932_v33  ;;  %v3286_v33 = vld [vmem:[#allocation33 + $0xa0] sm:$0xff]  ;;  %v8290_v13 = vpack.c.bf16 %v3279_v12, %v3278_v11 }
 0xb86   : > { %7044 = vmatmul.mubr.f32.gmra.mrb[18].mxu1 %v2933_v34  ;;  %8227 = vmatprep.subr.bf16.mxu0 %v8226_v14  ;;  %v3287_v34 = vld [vmem:[#allocation33 + $0xa8] sm:$0xff] }
 0xb87   : > { %8177 = vmatpush3.bf16.msra.mxu1 %v8174_v29  ;;  %8229 = vmatpush3.bf16.msra.mxu0 %v8226_v14  ;;  %v3285_v29 = vld [vmem:[#allocation33 + $0x98] sm:$0xff]  ;;  %v8242_v36 = vpack.c.bf16 %v3287_v34, %v3286_v33  ;;  %v3280_v14 = vld [vmem:[#allocation33 + $0x70] sm:$0xff]  ;;  %v3596_v12 = vld [vmem:[#allocation36 + $0x40] sm:$0xff] }
 0xb88   : > { %8179 = vmatprep.subr.bf16.mxu1 %v8178_v35  ;;  %v8238_v31 = vpack.c.bf16 %v3285_v29, %v3284_v28  ;;  %v3471_v28 = vld [vmem:[#allocation33 + $0x118] sm:$0xff]  ;;  %v3474_v33 = vld [vmem:[#allocation33 + $0x130] sm:$0xff] }
 0xb89   : > { %v3475_v34 = vld [vmem:[#allocation33 + $0x138] sm:$0xff] }
 0xb8b   : > { %8181 = vmatpush3.bf16.msra.mxu1 %v8178_v35 }
 0xb8c   : > { %8183 = vmatprep.subr.bf16.mxu1 %v8182_v38 }
 0xb8f   : > { %8185 = vmatpush3.bf16.msra.mxu1 %v8182_v38  ;;  %v3288_v38 = vld [vmem:[#allocation33 + $0xb0] sm:$0xff] }
 0xb90   : > { %8187 = vmatprep.subr.bf16.mxu1 %v8186_v41  ;;  %v8246_v40 = vpack.c.bf16 %v3289_v39, %v3288_v38  ;;  %v3478_v39 = vld [vmem:[#allocation33 + $0x150] sm:$0xff] }
 0xb93   : > { %8189 = vmatpush3.bf16.msra.mxu1 %v8186_v41  ;;  %v3290_v41 = vld [vmem:[#allocation33 + $0xc0] sm:$0xff] }
 0xb94   : > { %8191 = vmatprep.subr.bf16.mxu1 %v8190_v45  ;;  %v8250_v43 = vpack.c.bf16 %v3291_v42, %v3290_v41  ;;  %v3480_v42 = vld [vmem:[#allocation33 + $0x160] sm:$0xff] }
 0xb97   : > { %8193 = vmatpush3.bf16.msra.mxu1 %v8190_v45  ;;  %v3292_v45 = vld [vmem:[#allocation33 + $0xd0] sm:$0xff] }
 0xb98   : > { %8195 = vmatprep.subr.bf16.mxu1 %v8194_v49  ;;  %v8254_v48 = vpack.c.bf16 %v3293_v47, %v3292_v45  ;;  %v6034_v47 = vld [vmem:[#allocation29] ss:$0 sm:$0xff] }
 0xb9b   : > { %8197 = vmatpush3.bf16.msra.mxu1 %v8194_v49  ;;  %v3294_v49 = vld [vmem:[#allocation33 + $0xe0] sm:$0xff] }
 0xb9c   : > { %8199 = vmatprep.subr.bf16.mxu1 %v8198_v52  ;;  %v8258_v51 = vpack.c.bf16 %v3295_v50, %v3294_v49 }
 0xb9f   : > { %8201 = vmatpush3.bf16.msra.mxu1 %v8198_v52  ;;  %v3296_v52 = vld [vmem:[#allocation33 + $0xf0] sm:$0xff] }
 0xba0   : > { %8235 = vmatprep.subr.bf16.mxu1 %v8234_v57  ;;  %v8262_v56 = vpack.c.bf16 %v3297_v55, %v3296_v52 }
 0xc55   : > { %v7042_v16 = vpop.f32.mrb[16].mxu1 }
 0xc56   : > { %v3029_v19 = vadd.f32 %v7042_v16, %v6033_v15  ;;  %v3023_v21 = vpop.f32.mrb[17].mxu1 }
 0xc57   : > { %v3024_v23 = vadd.f32 %v6033_v15, %v3023_v21  ;;  %v3169_v21 = vld [vmem:[#allocation30 + $0x78] sm:$0xff] }
 0xc59   : > { %9349 = vtanh.f32 %v3024_v23  ;;  %v7045_v24 = vpop.f32.mrb[18].mxu1 }
 0xc5a   : > { %9351 = vtanh.f32 %v3029_v19  ;;  %v3039_v25 = vadd.f32 %v7045_v24, %v6033_v15  ;;  %v3033_v26 = vpop.f32.mrb[19].mxu1  ;;  %v3168_v19 = vld [vmem:[#allocation30 + $0x70] sm:$0xff]  ;;  %v3468_v24 = vld [vmem:[#allocation33 + $0x100] sm:$0xff] }
 0xc5b   : > { %v3034_v27 = vadd.f32 %v6033_v15, %v3033_v26  ;;  %v3281_v15 = vld [vmem:[#allocation33 + $0x78] sm:$0xff]  ;;  %v8230_v23 = vpack.c.bf16 %v3169_v21, %v3168_v19  ;;  %v3470_v26 = vld [vmem:[#allocation33 + $0x110] sm:$0xff]  ;;  %v3600_v21 = vld [vmem:[#allocation36 + $0x60] sm:$0xff] }
 0xc5c   : > { %v8294_v16 = vpack.c.bf16 %v3281_v15, %v3280_v14  ;;  %v8302_v29 = vpack.c.bf16 %v3471_v28, %v3470_v26  ;;  %v3598_v15 = vld [vmem:[#allocation36 + $0x50] sm:$0xff] }
 0xc5d   : > { %9353 = vtanh.f32 %v3034_v27  ;;  %8231 = vmatprep.subr.bf16.mxu0 %v8230_v23 }
 0xc5e   : > { %9355 = vtanh.f32 %v3039_v25  ;;  %8233 = vmatpush3.bf16.msra.mxu0 %v8230_v23  ;;  %v3469_v25 = vld [vmem:[#allocation33 + $0x108] sm:$0xff] }
 0xc5f   : > { %v8298_v27 = vpack.c.bf16 %v3469_v25, %v3468_v24  ;;  %v3601_v23 = vld [vmem:[#allocation36 + $0x68] sm:$0xff]  ;;  %v6035_v24 = vld [vmem:[#allocation32] ss:$0 sm:$0xff] }
 0xc60   : > { %v8354_v26 = vpack.c.bf16 %v3601_v23, %v3600_v21  ;;  %v3933_v21 = vld [vmem:[#allocation45 + $0x68] sm:$0xff] }
 0xc63   : > { %v9350_v30 = vpop.eup %9349 }
 0xc64   : > { %v9352_v32 = vpop.eup %9351  ;;  %7078 = vmatprep.mubr.f32.mxu1 %v9350_v30  ;;  %v3472_v30 = vld [vmem:[#allocation33 + $0x120] sm:$0xff] }
 0xc65   : > { %7079 = vmatmul.mubr.f32.vlgmr.msra.gmra.mrb[20].mxu1 %v9352_v32 }
 0xc66   : > { %8237 = vmatpush3.bf16.msra.mxu1 %v8234_v57  ;;  %v3266_v57 = vld [vmem:[#allocation33] sm:$0xff] }
 0xc67   : > { %v9354_v35 = vpop.eup %9353  ;;  %8239 = vmatprep.subr.bf16.mxu1 %v8238_v31  ;;  %v8266_v59 = vpack.c.bf16 %v3267_v58, %v3266_v57  ;;  %v3482_v58 = vld [vmem:[#allocation33 + $0x170] sm:$0xff] }
 0xc68   : > { %v9356_v37 = vpop.eup %9355  ;;  %7081 = vmatprep.mubr.f32.mxu1 %v9354_v35  ;;  %v8310_v35 = vpack.c.bf16 %v3475_v34, %v3474_v33 }
 0xc69   : > { %7082 = vmatmul.mubr.f32.gmra.mrb[22].mxu1 %v9356_v37  ;;  %v3477_v37 = vld [vmem:[#allocation33 + $0x148] sm:$0xff] }
 0xc6a   : > { %8241 = vmatpush3.bf16.msra.mxu1 %v8238_v31  ;;  %7154 = vmatprep.mubr.f32.mxu1 %v11653_v44  ;;  %v3473_v31 = vld [vmem:[#allocation33 + $0x128] sm:$0xff] }
 0xc6b   : > { %8243 = vmatprep.subr.bf16.mxu1 %v8242_v36  ;;  %v8306_v32 = vpack.c.bf16 %v3473_v31, %v3472_v30  ;;  %v3938_v30 = vld [vmem:[#allocation45 + $0x90] sm:$0xff]  ;;  %v3939_v31 = vld [vmem:[#allocation45 + $0x98] sm:$0xff] }
 0xc6e   : > { %8245 = vmatpush3.bf16.msra.mxu1 %v8242_v36  ;;  %v3476_v36 = vld [vmem:[#allocation33 + $0x140] sm:$0xff] }
 0xc6f   : > { %8247 = vmatprep.subr.bf16.mxu1 %v8246_v40  ;;  %v8314_v38 = vpack.c.bf16 %v3477_v37, %v3476_v36  ;;  %v8430_v37 = vpack.c.bf16 %v3939_v31, %v3938_v30  ;;  %v4124_v30 = vld [vmem:[#allocation45 + $0x110] sm:$0xff]  ;;  %v4125_v31 = vld [vmem:[#allocation45 + $0x118] sm:$0xff] }
 0xc72   : > { %8249 = vmatpush3.bf16.msra.mxu1 %v8246_v40  ;;  %v3479_v40 = vld [vmem:[#allocation33 + $0x158] sm:$0xff] }
 0xc73   : > { %8251 = vmatprep.subr.bf16.mxu1 %v8250_v43  ;;  %v8318_v41 = vpack.c.bf16 %v3479_v40, %v3478_v39  ;;  %v3940_v39 = vld [vmem:[#allocation45 + $0xa0] sm:$0xff]  ;;  %v3941_v40 = vld [vmem:[#allocation45 + $0xa8] sm:$0xff] }
 0xc76   : > { %8253 = vmatpush3.bf16.msra.mxu1 %v8250_v43  ;;  %v3481_v43 = vld [vmem:[#allocation33 + $0x168] sm:$0xff] }
 0xc77   : > { %8255 = vmatprep.subr.bf16.mxu1 %v8254_v48  ;;  %v8322_v45 = vpack.c.bf16 %v3481_v43, %v3480_v42  ;;  %v8434_v43 = vpack.c.bf16 %v3941_v40, %v3940_v39  ;;  %v4129_v39 = vld [vmem:[#allocation45 + $0x138] sm:$0xff] }
 0xc7a   : > { %8257 = vmatpush3.bf16.msra.mxu1 %v8254_v48 }
 0xc7b   : > { %8259 = vmatprep.subr.bf16.mxu1 %v8258_v51 }
 0xc7e   : > { %8261 = vmatpush3.bf16.msra.mxu1 %v8258_v51 }
 0xc7f   : > { %8263 = vmatprep.subr.bf16.mxu1 %v8262_v56 }
 0xc82   : > { %8265 = vmatpush3.bf16.msra.mxu1 %v8262_v56 }
 0xc83   : > { %8267 = vmatprep.subr.bf16.mxu1 %v8266_v59 }
 0xc85   : > { %7155 = vmatmul.mubr.f32.vlgmr.msra.gmra.mrb[24].mxu1 %v11655_v46 }
 0xc86   : > { %7157 = vmatprep.mubr.f32.mxu1 %v11661_v54  ;;  %8269 = vmatpush3.bf16.msra.mxu1 %v8266_v59  ;;  %v3483_v59 = vld [vmem:[#allocation33 + $0x178] sm:$0xff] }
 0xc87   : > { %8271 = vmatprep.subr.bf16.mxu1 %v8270_v62  ;;  %v8326_v60 = vpack.c.bf16 %v3483_v59, %v3482_v58  ;;  %v3949_v58 = vld [vmem:[#allocation45 + $0xe8] sm:$0xff] }
 0xc89   : > { %7158 = vmatmul.mubr.f32.gmra.mrb[26].mxu1 %v11658_v53 }
 0xc8a   : > { %8273 = vmatpush3.bf16.msra.mxu1 %v8270_v62  ;;  %7192 = vmatprep.mubr.f32.mxu1 %v11636_v17  ;;  %v3937_v62 = vld [vmem:[#allocation45 + $0x88] sm:$0xff] }
 0xc8b   : > { %8275 = vmatprep.subr.bf16.mxu1 %v8274_v1  ;;  %v8426_v63 = vpack.c.bf16 %v3937_v62, %v3936_v61  ;;  %v3951_v61 = vld [vmem:[#allocation45 + $0xf8] sm:$0xff] }
 0xc8e   : > { %8277 = vmatpush3.bf16.msra.mxu1 %v8274_v1  ;;  %v3589_v1 = vld [vmem:[#allocation36 + $0x8] sm:$0xff] }
 0xc8f   : > { %8279 = vmatprep.subr.bf16.mxu1 %v8278_v4  ;;  %v8330_v3 = vpack.c.bf16 %v3589_v1, %v3588_v0  ;;  %v3921_v0 = vld [vmem:[#allocation45 + $0x8] sm:$0xff] }
 0xc91   : > { %8331 = vmatprep.subr.bf16.mxu0 %v8330_v3 }
 0xc92   : > { %8281 = vmatpush3.bf16.msra.mxu1 %v8278_v4  ;;  %v3591_v4 = vld [vmem:[#allocation36 + $0x18] sm:$0xff] }
 0xc93   : > { %8283 = vmatprep.subr.bf16.mxu1 %v8282_v7  ;;  %v8334_v5 = vpack.c.bf16 %v3591_v4, %v3590_v2  ;;  %v3922_v2 = vld [vmem:[#allocation45 + $0x10] sm:$0xff] }
 0xc96   : > { %8285 = vmatpush3.bf16.msra.mxu1 %v8282_v7  ;;  %v3593_v7 = vld [vmem:[#allocation36 + $0x28] sm:$0xff] }
 0xc97   : > { %8287 = vmatprep.subr.bf16.mxu1 %v8286_v10  ;;  %v8338_v8 = vpack.c.bf16 %v3593_v7, %v3592_v6  ;;  %v3925_v6 = vld [vmem:[#allocation45 + $0x28] sm:$0xff] }
 0xc9a   : > { %8289 = vmatpush3.bf16.msra.mxu1 %v8286_v10  ;;  %v3595_v10 = vld [vmem:[#allocation36 + $0x38] sm:$0xff] }
 0xc9b   : > { %8291 = vmatprep.subr.bf16.mxu1 %v8290_v13  ;;  %v8342_v11 = vpack.c.bf16 %v3595_v10, %v3594_v9  ;;  %v3927_v9 = vld [vmem:[#allocation45 + $0x38] sm:$0xff] }
 0xc9e   : > { %8293 = vmatpush3.bf16.msra.mxu1 %v8290_v13  ;;  %v3597_v13 = vld [vmem:[#allocation36 + $0x48] sm:$0xff] }
 0xc9f   : > { %8295 = vmatprep.subr.bf16.mxu1 %v8294_v16  ;;  %v8346_v14 = vpack.c.bf16 %v3597_v13, %v3596_v12  ;;  %v3929_v12 = vld [vmem:[#allocation45 + $0x48] sm:$0xff] }
 0xca2   : > { %8297 = vmatpush3.bf16.msra.mxu1 %v8294_v16  ;;  %v3599_v16 = vld [vmem:[#allocation36 + $0x58] sm:$0xff] }
 0xca3   : > { %8299 = vmatprep.subr.bf16.mxu1 %v8298_v27  ;;  %v8350_v19 = vpack.c.bf16 %v3599_v16, %v3598_v15  ;;  %v3931_v15 = vld [vmem:[#allocation45 + $0x58] sm:$0xff] }
 0xca5   : > { %7193 = vmatmul.mubr.f32.vlgmr.msra.gmra.mrb[24].mxu1 %v11638_v18 }
 0xca6   : > { %7195 = vmatprep.mubr.f32.mxu1 %v11644_v22  ;;  %8301 = vmatpush3.bf16.msra.mxu1 %v8298_v27 }
 0xca7   : > { %8303 = vmatprep.subr.bf16.mxu1 %v8302_v29 }
 0xca9   : > { %7196 = vmatmul.mubr.f32.gmra.mrb[26].mxu1 %v11641_v20 }
 0xcaa   : > { %8305 = vmatpush3.bf16.msra.mxu1 %v8302_v29 }
 0xcab   : > { %8307 = vmatprep.subr.bf16.mxu1 %v8306_v32 }
 0xcae   : > { %8309 = vmatpush3.bf16.msra.mxu1 %v8306_v32 }
 0xcaf   : > { %8311 = vmatprep.subr.bf16.mxu1 %v8310_v35 }
 0xcb2   : > { %8313 = vmatpush3.bf16.msra.mxu1 %v8310_v35 }
 0xcb3   : > { %8315 = vmatprep.subr.bf16.mxu1 %v8314_v38 }
 0xcb6   : > { %8317 = vmatpush3.bf16.msra.mxu1 %v8314_v38 }
 0xcb7   : > { %8319 = vmatprep.subr.bf16.mxu1 %v8318_v41 }
 0xcba   : > { %8321 = vmatpush3.bf16.msra.mxu1 %v8318_v41 }
 0xcbb   : > { %8323 = vmatprep.subr.bf16.mxu1 %v8322_v45 }
 0xcbe   : > { %8325 = vmatpush3.bf16.msra.mxu1 %v8322_v45  ;;  %v3942_v45 = vld [vmem:[#allocation45 + $0xb0] sm:$0xff] }
 0xcbf   : > { %8327 = vmatprep.subr.bf16.mxu1 %v8326_v60 }
 0xcc2   : > { %8329 = vmatpush3.bf16.msra.mxu1 %v8326_v60  ;;  %v3950_v60 = vld [vmem:[#allocation45 + $0xf0] sm:$0xff] }
 0xcc3   : > { %8427 = vmatprep.subr.bf16.mxu1 %v8426_v63  ;;  %v8454_v62 = vpack.c.bf16 %v3951_v61, %v3950_v60 }
 0xd38   : > { %v7080_v48 = vpop.f32.mrb[20].mxu1 }
 0xd39   : > { %v3141_v49 = vadd.f32 %v7080_v48, %v6034_v47  ;;  %v3135_v50 = vpop.f32.mrb[21].mxu1 }
 0xd3a   : > { %v3136_v51 = vadd.f32 %v6034_v47, %v3135_v50  ;;  %v3945_v50 = vld [vmem:[#allocation45 + $0xc8] sm:$0xff] }
 0xd3b   : > { %5436 = vst [vmem:[%s11617_s8 + $0x30] sm:$0xff] %v3141_v49 }
 0xd3c   : > { %5435 = vst [vmem:[%s11617_s8 + $0x8] sm:$0xff] %v3136_v51  ;;  %v7083_v52 = vpop.f32.mrb[22].mxu1  ;;  %7116 = vmatprep.mubr.f32.mxu0 %v3136_v51 }
 0xd3d   : > { %v3151_v55 = vadd.f32 %v7083_v52, %v6034_v47  ;;  %v3145_v56 = vpop.f32.mrb[23].mxu1  ;;  %7117 = vmatmul.mubr.f32.vlgmr.msra.gmra.mrb[12].mxu0 %v3141_v49  ;;  %v3944_v49 = vld [vmem:[#allocation45 + $0xc0] sm:$0xff]  ;;  %v3946_v52 = vld [vmem:[#allocation45 + $0xd0] sm:$0xff] }
 0xd3e   : > { %v3146_v57 = vadd.f32 %v6034_v47, %v3145_v56  ;;  %8333 = vmatpush3.bf16.msra.mxu0 %v8330_v3  ;;  %v3943_v47 = vld [vmem:[#allocation45 + $0xb8] sm:$0xff]  ;;  %v8442_v51 = vpack.c.bf16 %v3945_v50, %v3944_v49 }
 0xd3f   : > { %5438 = vst [vmem:[%s11617_s8 + $0x80] sm:$0xff] %v3151_v55  ;;  %8335 = vmatprep.subr.bf16.mxu0 %v8334_v5  ;;  %v8438_v48 = vpack.c.bf16 %v3943_v47, %v3942_v45  ;;  %v3923_v3 = vld [vmem:[#allocation45 + $0x18] sm:$0xff]  ;;  %v4131_v45 = vld [vmem:[#allocation45 + $0x148] sm:$0xff] }
 0xd40   : > { %5437 = vst [vmem:[%s11617_s8 + $0x58] sm:$0xff] %v3146_v57  ;;  %7119 = vmatprep.mubr.f32.mxu0 %v3146_v57  ;;  %v3948_v57 = vld [vmem:[#allocation45 + $0xe0] sm:$0xff]  ;;  %v8462_v4 = vpack.c.bf16 %v3923_v3, %v3922_v2  ;;  %v4133_v49 = vld [vmem:[#allocation45 + $0x158] sm:$0xff] }
 0xd41   : > { %7120 = vmatmul.mubr.f32.gmra.mrb[14].mxu0 %v3151_v55  ;;  %v3947_v55 = vld [vmem:[#allocation45 + $0xd8] sm:$0xff]  ;;  %v8450_v59 = vpack.c.bf16 %v3949_v58, %v3948_v57  ;;  %v3602_v58 = vld [vmem:[#allocation36 + $0x70] sm:$0xff] }
 0xd42   : > { %8337 = vmatpush3.bf16.msra.mxu0 %v8334_v5  ;;  %v8446_v56 = vpack.c.bf16 %v3947_v55, %v3946_v52  ;;  %v3924_v5 = vld [vmem:[#allocation45 + $0x20] sm:$0xff]  ;;  %v4135_v52 = vld [vmem:[#allocation45 + $0x168] sm:$0xff]  ;;  %v4137_v57 = vld [vmem:[#allocation45 + $0x178] sm:$0xff] }
 0xd43   : > { %8339 = vmatprep.subr.bf16.mxu0 %v8338_v8  ;;  %v8466_v7 = vpack.c.bf16 %v3925_v6, %v3924_v5  ;;  %v3702_v6 = vld [vmem:[#allocation39 + $0x10] sm:$0xff] }
 0xd46   : > { %8341 = vmatpush3.bf16.msra.mxu0 %v8338_v8  ;;  %v3926_v8 = vld [vmem:[#allocation45 + $0x30] sm:$0xff] }
 0xd47   : > { %8343 = vmatprep.subr.bf16.mxu0 %v8342_v11  ;;  %v8470_v10 = vpack.c.bf16 %v3927_v9, %v3926_v8 }
 0xd4a   : > { %8345 = vmatpush3.bf16.msra.mxu0 %v8342_v11  ;;  %v3928_v11 = vld [vmem:[#allocation45 + $0x40] sm:$0xff] }
 0xd4b   : > { %8347 = vmatprep.subr.bf16.mxu0 %v8346_v14  ;;  %v8474_v13 = vpack.c.bf16 %v3929_v12, %v3928_v11 }
 0xd4e   : > { %8349 = vmatpush3.bf16.msra.mxu0 %v8346_v14  ;;  %v3930_v14 = vld [vmem:[#allocation45 + $0x50] sm:$0xff] }
 0xd4f   : > { %8351 = vmatprep.subr.bf16.mxu0 %v8350_v19  ;;  %v8478_v16 = vpack.c.bf16 %v3931_v15, %v3930_v14  ;;  %v3704_v15 = vld [vmem:[#allocation39 + $0x20] sm:$0xff] }
 0xd52   : > { %8353 = vmatpush3.bf16.msra.mxu0 %v8350_v19  ;;  %v3932_v19 = vld [vmem:[#allocation45 + $0x60] sm:$0xff] }
 0xd53   : > { %8355 = vmatprep.subr.bf16.mxu0 %v8354_v26  ;;  %v8482_v23 = vpack.c.bf16 %v3933_v21, %v3932_v19 }
 0xd56   : > { %8357 = vmatpush3.bf16.msra.mxu0 %v8354_v26 }
 0xe10   : > { %v7118_v25 = vpop.f32.mrb[12].mxu0 }
 0xe11   : > { %v3249_v27 = vadd.f32 %v7118_v25, %v6035_v24  ;;  %v3243_v28 = vpop.f32.mrb[13].mxu0  ;;  %v3935_v25 = vld [vmem:[#allocation45 + $0x78] sm:$0xff] }
 0xe12   : > { %v3244_v29 = vadd.f32 %v6035_v24, %v3243_v28  ;;  %v4123_v28 = vld [vmem:[#allocation45 + $0x108] sm:$0xff] }
 0xe13   : > { %v11683_v34 = vmax.f32 %v3249_v27, 0.0  ;;  %v4122_v27 = vld [vmem:[#allocation45 + $0x100] sm:$0xff] }
 0xe14   : > { %v11681_v32 = vmax.f32 %v3244_v29, 0.0  ;;  %v7121_v33 = vpop.f32.mrb[14].mxu0  ;;  %v8490_v29 = vpack.c.bf16 %v4123_v28, %v4122_v27  ;;  %v3708_v27 = vld [vmem:[#allocation39 + $0x40] sm:$0xff]  ;;  %v3709_v28 = vld [vmem:[#allocation39 + $0x48] sm:$0xff] }
 0xe15   : > { %v3259_v35 = vadd.f32 %v7121_v33, %v6035_v24  ;;  %v3253_v36 = vpop.f32.mrb[15].mxu0  ;;  %v8494_v33 = vpack.c.bf16 %v4125_v31, %v4124_v30  ;;  %v3710_v30 = vld [vmem:[#allocation39 + $0x50] sm:$0xff]  ;;  %v3711_v31 = vld [vmem:[#allocation39 + $0x58] sm:$0xff] }
 0xe16   : > { %v3254_v38 = vadd.f32 %v6035_v24, %v3253_v36  ;;  %7230 = vmatprep.mubr.f32.mxu1 %v11681_v32  ;;  %v3934_v24 = vld [vmem:[#allocation45 + $0x70] sm:$0xff]  ;;  %v4127_v36 = vld [vmem:[#allocation45 + $0x128] sm:$0xff] }
 0xe17   : > { %7231 = vmatmul.mubr.f32.vlgmr.msra.gmra.mrb[24].mxu1 %v11683_v34  ;;  %v11689_v42 = vmax.f32 %v3259_v35, 0.0  ;;  %v8486_v26 = vpack.c.bf16 %v3935_v25, %v3934_v24  ;;  %v4126_v35 = vld [vmem:[#allocation45 + $0x120] sm:$0xff]  ;;  %v3706_v24 = vld [vmem:[#allocation39 + $0x30] sm:$0xff]  ;;  %v3707_v25 = vld [vmem:[#allocation39 + $0x38] sm:$0xff] }
 0xe18   : > { %v11687_v41 = vmax.f32 %v3254_v38, 0.0  ;;  %8429 = vmatpush3.bf16.msra.mxu1 %v8426_v63  ;;  %v3920_v63 = vld [vmem:[#allocation45] sm:$0xff]  ;;  %v4128_v38 = vld [vmem:[#allocation45 + $0x130] sm:$0xff] }
 0xe19   : > { %8431 = vmatprep.subr.bf16.mxu1 %v8430_v37  ;;  %v8458_v1 = vpack.c.bf16 %v3921_v0, %v3920_v63  ;;  %v8502_v40 = vpack.c.bf16 %v4129_v39, %v4128_v38  ;;  %v3701_v63 = vld [vmem:[#allocation39 + $0x8] sm:$0xff]  ;;  %v3714_v38 = vld [vmem:[#allocation39 + $0x70] sm:$0xff]  ;;  %v3715_v39 = vld [vmem:[#allocation39 + $0x78] sm:$0xff] }
 0xe1a   : > { %7233 = vmatprep.mubr.f32.mxu1 %v11687_v41 }
 0xe1b   : > { %7234 = vmatmul.mubr.f32.gmra.mrb[26].mxu1 %v11689_v42 }
 0xe1c   : > { %8433 = vmatpush3.bf16.msra.mxu1 %v8430_v37  ;;  %7382 = vmatprep.mubr.f32.mxu1 %v11653_v44  ;;  %v8498_v37 = vpack.c.bf16 %v4127_v36, %v4126_v35  ;;  %v3712_v35 = vld [vmem:[#allocation39 + $0x60] sm:$0xff]  ;;  %v3713_v36 = vld [vmem:[#allocation39 + $0x68] sm:$0xff] }
 0xe1d   : > { %8435 = vmatprep.subr.bf16.mxu1 %v8434_v43 }
 0xe20   : > { %8437 = vmatpush3.bf16.msra.mxu1 %v8434_v43  ;;  %v4130_v43 = vld [vmem:[#allocation45 + $0x140] sm:$0xff] }
 0xe21   : > { %8439 = vmatprep.subr.bf16.mxu1 %v8438_v48  ;;  %v8506_v47 = vpack.c.bf16 %v4131_v45, %v4130_v43  ;;  %v3808_v43 = vld [vmem:[#allocation42] sm:$0xff]  ;;  %v3809_v45 = vld [vmem:[#allocation42 + $0x8] sm:$0xff] }
 0xe24   : > { %8441 = vmatpush3.bf16.msra.mxu1 %v8438_v48  ;;  %v4132_v48 = vld [vmem:[#allocation45 + $0x150] sm:$0xff] }
 0xe25   : > { %8443 = vmatprep.subr.bf16.mxu1 %v8442_v51  ;;  %v8510_v50 = vpack.c.bf16 %v4133_v49, %v4132_v48  ;;  %v6037_v48 = vld [vmem:[#allocation38] ss:$0 sm:$0xff] }
 0xe28   : > { %8445 = vmatpush3.bf16.msra.mxu1 %v8442_v51  ;;  %v4134_v51 = vld [vmem:[#allocation45 + $0x160] sm:$0xff] }
 0xe29   : > { %8447 = vmatprep.subr.bf16.mxu1 %v8446_v56  ;;  %v8514_v55 = vpack.c.bf16 %v4135_v52, %v4134_v51 }
 0xe2c   : > { %8449 = vmatpush3.bf16.msra.mxu1 %v8446_v56  ;;  %v4136_v56 = vld [vmem:[#allocation45 + $0x170] sm:$0xff] }
 0xe2d   : > { %8451 = vmatprep.subr.bf16.mxu1 %v8450_v59  ;;  %v8518_v61 = vpack.c.bf16 %v4137_v57, %v4136_v56 }
 0xe30   : > { %8453 = vmatpush3.bf16.msra.mxu1 %v8450_v59  ;;  %v3603_v59 = vld [vmem:[#allocation36 + $0x78] sm:$0xff] }
 0xe31   : > { %8455 = vmatprep.subr.bf16.mxu1 %v8454_v62  ;;  %v8358_v60 = vpack.c.bf16 %v3603_v59, %v3602_v58  ;;  %v3810_v59 = vld [vmem:[#allocation42 + $0x10] sm:$0xff] }
 0xe33   : > { %8359 = vmatprep.subr.bf16.mxu0 %v8358_v60 }
 0xe34   : > { %8457 = vmatpush3.bf16.msra.mxu1 %v8454_v62  ;;  %8361 = vmatpush3.bf16.msra.mxu0 %v8358_v60  ;;  %v3700_v62 = vld [vmem:[#allocation39] sm:$0xff] }
 0xe35   : > { %8459 = vmatprep.subr.bf16.mxu1 %v8458_v1  ;;  %v8362_v0 = vpack.c.bf16 %v3701_v63, %v3700_v62  ;;  %v3811_v60 = vld [vmem:[#allocation42 + $0x18] sm:$0xff] }
 0xe36   : > { %v8398_v62 = vpack.c.bf16 %v3811_v60, %v3810_v59 }
 0xe37   : > { %7383 = vmatmul.mubr.f32.vlgmr.msra.gmra.mrb[28].mxu1 %v11655_v46  ;;  %8363 = vmatprep.subr.bf16.mxu0 %v8362_v0 }
 0xe38   : > { %7385 = vmatprep.mubr.f32.mxu1 %v11661_v54  ;;  %8461 = vmatpush3.bf16.msra.mxu1 %v8458_v1  ;;  %v6036_v1 = vld [vmem:[#allocation35] ss:$0 sm:$0xff] }
 0xe39   : > { %8463 = vmatprep.subr.bf16.mxu1 %v8462_v4 }
 0xe3b   : > { %7386 = vmatmul.mubr.f32.gmra.mrb[30].mxu1 %v11658_v53 }
 0xe3c   : > { %8465 = vmatpush3.bf16.msra.mxu1 %v8462_v4  ;;  %7420 = vmatprep.mubr.f32.mxu1 %v11636_v17 }
 0xe3d   : > { %8467 = vmatprep.subr.bf16.mxu1 %v8466_v7 }
 0xe40   : > { %8469 = vmatpush3.bf16.msra.mxu1 %v8466_v7  ;;  %v3703_v7 = vld [vmem:[#allocation39 + $0x18] sm:$0xff] }
 0xe41   : > { %8471 = vmatprep.subr.bf16.mxu1 %v8470_v10 }
 0xe44   : > { %8473 = vmatpush3.bf16.msra.mxu1 %v8470_v10 }
 0xe45   : > { %8475 = vmatprep.subr.bf16.mxu1 %v8474_v13 }
 0xe48   : > { %8477 = vmatpush3.bf16.msra.mxu1 %v8474_v13  ;;  %v8366_v13 = vpack.c.bf16 %v3703_v7, %v3702_v6  ;;  %v3815_v6 = vld [vmem:[#allocation42 + $0x38] sm:$0xff] }
 0xe49   : > { %8479 = vmatprep.subr.bf16.mxu1 %v8478_v16 }
 0xe4c   : > { %8481 = vmatpush3.bf16.msra.mxu1 %v8478_v16  ;;  %v3705_v16 = vld [vmem:[#allocation39 + $0x28] sm:$0xff] }
 0xe4d   : > { %8483 = vmatprep.subr.bf16.mxu1 %v8482_v23 }
 0xe50   : > { %8485 = vmatpush3.bf16.msra.mxu1 %v8482_v23  ;;  %v8370_v23 = vpack.c.bf16 %v3705_v16, %v3704_v15  ;;  %v3821_v15 = vld [vmem:[#allocation42 + $0x68] sm:$0xff] }
 0xe51   : > { %8487 = vmatprep.subr.bf16.mxu1 %v8486_v26 }
 0xe54   : > { %8489 = vmatpush3.bf16.msra.mxu1 %v8486_v26  ;;  %v8374_v26 = vpack.c.bf16 %v3707_v25, %v3706_v24  ;;  %v4227_v24 = vld [vmem:[#allocation45 + $0x180] sm:$0xff]  ;;  %v4228_v25 = vld [vmem:[#allocation45 + $0x188] sm:$0xff] }
 0xe55   : > { %8491 = vmatprep.subr.bf16.mxu1 %v8490_v29 }
 0xe57   : > { %7421 = vmatmul.mubr.f32.vlgmr.msra.gmra.mrb[28].mxu1 %v11638_v18 }
 0xe58   : > { %7423 = vmatprep.mubr.f32.mxu1 %v11644_v22  ;;  %8493 = vmatpush3.bf16.msra.mxu1 %v8490_v29  ;;  %v8378_v29 = vpack.c.bf16 %v3709_v28, %v3708_v27  ;;  %v8522_v27 = vpack.c.bf16 %v4228_v25, %v4227_v24  ;;  %v4230_v28 = vld [vmem:[#allocation45 + $0x198] sm:$0xff]  ;;  %v4360_v24 = vld [vmem:[#allocation48 + $0x68] sm:$0xff] }
 0xe59   : > { %8495 = vmatprep.subr.bf16.mxu1 %v8494_v33 }
 0xe5b   : > { %7424 = vmatmul.mubr.f32.gmra.mrb[30].mxu1 %v11641_v20 }
 0xe5c   : > { %8497 = vmatpush3.bf16.msra.mxu1 %v8494_v33  ;;  %7458 = vmatprep.mubr.f32.mxu1 %v11681_v32  ;;  %v8382_v33 = vpack.c.bf16 %v3711_v31, %v3710_v30  ;;  %v4231_v30 = vld [vmem:[#allocation45 + $0x1a0] sm:$0xff]  ;;  %v4232_v31 = vld [vmem:[#allocation45 + $0x1a8] sm:$0xff] }
 0xe5d   : > { %8499 = vmatprep.subr.bf16.mxu1 %v8498_v37 }
 0xe60   : > { %8501 = vmatpush3.bf16.msra.mxu1 %v8498_v37  ;;  %v8386_v37 = vpack.c.bf16 %v3713_v36, %v3712_v35  ;;  %v4233_v35 = vld [vmem:[#allocation45 + $0x1b0] sm:$0xff]  ;;  %v4234_v36 = vld [vmem:[#allocation45 + $0x1b8] sm:$0xff] }
 0xe61   : > { %8503 = vmatprep.subr.bf16.mxu1 %v8502_v40 }
 0xe64   : > { %8505 = vmatpush3.bf16.msra.mxu1 %v8502_v40  ;;  %v8390_v40 = vpack.c.bf16 %v3715_v39, %v3714_v38  ;;  %v4235_v38 = vld [vmem:[#allocation45 + $0x1c0] sm:$0xff]  ;;  %v4236_v39 = vld [vmem:[#allocation45 + $0x1c8] sm:$0xff] }
 0xe65   : > { %8507 = vmatprep.subr.bf16.mxu1 %v8506_v47 }
 0xe68   : > { %8509 = vmatpush3.bf16.msra.mxu1 %v8506_v47  ;;  %v8394_v47 = vpack.c.bf16 %v3809_v45, %v3808_v43  ;;  %v4237_v43 = vld [vmem:[#allocation45 + $0x1d0] sm:$0xff]  ;;  %v4238_v45 = vld [vmem:[#allocation45 + $0x1d8] sm:$0xff] }
 0xe69   : > { %8511 = vmatprep.subr.bf16.mxu1 %v8510_v50 }
 0xe6c   : > { %8513 = vmatpush3.bf16.msra.mxu1 %v8510_v50 }
 0xe6d   : > { %8515 = vmatprep.subr.bf16.mxu1 %v8514_v55 }
 0xe70   : > { %8517 = vmatpush3.bf16.msra.mxu1 %v8514_v55 }
 0xe71   : > { %8519 = vmatprep.subr.bf16.mxu1 %v8518_v61 }
 0xe74   : > { %8521 = vmatpush3.bf16.msra.mxu1 %v8518_v61 }
 0xe75   : > { %8523 = vmatprep.subr.bf16.mxu1 %v8522_v27 }
 0xe77   : > { %7459 = vmatmul.mubr.f32.vlgmr.msra.gmra.mrb[28].mxu1 %v11683_v34 }
 0xe78   : > { %7461 = vmatprep.mubr.f32.mxu1 %v11687_v41  ;;  %8525 = vmatpush3.bf16.msra.mxu1 %v8522_v27 }
 0xe7b   : > { %7462 = vmatmul.mubr.f32.gmra.mrb[30].mxu1 %v11689_v42 }
 0xeea   : > { %v7232_v2 = vpop.f32.mrb[24].mxu1 }
 0xeeb   : > { %v3581_v3 = vadd.f32 %v7232_v2, %v6036_v1  ;;  %v3550_v4 = vpop.f32.mrb[25].mxu1 }
 0xeec   : > { %v3580_v5 = vadd.f32 %v6036_v1, %v3550_v4 }
 0xeed   : > { %v3585_v10 = vmax.f32 %v3581_v3, 0.0 }
 0xeee   : > { %v3584_v8 = vmax.f32 %v3580_v5, 0.0  ;;  %v7235_v9 = vpop.f32.mrb[26].mxu1  ;;  %v3814_v5 = vld [vmem:[#allocation42 + $0x30] sm:$0xff] }
 0xeef   : > { %v3583_v11 = vadd.f32 %v7235_v9, %v6036_v1  ;;  %v3560_v12 = vpop.f32.mrb[27].mxu1  ;;  %v8406_v7 = vpack.c.bf16 %v3815_v6, %v3814_v5  ;;  %v3817_v9 = vld [vmem:[#allocation42 + $0x48] sm:$0xff]  ;;  %v4350_v5 = vld [vmem:[#allocation48 + $0x18] sm:$0xff] }
 0xef0   : > { %v3582_v14 = vadd.f32 %v6036_v1, %v3560_v12  ;;  %7268 = vmatprep.mubr.f32.mxu0 %v3584_v8  ;;  %v3813_v1 = vld [vmem:[#allocation42 + $0x28] sm:$0xff]  ;;  %v3816_v8 = vld [vmem:[#allocation42 + $0x40] sm:$0xff]  ;;  %v3819_v12 = vld [vmem:[#allocation42 + $0x58] sm:$0xff] }
 0xef1   : > { %7269 = vmatmul.mubr.f32.vlgmr.msra.gmra.mrb[16].mxu0 %v3585_v10  ;;  %v3587_v21 = vmax.f32 %v3583_v11, 0.0  ;;  %v8410_v10 = vpack.c.bf16 %v3817_v9, %v3816_v8  ;;  %v3818_v11 = vld [vmem:[#allocation42 + $0x50] sm:$0xff] }
 0xef2   : > { %v3586_v19 = vmax.f32 %v3582_v14, 0.0  ;;  %8365 = vmatpush3.bf16.msra.mxu0 %v8362_v0  ;;  %v3812_v0 = vld [vmem:[#allocation42 + $0x20] sm:$0xff]  ;;  %v4352_v8 = vld [vmem:[#allocation48 + $0x28] sm:$0xff] }
 0xef3   : > { %8367 = vmatprep.subr.bf16.mxu0 %v8366_v13  ;;  %v8402_v3 = vpack.c.bf16 %v3813_v1, %v3812_v0  ;;  %v3820_v14 = vld [vmem:[#allocation42 + $0x60] sm:$0xff] }
 0xef4   : > { %7271 = vmatprep.mubr.f32.mxu0 %v3586_v19  ;;  %v8418_v16 = vpack.c.bf16 %v3821_v15, %v3820_v14  ;;  %v3822_v19 = vld [vmem:[#allocation42 + $0x70] sm:$0xff]  ;;  %v4347_v1 = vld [vmem:[#allocation48] sm:$0xff] }
 0xef5   : > { %7272 = vmatmul.mubr.f32.gmra.mrb[18].mxu0 %v3587_v21  ;;  %v3823_v21 = vld [vmem:[#allocation42 + $0x78] sm:$0xff]  ;;  %v4356_v14 = vld [vmem:[#allocation48 + $0x48] sm:$0xff] }
 0xef6   : > { %8369 = vmatpush3.bf16.msra.mxu0 %v8366_v13  ;;  %v8414_v13 = vpack.c.bf16 %v3819_v12, %v3818_v11  ;;  %v4354_v11 = vld [vmem:[#allocation48 + $0x38] sm:$0xff] }
 0xef7   : > { %8371 = vmatprep.subr.bf16.mxu0 %v8370_v23 }
 0xefa   : > { %8373 = vmatpush3.bf16.msra.mxu0 %v8370_v23  ;;  %v8422_v23 = vpack.c.bf16 %v3823_v21, %v3822_v19  ;;  %v4358_v19 = vld [vmem:[#allocation48 + $0x58] sm:$0xff] }
 0xefb   : > { %8375 = vmatprep.subr.bf16.mxu0 %v8374_v26 }
 0xefe   : > { %8377 = vmatpush3.bf16.msra.mxu0 %v8374_v26  ;;  %v4229_v26 = vld [vmem:[#allocation45 + $0x190] sm:$0xff] }
 0xeff   : > { %8379 = vmatprep.subr.bf16.mxu0 %v8378_v29 }
 0xf02   : > { %8381 = vmatpush3.bf16.msra.mxu0 %v8378_v29  ;;  %v8526_v29 = vpack.c.bf16 %v4230_v28, %v4229_v26  ;;  %v6039_v26 = vld [vmem:[#allocation44] ss:$0 sm:$0xff] }
 0xf03   : > { %8383 = vmatprep.subr.bf16.mxu0 %v8382_v33 }
 0xf04   : > { %8527 = vmatprep.subr.bf16.mxu1 %v8526_v29 }
 0xf05   : > { %8529 = vmatpush3.bf16.msra.mxu1 %v8526_v29 }
 0xf06   : > { %8385 = vmatpush3.bf16.msra.mxu0 %v8382_v33  ;;  %v8530_v33 = vpack.c.bf16 %v4232_v31, %v4231_v30 }
 0xf07   : > { %8387 = vmatprep.subr.bf16.mxu0 %v8386_v37 }
 0xf08   : > { %8531 = vmatprep.subr.bf16.mxu1 %v8530_v33 }
 0xf09   : > { %8533 = vmatpush3.bf16.msra.mxu1 %v8530_v33 }
 0xf0a   : > { %8389 = vmatpush3.bf16.msra.mxu0 %v8386_v37  ;;  %v8534_v37 = vpack.c.bf16 %v4234_v36, %v4233_v35 }
 0xf0b   : > { %8391 = vmatprep.subr.bf16.mxu0 %v8390_v40 }
 0xf0c   : > { %8535 = vmatprep.subr.bf16.mxu1 %v8534_v37 }
 0xf0d   : > { %8537 = vmatpush3.bf16.msra.mxu1 %v8534_v37 }
 0xf0e   : > { %8393 = vmatpush3.bf16.msra.mxu0 %v8390_v40  ;;  %v8538_v40 = vpack.c.bf16 %v4236_v39, %v4235_v38 }
 0xf0f   : > { %8395 = vmatprep.subr.bf16.mxu0 %v8394_v47 }
 0xf10   : > { %8539 = vmatprep.subr.bf16.mxu1 %v8538_v40 }
 0xf11   : > { %8541 = vmatpush3.bf16.msra.mxu1 %v8538_v40 }
 0xfc4   : > { %v7270_v49 = vpop.f32.mrb[16].mxu0 }
 0xfc5   : > { %v3683_v50 = vadd.f32 %v7270_v49, %v6037_v48  ;;  %v3677_v51 = vpop.f32.mrb[17].mxu0  ;;  %v4240_v49 = vld [vmem:[#allocation45 + $0x1e8] sm:$0xff] }
 0xfc6   : > { %v3678_v52 = vadd.f32 %v6037_v48, %v3677_v51  ;;  %v6038_v51 = vld [vmem:[#allocation41] ss:$0 sm:$0xff] }
 0xfc8   : > { %9357 = vtanh.f32 %v3678_v52  ;;  %v7273_v55 = vpop.f32.mrb[18].mxu0 }
 0xfc9   : > { %9359 = vtanh.f32 %v3683_v50  ;;  %v3693_v56 = vadd.f32 %v7273_v55, %v6037_v48  ;;  %v3687_v57 = vpop.f32.mrb[19].mxu0 }
 0xfca   : > { %v3688_v58 = vadd.f32 %v6037_v48, %v3687_v57  ;;  %v4239_v48 = vld [vmem:[#allocation45 + $0x1e0] sm:$0xff] }
 0xfcb   : > { %v8546_v50 = vpack.c.bf16 %v4240_v49, %v4239_v48  ;;  %v4459_v48 = vld [vmem:[%s12102_s20] sm:$0xff]  ;;  %v4460_v49 = vld [vmem:[%s12102_s20 + $0x8] sm:$0xff] }
 0xfcc   : > { %9361 = vtanh.f32 %v3688_v58 }
 0xfcd   : > { %9363 = vtanh.f32 %v3693_v56 }
 0xfd2   : > { %v9358_v61 = vpop.eup %9357 }
 0xfd3   : > { %v9360_v63 = vpop.eup %9359  ;;  %7306 = vmatprep.mubr.f32.mxu0 %v9358_v61 }
 0xfd4   : > { %7307 = vmatmul.mubr.f32.vlgmr.msra.gmra.mrb[20].mxu0 %v9360_v63  ;;  %v4242_v63 = vld [vmem:[#allocation45 + $0x1f8] sm:$0xff] }
 0xfd5   : > { %8397 = vmatpush3.bf16.msra.mxu0 %v8394_v47  ;;  %v8542_v47 = vpack.c.bf16 %v4238_v45, %v4237_v43  ;;  %v4361_v43 = vld [vmem:[#allocation48 + $0x70] sm:$0xff]  ;;  %v4362_v45 = vld [vmem:[#allocation48 + $0x78] sm:$0xff] }
 0xfd6   : > { %v9362_v2 = vpop.eup %9361  ;;  %8399 = vmatprep.subr.bf16.mxu0 %v8398_v62 }
 0xfd7   : > { %v9364_v4 = vpop.eup %9363  ;;  %7309 = vmatprep.mubr.f32.mxu0 %v9362_v2  ;;  %8543 = vmatprep.subr.bf16.mxu1 %v8542_v47  ;;  %v4348_v2 = vld [vmem:[#allocation48 + $0x8] sm:$0xff] }
 0xfd8   : > { %7310 = vmatmul.mubr.f32.gmra.mrb[22].mxu0 %v9364_v4  ;;  %8545 = vmatpush3.bf16.msra.mxu1 %v8542_v47  ;;  %v8554_v4 = vpack.c.bf16 %v4348_v2, %v4347_v1  ;;  %v8582_v47 = vpack.c.bf16 %v4362_v45, %v4361_v43 }
 0xfd9   : > { %8401 = vmatpush3.bf16.msra.mxu0 %v8398_v62  ;;  %8547 = vmatprep.subr.bf16.mxu1 %v8546_v50  ;;  %v4241_v62 = vld [vmem:[#allocation45 + $0x1f0] sm:$0xff] }
 0xfda   : > { %8403 = vmatprep.subr.bf16.mxu0 %v8402_v3  ;;  %v8550_v0 = vpack.c.bf16 %v4242_v63, %v4241_v62 }
 0xfdc   : > { %8549 = vmatpush3.bf16.msra.mxu1 %v8546_v50  ;;  %v8586_v50 = vpack.c.bf16 %v4460_v49, %v4459_v48 }
 0xfdd   : > { %8405 = vmatpush3.bf16.msra.mxu0 %v8402_v3  ;;  %8551 = vmatprep.subr.bf16.mxu1 %v8550_v0  ;;  %v4349_v3 = vld [vmem:[#allocation48 + $0x10] sm:$0xff] }
 0xfde   : > { %8407 = vmatprep.subr.bf16.mxu0 %v8406_v7  ;;  %v8558_v6 = vpack.c.bf16 %v4350_v5, %v4349_v3  ;;  %v4463_v3 = vld [vmem:[%s12102_s20 + $0x20] sm:$0xff] }
 0xfe0   : > { %8553 = vmatpush3.bf16.msra.mxu1 %v8550_v0 }
 0xfe1   : > { %8409 = vmatpush3.bf16.msra.mxu0 %v8406_v7  ;;  %v4351_v7 = vld [vmem:[#allocation48 + $0x20] sm:$0xff] }
 0xfe2   : > { %8411 = vmatprep.subr.bf16.mxu0 %v8410_v10  ;;  %v8562_v9 = vpack.c.bf16 %v4352_v8, %v4351_v7  ;;  %v4465_v8 = vld [vmem:[%s12102_s20 + $0x30] sm:$0xff] }
 0xfe5   : > { %8413 = vmatpush3.bf16.msra.mxu0 %v8410_v10  ;;  %v4353_v10 = vld [vmem:[#allocation48 + $0x30] sm:$0xff] }
 0xfe6   : > { %8415 = vmatprep.subr.bf16.mxu0 %v8414_v13  ;;  %v8566_v12 = vpack.c.bf16 %v4354_v11, %v4353_v10  ;;  %v4467_v11 = vld [vmem:[%s12102_s20 + $0x40] sm:$0xff] }
 0xfe9   : > { %8417 = vmatpush3.bf16.msra.mxu0 %v8414_v13  ;;  %v4355_v13 = vld [vmem:[#allocation48 + $0x40] sm:$0xff] }
 0xfea   : > { %8419 = vmatprep.subr.bf16.mxu0 %v8418_v16  ;;  %v8570_v15 = vpack.c.bf16 %v4356_v14, %v4355_v13  ;;  %v4469_v14 = vld [vmem:[%s12102_s20 + $0x50] sm:$0xff] }
 0xfed   : > { %8421 = vmatpush3.bf16.msra.mxu0 %v8418_v16  ;;  %v4357_v16 = vld [vmem:[#allocation48 + $0x50] sm:$0xff] }
 0xfee   : > { %8423 = vmatprep.subr.bf16.mxu0 %v8422_v23  ;;  %v8574_v21 = vpack.c.bf16 %v4358_v19, %v4357_v16  ;;  %v4471_v19 = vld [vmem:[%s12102_s20 + $0x60] sm:$0xff] }
 0xff1   : > { %8425 = vmatpush3.bf16.msra.mxu0 %v8422_v23  ;;  %v4359_v23 = vld [vmem:[#allocation48 + $0x60] sm:$0xff] }
 0xff2   : > { %8555 = vmatprep.subr.bf16.mxu0 %v8554_v4  ;;  %v8578_v25 = vpack.c.bf16 %v4360_v24, %v4359_v23  ;;  %v4473_v24 = vld [vmem:[%s12102_s20 + $0x70] sm:$0xff] }
0x10a7   : > { %v7308_v52 = vpop.f32.mrb[20].mxu0 }
0x10a8   : > { %v3795_v55 = vadd.f32 %v7308_v52, %v6038_v51  ;;  %v3789_v56 = vpop.f32.mrb[21].mxu0 }
0x10a9   : > { %v3790_v57 = vadd.f32 %v6038_v51, %v3789_v56 }
0x10aa   : > { %5440 = vst [vmem:[%s11617_s8 + $0x38] sm:$0xff] %v3795_v55 }
0x10ab   : > { %5439 = vst [vmem:[%s11617_s8 + $0x10] sm:$0xff] %v3790_v57  ;;  %v7311_v58 = vpop.f32.mrb[22].mxu0  ;;  %7344 = vmatprep.mubr.f32.mxu0 %v3790_v57 }
0x10ac   : > { %v3805_v59 = vadd.f32 %v7311_v58, %v6038_v51  ;;  %v3799_v60 = vpop.f32.mrb[23].mxu0  ;;  %7345 = vmatmul.mubr.f32.vlgmr.msra.gmra.mrb[24].mxu0 %v3795_v55  ;;  %v4461_v58 = vld [vmem:[%s12102_s20 + $0x10] sm:$0xff] }
0x10ad   : > { %v3800_v61 = vadd.f32 %v6038_v51, %v3799_v60  ;;  %8557 = vmatpush3.bf16.msra.mxu0 %v8554_v4  ;;  %v6040_v51 = vld [vmem:[#allocation47] ss:$0 sm:$0xff]  ;;  %v4464_v4 = vld [vmem:[%s12102_s20 + $0x28] sm:$0xff] }
0x10ae   : > { %5442 = vst [vmem:[%s11617_s8 + $0x88] sm:$0xff] %v3805_v59  ;;  %8559 = vmatprep.subr.bf16.mxu0 %v8558_v6  ;;  %v8594_v7 = vpack.c.bf16 %v4464_v4, %v4463_v3  ;;  %v4575_v4 = vld [vmem:[#allocation51 + $0x40] sm:$0xff] }
0x10af   : > { %5441 = vst [vmem:[%s11617_s8 + $0x60] sm:$0xff] %v3800_v61  ;;  %7347 = vmatprep.mubr.f32.mxu0 %v3800_v61 }
0x10b0   : > { %7348 = vmatmul.mubr.f32.gmra.mrb[26].mxu0 %v3805_v59  ;;  %v4462_v59 = vld [vmem:[%s12102_s20 + $0x18] sm:$0xff] }
0x10b1   : > { %8561 = vmatpush3.bf16.msra.mxu0 %v8558_v6  ;;  %v8590_v1 = vpack.c.bf16 %v4462_v59, %v4461_v58 }
0x10b2   : > { %8563 = vmatprep.subr.bf16.mxu0 %v8562_v9 }
0x10b5   : > { %8565 = vmatpush3.bf16.msra.mxu0 %v8562_v9  ;;  %v4466_v9 = vld [vmem:[%s12102_s20 + $0x38] sm:$0xff] }
0x10b6   : > { %8567 = vmatprep.subr.bf16.mxu0 %v8566_v12  ;;  %v8598_v10 = vpack.c.bf16 %v4466_v9, %v4465_v8  ;;  %v4578_v8 = vld [vmem:[#allocation51 + $0x58] sm:$0xff] }
0x10b9   : > { %8569 = vmatpush3.bf16.msra.mxu0 %v8566_v12  ;;  %v4468_v12 = vld [vmem:[%s12102_s20 + $0x48] sm:$0xff] }
0x10ba   : > { %8571 = vmatprep.subr.bf16.mxu0 %v8570_v15  ;;  %v8602_v13 = vpack.c.bf16 %v4468_v12, %v4467_v11  ;;  %v4580_v11 = vld [vmem:[#allocation51 + $0x68] sm:$0xff] }
0x10bd   : > { %8573 = vmatpush3.bf16.msra.mxu0 %v8570_v15  ;;  %v4470_v15 = vld [vmem:[%s12102_s20 + $0x58] sm:$0xff] }
0x10be   : > { %8575 = vmatprep.subr.bf16.mxu0 %v8574_v21  ;;  %v8606_v16 = vpack.c.bf16 %v4470_v15, %v4469_v14  ;;  %v4582_v14 = vld [vmem:[#allocation51 + $0x78] sm:$0xff] }
0x10c1   : > { %8577 = vmatpush3.bf16.msra.mxu0 %v8574_v21  ;;  %v4472_v21 = vld [vmem:[%s12102_s20 + $0x68] sm:$0xff] }
0x10c2   : > { %8579 = vmatprep.subr.bf16.mxu0 %v8578_v25  ;;  %v8610_v23 = vpack.c.bf16 %v4472_v21, %v4471_v19  ;;  %v4696_v19 = vld [vmem:[#allocation53 + $0x88] sm:$0xff] }
0x10c5   : > { %8581 = vmatpush3.bf16.msra.mxu0 %v8578_v25  ;;  %v4474_v25 = vld [vmem:[%s12102_s20 + $0x78] sm:$0xff] }
0x10c6   : > { %8583 = vmatprep.subr.bf16.mxu0 %v8582_v47 }
0x10c9   : > { %8585 = vmatpush3.bf16.msra.mxu0 %v8582_v47 }
0x10ca   : > { %8587 = vmatprep.subr.bf16.mxu0 %v8586_v50 }
0x117f   : > { %v7346_v27 = vpop.f32.mrb[24].mxu0 }
0x1180   : > { %v11709_v28 = vadd.f32 %v7346_v27, %v6039_v26  ;;  %v3897_v29 = vpop.f32.mrb[25].mxu0  ;;  %v4567_v27 = vld [vmem:[#allocation51] sm:$0xff] }
0x1181   : > { %v11711_v30 = vadd.f32 %v6039_v26, %v3897_v29  ;;  %v4568_v29 = vld [vmem:[#allocation51 + $0x8] sm:$0xff] }
0x1182   : > { %v3917_v35 = vmax.f32 %v11709_v28, 0.0 }
0x1183   : > { %v3916_v31 = vmax.f32 %v11711_v30, 0.0  ;;  %v7349_v33 = vpop.f32.mrb[26].mxu0 }
0x1184   : > { %v11715_v36 = vadd.f32 %v7349_v33, %v6039_v26  ;;  %v3907_v37 = vpop.f32.mrb[27].mxu0  ;;  %v8618_v33 = vpack.c.bf16 %v4568_v29, %v4567_v27 }
0x1185   : > { %v11717_v38 = vadd.f32 %v6039_v26, %v3907_v37  ;;  %7496 = vmatprep.mubr.f32.mxu1 %v3916_v31  ;;  %v8614_v26 = vpack.c.bf16 %v4474_v25, %v4473_v24  ;;  %v6041_v37 = vld [vmem:[#allocation50] ss:$0 sm:$0xff]  ;;  %v4697_v25 = vld [vmem:[#allocation53 + $0x90] sm:$0xff] }
0x1186   : > { %7497 = vmatmul.mubr.f32.vlgmr.msra.gmra.mrb[28].mxu1 %v3917_v35  ;;  %v3919_v40 = vmax.f32 %v11715_v36, 0.0 }
0x1187   : > { %v3918_v39 = vmax.f32 %v11717_v38, 0.0 }
0x1189   : > { %7499 = vmatprep.mubr.f32.mxu1 %v3918_v39 }
0x118a   : > { %7500 = vmatmul.mubr.f32.gmra.mrb[30].mxu1 %v3919_v40 }
0x1259   : > { %v7498_v52 = vpop.f32.mrb[28].mxu1 }
0x125a   : > { %v4340_v55 = vadd.f32 %v7498_v52, %v6040_v51  ;;  %v4309_v56 = vpop.f32.mrb[29].mxu1 }
0x125b   : > { %v4339_v57 = vadd.f32 %v6040_v51, %v4309_v56  ;;  %v4570_v56 = vld [vmem:[#allocation51 + $0x18] sm:$0xff] }
0x125c   : > { %v4344_v62 = vmax.f32 %v4340_v55, 0.0  ;;  %v4569_v55 = vld [vmem:[#allocation51 + $0x10] sm:$0xff] }
0x125d   : > { %v4343_v60 = vmax.f32 %v4339_v57, 0.0  ;;  %v7501_v61 = vpop.f32.mrb[30].mxu1  ;;  %v8622_v58 = vpack.c.bf16 %v4570_v56, %v4569_v55  ;;  %v4702_v55 = vld [vmem:[#allocation53 + $0xb8] sm:$0xff] }
0x125e   : > { %v4342_v63 = vadd.f32 %v7501_v61, %v6040_v51  ;;  %v4319_v0 = vpop.f32.mrb[31].mxu1  ;;  %v4572_v61 = vld [vmem:[#allocation51 + $0x28] sm:$0xff] }
0x125f   : > { %v4341_v2 = vadd.f32 %v6040_v51, %v4319_v0  ;;  %7534 = vmatprep.mubr.f32.mxu0 %v4343_v60  ;;  %v4571_v60 = vld [vmem:[#allocation51 + $0x20] sm:$0xff] }
0x1260   : > { %7535 = vmatmul.mubr.f32.vlgmr.msra.gmra.mrb[28].mxu0 %v4344_v62  ;;  %v4346_v6 = vmax.f32 %v4342_v63, 0.0  ;;  %v8626_v63 = vpack.c.bf16 %v4572_v61, %v4571_v60  ;;  %v4705_v60 = vld [vmem:[#allocation53 + $0xd0] sm:$0xff]  ;;  %v4706_v61 = vld [vmem:[#allocation53 + $0xd8] sm:$0xff] }
0x1261   : > { %v4345_v5 = vmax.f32 %v4341_v2, 0.0  ;;  %8589 = vmatpush3.bf16.msra.mxu0 %v8586_v50  ;;  %v4574_v2 = vld [vmem:[#allocation51 + $0x38] sm:$0xff] }
0x1262   : > { %8591 = vmatprep.subr.bf16.mxu0 %v8590_v1 }
0x1263   : > { %7537 = vmatprep.mubr.f32.mxu0 %v4345_v5  ;;  %v4576_v5 = vld [vmem:[#allocation51 + $0x48] sm:$0xff] }
0x1264   : > { %7538 = vmatmul.mubr.f32.gmra.mrb[30].mxu0 %v4346_v6  ;;  %v8634_v6 = vpack.c.bf16 %v4576_v5, %v4575_v4  ;;  %v4679_v4 = vld [vmem:[#allocation53] sm:$0xff]  ;;  %v4680_v5 = vld [vmem:[#allocation53 + $0x8] sm:$0xff] }
0x1265   : > { %8593 = vmatpush3.bf16.msra.mxu0 %v8590_v1  ;;  %v4573_v1 = vld [vmem:[#allocation51 + $0x30] sm:$0xff] }
0x1266   : > { %8595 = vmatprep.subr.bf16.mxu0 %v8594_v7  ;;  %v8630_v3 = vpack.c.bf16 %v4574_v2, %v4573_v1  ;;  %v4709_v2 = vld [vmem:[#allocation53 + $0xf0] sm:$0xff] }
0x1269   : > { %8597 = vmatpush3.bf16.msra.mxu0 %v8594_v7  ;;  %v4577_v7 = vld [vmem:[#allocation51 + $0x50] sm:$0xff] }
0x126a   : > { %8599 = vmatprep.subr.bf16.mxu0 %v8598_v10  ;;  %v8638_v9 = vpack.c.bf16 %v4578_v8, %v4577_v7  ;;  %v4681_v7 = vld [vmem:[#allocation53 + $0x10] sm:$0xff]  ;;  %v4682_v8 = vld [vmem:[#allocation53 + $0x18] sm:$0xff] }
0x126d   : > { %8601 = vmatpush3.bf16.msra.mxu0 %v8598_v10  ;;  %v4579_v10 = vld [vmem:[#allocation51 + $0x60] sm:$0xff] }
0x126e   : > { %8603 = vmatprep.subr.bf16.mxu0 %v8602_v13  ;;  %v8642_v12 = vpack.c.bf16 %v4580_v11, %v4579_v10  ;;  %v4683_v10 = vld [vmem:[#allocation53 + $0x20] sm:$0xff]  ;;  %v4684_v11 = vld [vmem:[#allocation53 + $0x28] sm:$0xff] }
0x1271   : > { %8605 = vmatpush3.bf16.msra.mxu0 %v8602_v13  ;;  %v4581_v13 = vld [vmem:[#allocation51 + $0x70] sm:$0xff] }
0x1272   : > { %8607 = vmatprep.subr.bf16.mxu0 %v8606_v16  ;;  %v8646_v15 = vpack.c.bf16 %v4582_v14, %v4581_v13  ;;  %v4685_v13 = vld [vmem:[#allocation53 + $0x30] sm:$0xff]  ;;  %v4686_v14 = vld [vmem:[#allocation53 + $0x38] sm:$0xff] }
0x1275   : > { %8609 = vmatpush3.bf16.msra.mxu0 %v8606_v16  ;;  %v4695_v16 = vld [vmem:[#allocation53 + $0x80] sm:$0xff] }
0x1276   : > { %8611 = vmatprep.subr.bf16.mxu0 %v8610_v23  ;;  %v8650_v21 = vpack.c.bf16 %v4696_v19, %v4695_v16  ;;  %v4687_v16 = vld [vmem:[#allocation53 + $0x40] sm:$0xff]  ;;  %v4688_v19 = vld [vmem:[#allocation53 + $0x48] sm:$0xff] }
0x1279   : > { %8613 = vmatpush3.bf16.msra.mxu0 %v8610_v23  ;;  %v6042_v23 = vld [vmem:[%s12103_s5] ss:$0 sm:$0xff] }
0x127a   : > { %8615 = vmatprep.subr.bf16.mxu0 %v8614_v26 }
0x127d   : > { %8617 = vmatpush3.bf16.msra.mxu0 %v8614_v26  ;;  %v4698_v26 = vld [vmem:[#allocation53 + $0x98] sm:$0xff] }
0x127e   : > { %8619 = vmatprep.subr.bf16.mxu0 %v8618_v33 }
0x1333   : > { %v7536_v43 = vpop.f32.mrb[28].mxu0 }
0x1334   : > { %v4442_v45 = vadd.f32 %v7536_v43, %v6041_v37  ;;  %v4436_v47 = vpop.f32.mrb[29].mxu0 }
0x1335   : > { %v4437_v48 = vadd.f32 %v6041_v37, %v4436_v47  ;;  %v4700_v47 = vld [vmem:[#allocation53 + $0xa8] sm:$0xff] }
0x1337   : > { %9365 = vtanh.f32 %v4437_v48  ;;  %v7539_v49 = vpop.f32.mrb[30].mxu0 }
0x1338   : > { %9367 = vtanh.f32 %v4442_v45  ;;  %v4452_v50 = vadd.f32 %v7539_v49, %v6041_v37  ;;  %v4446_v51 = vpop.f32.mrb[31].mxu0  ;;  %v4699_v45 = vld [vmem:[#allocation53 + $0xa0] sm:$0xff] }
0x1339   : > { %v4447_v52 = vadd.f32 %v6041_v37, %v4446_v51  ;;  %v8654_v37 = vpack.c.bf16 %v4698_v26, %v4697_v25  ;;  %v8658_v51 = vpack.c.bf16 %v4700_v47, %v4699_v45  ;;  %v4692_v25 = vld [vmem:[#allocation53 + $0x68] sm:$0xff]  ;;  %v4693_v26 = vld [vmem:[#allocation53 + $0x70] sm:$0xff]  ;;  %v4884_v45 = vld [vmem:[#allocation53 + $0x118] sm:$0xff] }
0x133b   : > { %9369 = vtanh.f32 %v4447_v52  ;;  %v4701_v52 = vld [vmem:[#allocation53 + $0xb0] sm:$0xff] }
0x133c   : > { %9371 = vtanh.f32 %v4452_v50  ;;  %v8662_v56 = vpack.c.bf16 %v4702_v55, %v4701_v52  ;;  %v4888_v52 = vld [vmem:[#allocation53 + $0x138] sm:$0xff] }
0x1341   : > { %v9366_v57 = vpop.eup %9365 }
0x1342   : > { %v9368_v59 = vpop.eup %9367  ;;  %7572 = vmatprep.mubr.f32.mxu0 %v9366_v57  ;;  %v4703_v57 = vld [vmem:[#allocation53 + $0xc0] sm:$0xff] }
0x1343   : > { %7573 = vmatmul.mubr.f32.vlgmr.msra.gmra.mrb[32].mxu0 %v9368_v59 }
0x1344   : > { %8621 = vmatpush3.bf16.msra.mxu0 %v8618_v33 }
0x1345   : > { %v9370_v62 = vpop.eup %9369  ;;  %8623 = vmatprep.subr.bf16.mxu0 %v8622_v58 }
0x1346   : > { %v9372_v0 = vpop.eup %9371  ;;  %7575 = vmatprep.mubr.f32.mxu0 %v9370_v62  ;;  %v8670_v62 = vpack.c.bf16 %v4706_v61, %v4705_v60  ;;  %v4893_v60 = vld [vmem:[#allocation53 + $0x160] sm:$0xff]  ;;  %v4894_v61 = vld [vmem:[#allocation53 + $0x168] sm:$0xff] }
0x1347   : > { %7576 = vmatmul.mubr.f32.gmra.mrb[34].mxu0 %v9372_v0  ;;  %v4708_v0 = vld [vmem:[#allocation53 + $0xe8] sm:$0xff] }
0x1348   : > { %8625 = vmatpush3.bf16.msra.mxu0 %v8622_v58  ;;  %v4704_v58 = vld [vmem:[#allocation53 + $0xc8] sm:$0xff] }
0x1349   : > { %8627 = vmatprep.subr.bf16.mxu0 %v8626_v63  ;;  %v8666_v59 = vpack.c.bf16 %v4704_v58, %v4703_v57  ;;  %v4890_v57 = vld [vmem:[#allocation53 + $0x148] sm:$0xff] }
0x134c   : > { %8629 = vmatpush3.bf16.msra.mxu0 %v8626_v63  ;;  %v4707_v63 = vld [vmem:[#allocation53 + $0xe0] sm:$0xff] }
0x134d   : > { %8631 = vmatprep.subr.bf16.mxu0 %v8630_v3  ;;  %v8674_v1 = vpack.c.bf16 %v4708_v0, %v4707_v63  ;;  %v4896_v63 = vld [vmem:[#allocation53 + $0x178] sm:$0xff]  ;;  %v4986_v0 = vld [vmem:[#allocation53 + $0x180] sm:$0xff] }
0x1350   : > { %8633 = vmatpush3.bf16.msra.mxu0 %v8630_v3  ;;  %v4710_v3 = vld [vmem:[#allocation53 + $0xf8] sm:$0xff] }
0x1351   : > { %8635 = vmatprep.subr.bf16.mxu0 %v8634_v6 }
0x1354   : > { %8637 = vmatpush3.bf16.msra.mxu0 %v8634_v6  ;;  %v8682_v6 = vpack.c.bf16 %v4680_v5, %v4679_v4  ;;  %v5211_v5 = vld [vmem:[#allocation54] sm:$0xff] }
0x1355   : > { %8639 = vmatprep.subr.bf16.mxu0 %v8638_v9 }
0x1358   : > { %8641 = vmatpush3.bf16.msra.mxu0 %v8638_v9  ;;  %v8686_v9 = vpack.c.bf16 %v4682_v8, %v4681_v7  ;;  %v5213_v7 = vld [vmem:[#allocation54 + $0x10] sm:$0xff]  ;;  %v4990_v8 = vld [vmem:[#allocation53 + $0x1a0] sm:$0xff] }
0x1359   : > { %8643 = vmatprep.subr.bf16.mxu0 %v8642_v12 }
0x135c   : > { %8645 = vmatpush3.bf16.msra.mxu0 %v8642_v12  ;;  %v8690_v12 = vpack.c.bf16 %v4684_v11, %v4683_v10  ;;  %v5214_v11 = vld [vmem:[#allocation54 + $0x18] sm:$0xff] }
0x135d   : > { %8647 = vmatprep.subr.bf16.mxu0 %v8646_v15 }
0x1360   : > { %8649 = vmatpush3.bf16.msra.mxu0 %v8646_v15  ;;  %v8694_v15 = vpack.c.bf16 %v4686_v14, %v4685_v13  ;;  %v5215_v13 = vld [vmem:[#allocation54 + $0x20] sm:$0xff]  ;;  %v5216_v14 = vld [vmem:[#allocation54 + $0x28] sm:$0xff] }
0x1361   : > { %8651 = vmatprep.subr.bf16.mxu0 %v8650_v21 }
0x1416   : > { %v7574_v24 = vpop.f32.mrb[32].mxu0 }
0x1417   : > { %v4554_v27 = vadd.f32 %v7574_v24, %v6042_v23  ;;  %v4548_v29 = vpop.f32.mrb[33].mxu0  ;;  %v4691_v24 = vld [vmem:[#allocation53 + $0x60] sm:$0xff] }
0x1418   : > { %v4549_v33 = vadd.f32 %v6042_v23, %v4548_v29  ;;  %v4881_v29 = vld [vmem:[#allocation53 + $0x100] sm:$0xff] }
0x1419   : > { %5444 = vst [vmem:[%s11617_s8 + $0x40] sm:$0xff] %v4554_v27 }
0x141a   : > { %5443 = vst [vmem:[%s11617_s8 + $0x18] sm:$0xff] %v4549_v33  ;;  %v7577_v43 = vpop.f32.mrb[34].mxu0  ;;  %7610 = vmatprep.mubr.f32.mxu0 %v4549_v33  ;;  %v4882_v33 = vld [vmem:[#allocation53 + $0x108] sm:$0xff] }
0x141b   : > { %v4564_v48 = vadd.f32 %v7577_v43, %v6042_v23  ;;  %v4558_v49 = vpop.f32.mrb[35].mxu0  ;;  %7611 = vmatmul.mubr.f32.vlgmr.msra.gmra.mrb[36].mxu0 %v4554_v27  ;;  %v4694_v27 = vld [vmem:[#allocation53 + $0x78] sm:$0xff]  ;;  %v4883_v43 = vld [vmem:[#allocation53 + $0x110] sm:$0xff] }
0x141c   : > { %v4559_v50 = vadd.f32 %v6042_v23, %v4558_v49  ;;  %8653 = vmatpush3.bf16.msra.mxu0 %v8650_v21  ;;  %v8698_v21 = vpack.c.bf16 %v4688_v19, %v4687_v16  ;;  %v4690_v23 = vld [vmem:[#allocation53 + $0x58] sm:$0xff]  ;;  %v8718_v47 = vpack.c.bf16 %v4884_v45, %v4883_v43  ;;  %v4886_v49 = vld [vmem:[#allocation53 + $0x128] sm:$0xff]  ;;  %v4992_v16 = vld [vmem:[#allocation53 + $0x1b0] sm:$0xff] }
0x141d   : > { %5446 = vst [vmem:[%s11617_s8 + $0x90] sm:$0xff] %v4564_v48  ;;  %8655 = vmatprep.subr.bf16.mxu0 %v8654_v37  ;;  %v4993_v19 = vld [vmem:[#allocation53 + $0x1b8] sm:$0xff]  ;;  %v5223_v45 = vld [vmem:[#allocation54 + $0x60] sm:$0xff] }
0x141e   : > { %5445 = vst [vmem:[%s11617_s8 + $0x68] sm:$0xff] %v4559_v50  ;;  %7613 = vmatprep.mubr.f32.mxu0 %v4559_v50 }
0x141f   : > { %7614 = vmatmul.mubr.f32.gmra.mrb[38].mxu0 %v4564_v48  ;;  %v4885_v48 = vld [vmem:[#allocation53 + $0x120] sm:$0xff] }
0x1420   : > { %8657 = vmatpush3.bf16.msra.mxu0 %v8654_v37  ;;  %7648 = vmatprep.mubr.f32.mxu0 %v11653_v44  ;;  %v8678_v44 = vpack.c.bf16 %v4710_v3, %v4709_v2  ;;  %v8714_v37 = vpack.c.bf16 %v4882_v33, %v4881_v29  ;;  %v8722_v50 = vpack.c.bf16 %v4886_v49, %v4885_v48  ;;  %v4988_v3 = vld [vmem:[#allocation53 + $0x190] sm:$0xff]  ;;  %v4998_v33 = vld [vmem:[#allocation53 + $0x1e0] sm:$0xff] }
0x1421   : > { %8659 = vmatprep.subr.bf16.mxu0 %v8658_v51  ;;  %v5000_v49 = vld [vmem:[#allocation53 + $0x1f0] sm:$0xff] }
0x1424   : > { %8661 = vmatpush3.bf16.msra.mxu0 %v8658_v51  ;;  %v4887_v51 = vld [vmem:[#allocation53 + $0x130] sm:$0xff] }
0x1425   : > { %8663 = vmatprep.subr.bf16.mxu0 %v8662_v56  ;;  %v8726_v55 = vpack.c.bf16 %v4888_v52, %v4887_v51 }
0x1428   : > { %8665 = vmatpush3.bf16.msra.mxu0 %v8662_v56  ;;  %v4889_v56 = vld [vmem:[#allocation53 + $0x140] sm:$0xff] }
0x1429   : > { %8667 = vmatprep.subr.bf16.mxu0 %v8666_v59  ;;  %v8730_v58 = vpack.c.bf16 %v4890_v57, %v4889_v56  ;;  %v5092_v56 = vld [vmem:[#allocation53 + $0x208] sm:$0xff] }
0x142c   : > { %8669 = vmatpush3.bf16.msra.mxu0 %v8666_v59  ;;  %v4892_v59 = vld [vmem:[#allocation53 + $0x158] sm:$0xff] }
0x142d   : > { %8671 = vmatprep.subr.bf16.mxu0 %v8670_v62 }
0x1430   : > { %8673 = vmatpush3.bf16.msra.mxu0 %v8670_v62  ;;  %v4895_v62 = vld [vmem:[#allocation53 + $0x170] sm:$0xff] }
0x1431   : > { %8675 = vmatprep.subr.bf16.mxu0 %v8674_v1 }
0x1434   : > { %8677 = vmatpush3.bf16.msra.mxu0 %v8674_v1  ;;  %v4987_v1 = vld [vmem:[#allocation53 + $0x188] sm:$0xff] }
0x1435   : > { %8679 = vmatprep.subr.bf16.mxu0 %v8678_v44  ;;  %v8746_v2 = vpack.c.bf16 %v4987_v1, %v4986_v0  ;;  %v5100_v0 = vld [vmem:[#allocation53 + $0x248] sm:$0xff]  ;;  %v5102_v1 = vld [vmem:[#allocation53 + $0x258] sm:$0xff] }
0x1438   : > { %8681 = vmatpush3.bf16.msra.mxu0 %v8678_v44  ;;  %v4989_v44 = vld [vmem:[#allocation53 + $0x198] sm:$0xff] }
0x1439   : > { %8683 = vmatprep.subr.bf16.mxu0 %v8682_v6  ;;  %v8750_v4 = vpack.c.bf16 %v4989_v44, %v4988_v3  ;;  %v5106_v3 = vld [vmem:[#allocation53 + $0x278] sm:$0xff] }
0x143b   : > { %7649 = vmatmul.mubr.f32.vlgmr.msra.gmra.mrb[40].mxu0 %v11655_v46  ;;  %v4689_v46 = vld [vmem:[#allocation53 + $0x50] sm:$0xff] }
0x143c   : > { %7651 = vmatprep.mubr.f32.mxu0 %v11661_v54  ;;  %8685 = vmatpush3.bf16.msra.mxu0 %v8682_v6  ;;  %v8702_v54 = vpack.c.bf16 %v4690_v23, %v4689_v46  ;;  %v5212_v6 = vld [vmem:[#allocation54 + $0x8] sm:$0xff]  ;;  %v5218_v46 = vld [vmem:[#allocation54 + $0x38] sm:$0xff]  ;;  %v4994_v23 = vld [vmem:[#allocation53 + $0x1c0] sm:$0xff] }
0x143d   : > { %8687 = vmatprep.subr.bf16.mxu0 %v8686_v9  ;;  %v8810_v10 = vpack.c.bf16 %v5212_v6, %v5211_v5 }
0x143f   : > { %7652 = vmatmul.mubr.f32.gmra.mrb[42].mxu0 %v11658_v53  ;;  %v8706_v53 = vpack.c.bf16 %v4692_v25, %v4691_v24  ;;  %8811 = vmatprep.subr.bf16.mxu1 %v8810_v10  ;;  %v5219_v25 = vld [vmem:[#allocation54 + $0x40] sm:$0xff] }
0x1440   : > { %8689 = vmatpush3.bf16.msra.mxu0 %v8686_v9  ;;  %7686 = vmatprep.mubr.f32.mxu0 %v11636_v17  ;;  %v8710_v17 = vpack.c.bf16 %v4694_v27, %v4693_v26  ;;  %v4991_v9 = vld [vmem:[#allocation53 + $0x1a8] sm:$0xff]  ;;  %v4996_v26 = vld [vmem:[#allocation53 + $0x1d0] sm:$0xff]  ;;  %v4997_v27 = vld [vmem:[#allocation53 + $0x1d8] sm:$0xff] }
0x1441   : > { %8691 = vmatprep.subr.bf16.mxu0 %v8690_v12  ;;  %8813 = vmatpush3.bf16.msra.mxu1 %v8810_v10  ;;  %v8766_v29 = vpack.c.bf16 %v4997_v27, %v4996_v26  ;;  %v5325_v26 = vld [vmem:[#allocation56 + $0x10] sm:$0xff]  ;;  %v5326_v27 = vld [vmem:[#allocation56 + $0x18] sm:$0xff] }
0x1444   : > { %8693 = vmatpush3.bf16.msra.mxu0 %v8690_v12  ;;  %v8814_v12 = vpack.c.bf16 %v5214_v11, %v5213_v7 }
0x1445   : > { %8695 = vmatprep.subr.bf16.mxu0 %v8694_v15 }
0x1446   : > { %8815 = vmatprep.subr.bf16.mxu1 %v8814_v12 }
0x1447   : > { %8817 = vmatpush3.bf16.msra.mxu1 %v8814_v12 }
0x1448   : > { %8697 = vmatpush3.bf16.msra.mxu0 %v8694_v15  ;;  %v8754_v15 = vpack.c.bf16 %v4991_v9, %v4990_v8 }
0x1449   : > { %8699 = vmatprep.subr.bf16.mxu0 %v8698_v21 }
0x144c   : > { %8701 = vmatpush3.bf16.msra.mxu0 %v8698_v21  ;;  %v8818_v21 = vpack.c.bf16 %v5216_v14, %v5215_v13 }
0x144d   : > { %8703 = vmatprep.subr.bf16.mxu0 %v8702_v54 }
0x144e   : > { %8819 = vmatprep.subr.bf16.mxu1 %v8818_v21 }
0x144f   : > { %8821 = vmatpush3.bf16.msra.mxu1 %v8818_v21  ;;  %v5226_v21 = vld [vmem:[#allocation54 + $0x78] sm:$0xff] }
0x1450   : > { %8705 = vmatpush3.bf16.msra.mxu0 %v8702_v54  ;;  %v4995_v54 = vld [vmem:[#allocation53 + $0x1c8] sm:$0xff] }
0x1451   : > { %8707 = vmatprep.subr.bf16.mxu0 %v8706_v53 }
0x1454   : > { %8709 = vmatpush3.bf16.msra.mxu0 %v8706_v53  ;;  %v5220_v53 = vld [vmem:[#allocation54 + $0x48] sm:$0xff] }
0x1455   : > { %8711 = vmatprep.subr.bf16.mxu0 %v8710_v17  ;;  %v8826_v30 = vpack.c.bf16 %v5220_v53, %v5219_v25 }
0x1458   : > { %8713 = vmatpush3.bf16.msra.mxu0 %v8710_v17  ;;  %v5222_v17 = vld [vmem:[#allocation54 + $0x58] sm:$0xff] }
0x1459   : > { %8715 = vmatprep.subr.bf16.mxu0 %v8714_v37 }
0x145b   : > { %7687 = vmatmul.mubr.f32.vlgmr.msra.gmra.mrb[40].mxu0 %v11638_v18  ;;  %v4891_v18 = vld [vmem:[#allocation53 + $0x150] sm:$0xff] }
0x145c   : > { %7689 = vmatprep.mubr.f32.mxu0 %v11644_v22  ;;  %8717 = vmatpush3.bf16.msra.mxu0 %v8714_v37  ;;  %v8734_v22 = vpack.c.bf16 %v4892_v59, %v4891_v18  ;;  %v4999_v37 = vld [vmem:[#allocation53 + $0x1e8] sm:$0xff]  ;;  %v5094_v18 = vld [vmem:[#allocation53 + $0x218] sm:$0xff] }
0x145d   : > { %8719 = vmatprep.subr.bf16.mxu0 %v8718_v47  ;;  %v8770_v48 = vpack.c.bf16 %v4999_v37, %v4998_v33  ;;  %v8846_v37 = vpack.c.bf16 %v5326_v27, %v5325_v26 }
0x145f   : > { %7690 = vmatmul.mubr.f32.gmra.mrb[42].mxu0 %v11641_v20  ;;  %v8738_v20 = vpack.c.bf16 %v4894_v61, %v4893_v60  ;;  %v5096_v60 = vld [vmem:[#allocation53 + $0x228] sm:$0xff] }
0x1460   : > { %8721 = vmatpush3.bf16.msra.mxu0 %v8718_v47  ;;  %7724 = vmatprep.mubr.f32.mxu0 %v11681_v32  ;;  %v8742_v32 = vpack.c.bf16 %v4896_v63, %v4895_v62  ;;  %v5224_v47 = vld [vmem:[#allocation54 + $0x68] sm:$0xff]  ;;  %v5098_v62 = vld [vmem:[#allocation53 + $0x238] sm:$0xff] }
0x1461   : > { %8723 = vmatprep.subr.bf16.mxu0 %v8722_v50  ;;  %v8834_v51 = vpack.c.bf16 %v5224_v47, %v5223_v45  ;;  %v5327_v45 = vld [vmem:[#allocation56 + $0x20] sm:$0xff]  ;;  %v5328_v47 = vld [vmem:[#allocation56 + $0x28] sm:$0xff] }
0x1464   : > { %8725 = vmatpush3.bf16.msra.mxu0 %v8722_v50  ;;  %v5001_v50 = vld [vmem:[#allocation53 + $0x1f8] sm:$0xff] }
0x1465   : > { %8727 = vmatprep.subr.bf16.mxu0 %v8726_v55  ;;  %v8774_v52 = vpack.c.bf16 %v5001_v50, %v5000_v49  ;;  %v8850_v50 = vpack.c.bf16 %v5328_v47, %v5327_v45 }
0x1468   : > { %8729 = vmatpush3.bf16.msra.mxu0 %v8726_v55  ;;  %v5091_v55 = vld [vmem:[#allocation53 + $0x200] sm:$0xff] }
0x1469   : > { %8731 = vmatprep.subr.bf16.mxu0 %v8730_v58  ;;  %v8778_v57 = vpack.c.bf16 %v5092_v56, %v5091_v55  ;;  %v5331_v56 = vld [vmem:[#allocation56 + $0x40] sm:$0xff] }
0x146c   : > { %8733 = vmatpush3.bf16.msra.mxu0 %v8730_v58  ;;  %v5093_v58 = vld [vmem:[#allocation53 + $0x210] sm:$0xff] }
0x146d   : > { %8735 = vmatprep.subr.bf16.mxu0 %v8734_v22  ;;  %v8782_v59 = vpack.c.bf16 %v5094_v18, %v5093_v58  ;;  %v5333_v18 = vld [vmem:[#allocation56 + $0x50] sm:$0xff] }
0x1470   : > { %8737 = vmatpush3.bf16.msra.mxu0 %v8734_v22  ;;  %v5095_v22 = vld [vmem:[#allocation53 + $0x220] sm:$0xff] }
0x1471   : > { %8739 = vmatprep.subr.bf16.mxu0 %v8738_v20  ;;  %v8786_v61 = vpack.c.bf16 %v5096_v60, %v5095_v22  ;;  %v5335_v60 = vld [vmem:[#allocation56 + $0x60] sm:$0xff] }
0x1474   : > { %8741 = vmatpush3.bf16.msra.mxu0 %v8738_v20  ;;  %v5097_v20 = vld [vmem:[#allocation53 + $0x230] sm:$0xff] }
0x1475   : > { %8743 = vmatprep.subr.bf16.mxu0 %v8742_v32  ;;  %v8790_v63 = vpack.c.bf16 %v5098_v62, %v5097_v20  ;;  %v5337_v62 = vld [vmem:[#allocation56 + $0x70] sm:$0xff] }
0x1478   : > { %8745 = vmatpush3.bf16.msra.mxu0 %v8742_v32  ;;  %v5099_v32 = vld [vmem:[#allocation53 + $0x240] sm:$0xff] }
0x1479   : > { %8747 = vmatprep.subr.bf16.mxu0 %v8746_v2  ;;  %v8794_v28 = vpack.c.bf16 %v5100_v0, %v5099_v32  ;;  %v6045_v0 = vld [vmem:[%s12106_s24] ss:$0 sm:$0xff] }
0x147b   : > { %7725 = vmatmul.mubr.f32.vlgmr.msra.gmra.mrb[40].mxu0 %v11683_v34  ;;  %v5217_v34 = vld [vmem:[#allocation54 + $0x30] sm:$0xff] }
0x147c   : > { %7727 = vmatprep.mubr.f32.mxu0 %v11687_v41  ;;  %8749 = vmatpush3.bf16.msra.mxu0 %v8746_v2  ;;  %v8758_v41 = vpack.c.bf16 %v4993_v19, %v4992_v16  ;;  %v8822_v24 = vpack.c.bf16 %v5218_v46, %v5217_v34  ;;  %v5104_v2 = vld [vmem:[#allocation53 + $0x268] sm:$0xff]  ;;  %v5225_v19 = vld [vmem:[#allocation54 + $0x70] sm:$0xff]  ;;  %v5323_v46 = vld [vmem:[#allocation56] sm:$0xff] }
0x147d   : > { %8751 = vmatprep.subr.bf16.mxu0 %v8750_v4  ;;  %v8838_v34 = vpack.c.bf16 %v5226_v21, %v5225_v19 }
0x147e   : > { %8823 = vmatprep.subr.bf16.mxu1 %v8822_v24 }
0x147f   : > { %7728 = vmatmul.mubr.f32.gmra.mrb[42].mxu0 %v11689_v42  ;;  %v8762_v42 = vpack.c.bf16 %v4995_v54, %v4994_v23  ;;  %8825 = vmatpush3.bf16.msra.mxu1 %v8822_v24  ;;  %v6044_v54 = vld [vmem:[%s12105_s12] ss:$0 sm:$0xff] }
0x1480   : > { %8753 = vmatpush3.bf16.msra.mxu0 %v8750_v4  ;;  %7762 = vmatprep.mubr.f32.mxu0 %v3916_v31  ;;  %v5221_v31 = vld [vmem:[#allocation54 + $0x50] sm:$0xff]  ;;  %v6043_v4 = vld [vmem:[%s12104_s1] ss:$0 sm:$0xff] }
0x1481   : > { %8755 = vmatprep.subr.bf16.mxu0 %v8754_v15  ;;  %8827 = vmatprep.subr.bf16.mxu1 %v8826_v30  ;;  %v8830_v43 = vpack.c.bf16 %v5222_v17, %v5221_v31 }
0x1483   : > { %8829 = vmatpush3.bf16.msra.mxu1 %v8826_v30 }
0x1484   : > { %8757 = vmatpush3.bf16.msra.mxu0 %v8754_v15  ;;  %8831 = vmatprep.subr.bf16.mxu1 %v8830_v43 }
0x1485   : > { %8759 = vmatprep.subr.bf16.mxu0 %v8758_v41 }
0x1487   : > { %8833 = vmatpush3.bf16.msra.mxu1 %v8830_v43 }
0x1488   : > { %8761 = vmatpush3.bf16.msra.mxu0 %v8758_v41  ;;  %8835 = vmatprep.subr.bf16.mxu1 %v8834_v51  ;;  %v5324_v41 = vld [vmem:[#allocation56 + $0x8] sm:$0xff] }
0x1489   : > { %8763 = vmatprep.subr.bf16.mxu0 %v8762_v42  ;;  %v8842_v23 = vpack.c.bf16 %v5324_v41, %v5323_v46 }
0x148b   : > { %8837 = vmatpush3.bf16.msra.mxu1 %v8834_v51  ;;  %v5329_v51 = vld [vmem:[#allocation56 + $0x30] sm:$0xff] }
0x148c   : > { %8765 = vmatpush3.bf16.msra.mxu0 %v8762_v42  ;;  %8839 = vmatprep.subr.bf16.mxu1 %v8838_v34 }
0x148d   : > { %8767 = vmatprep.subr.bf16.mxu0 %v8766_v29 }
0x148f   : > { %8841 = vmatpush3.bf16.msra.mxu1 %v8838_v34 }
0x1490   : > { %8769 = vmatpush3.bf16.msra.mxu0 %v8766_v29  ;;  %8843 = vmatprep.subr.bf16.mxu1 %v8842_v23 }
0x1491   : > { %8771 = vmatprep.subr.bf16.mxu0 %v8770_v48 }
0x1494   : > { %8773 = vmatpush3.bf16.msra.mxu0 %v8770_v48 }
0x1495   : > { %8775 = vmatprep.subr.bf16.mxu0 %v8774_v52 }
0x1498   : > { %8777 = vmatpush3.bf16.msra.mxu0 %v8774_v52  ;;  %v5330_v52 = vld [vmem:[#allocation56 + $0x38] sm:$0xff] }
0x1499   : > { %8779 = vmatprep.subr.bf16.mxu0 %v8778_v57  ;;  %v8854_v55 = vpack.c.bf16 %v5330_v52, %v5329_v51 }
0x149b   : > { %7763 = vmatmul.mubr.f32.vlgmr.msra.gmra.mrb[40].mxu0 %v3917_v35  ;;  %v5101_v35 = vld [vmem:[#allocation53 + $0x250] sm:$0xff] }
0x149c   : > { %7765 = vmatprep.mubr.f32.mxu0 %v3918_v39  ;;  %8781 = vmatpush3.bf16.msra.mxu0 %v8778_v57  ;;  %v8798_v38 = vpack.c.bf16 %v5102_v1, %v5101_v35  ;;  %v5103_v39 = vld [vmem:[#allocation53 + $0x260] sm:$0xff]  ;;  %v5332_v57 = vld [vmem:[#allocation56 + $0x48] sm:$0xff] }
0x149d   : > { %8783 = vmatprep.subr.bf16.mxu0 %v8782_v59  ;;  %v8802_v36 = vpack.c.bf16 %v5104_v2, %v5103_v39  ;;  %v8858_v58 = vpack.c.bf16 %v5332_v57, %v5331_v56 }
0x149f   : > { %7766 = vmatmul.mubr.f32.gmra.mrb[42].mxu0 %v3919_v40  ;;  %v5105_v40 = vld [vmem:[#allocation53 + $0x270] sm:$0xff] }
0x14a0   : > { %8785 = vmatpush3.bf16.msra.mxu0 %v8782_v59  ;;  %v8806_v44 = vpack.c.bf16 %v5106_v3, %v5105_v40  ;;  %v5334_v59 = vld [vmem:[#allocation56 + $0x58] sm:$0xff] }
0x14a1   : > { %8787 = vmatprep.subr.bf16.mxu0 %v8786_v61  ;;  %v8862_v22 = vpack.c.bf16 %v5334_v59, %v5333_v18 }
0x14a4   : > { %8789 = vmatpush3.bf16.msra.mxu0 %v8786_v61  ;;  %v5336_v61 = vld [vmem:[#allocation56 + $0x68] sm:$0xff] }
0x14a5   : > { %8791 = vmatprep.subr.bf16.mxu0 %v8790_v63  ;;  %v8866_v20 = vpack.c.bf16 %v5336_v61, %v5335_v60 }
0x14a8   : > { %8793 = vmatpush3.bf16.msra.mxu0 %v8790_v63  ;;  %v5338_v63 = vld [vmem:[#allocation56 + $0x78] sm:$0xff] }
0x14a9   : > { %8795 = vmatprep.subr.bf16.mxu0 %v8794_v28  ;;  %v8870_v32 = vpack.c.bf16 %v5338_v63, %v5337_v62 }
0x14ac   : > { %8797 = vmatpush3.bf16.msra.mxu0 %v8794_v28 }
0x14ad   : > { %8799 = vmatprep.subr.bf16.mxu0 %v8798_v38 }
0x14b0   : > { %8801 = vmatpush3.bf16.msra.mxu0 %v8798_v38 }
0x14b1   : > { %8803 = vmatprep.subr.bf16.mxu0 %v8802_v36 }
0x14b4   : > { %8805 = vmatpush3.bf16.msra.mxu0 %v8802_v36 }
0x14b5   : > { %8807 = vmatprep.subr.bf16.mxu0 %v8806_v44 }
0x14b8   : > { %8809 = vmatpush3.bf16.msra.mxu0 %v8806_v44 }
0x14ee   : > { %v7612_v5 = vpop.f32.mrb[36].mxu0 }
0x14ef   : > { %v4662_v6 = vadd.f32 %v7612_v5, %v6043_v4  ;;  %v4656_v7 = vpop.f32.mrb[37].mxu0 }
0x14f0   : > { %v4657_v8 = vadd.f32 %v6043_v4, %v4656_v7 }
0x14f1   : > { %v4676_v11 = vmax.f32 %v4662_v6, 0.0  ;;  %v6046_v6 = vld [vmem:[%s12107_s3] ss:$0 sm:$0xff] }
0x14f2   : > { %v4675_v9 = vmax.f32 %v4657_v8, 0.0  ;;  %v7615_v10 = vpop.f32.mrb[38].mxu0 }
0x14f3   : > { %v4672_v12 = vadd.f32 %v7615_v10, %v6043_v4  ;;  %v4666_v13 = vpop.f32.mrb[39].mxu0 }
0x14f4   : > { %v4667_v14 = vadd.f32 %v6043_v4, %v4666_v13  ;;  %7800 = vmatprep.mubr.f32.mxu0 %v4675_v9 }
0x14f5   : > { %7801 = vmatmul.mubr.f32.vlgmr.msra.gmra.mrb[40].mxu0 %v4676_v11  ;;  %v4678_v16 = vmax.f32 %v4672_v12, 0.0 }
0x14f6   : > { %v4677_v15 = vmax.f32 %v4667_v14, 0.0 }
0x14f8   : > { %7803 = vmatprep.mubr.f32.mxu0 %v4677_v15 }
0x14f9   : > { %7804 = vmatmul.mubr.f32.gmra.mrb[42].mxu0 %v4678_v16 }
0x15c8   : > { %v7802_v24 = vpop.f32.mrb[40].mxu0 }
0x15c9   : > { %v5204_v25 = vadd.f32 %v7802_v24, %v6044_v54  ;;  %v5173_v53 = vpop.f32.mrb[41].mxu0 }
0x15ca   : > { %v5203_v42 = vadd.f32 %v6044_v54, %v5173_v53 }
0x15cb   : > { %v5208_v17 = vmax.f32 %v5204_v25, 0.0 }
0x15cc   : > { %v5207_v30 = vmax.f32 %v5203_v42, 0.0  ;;  %v7805_v31 = vpop.f32.mrb[42].mxu0 }
0x15cd   : > { %v5206_v29 = vadd.f32 %v7805_v31, %v6044_v54  ;;  %v5183_v33 = vpop.f32.mrb[43].mxu0 }
0x15ce   : > { %v5205_v43 = vadd.f32 %v6044_v54, %v5183_v33  ;;  %7838 = vmatprep.mubr.f32.mxu1 %v5207_v30 }
0x15cf   : > { %7839 = vmatmul.mubr.f32.vlgmr.msra.gmra.mrb[32].mxu1 %v5208_v17  ;;  %v5210_v49 = vmax.f32 %v5206_v29, 0.0 }
0x15d0   : > { %v5209_v48 = vmax.f32 %v5205_v43, 0.0  ;;  %8845 = vmatpush3.bf16.msra.mxu1 %v8842_v23 }
0x15d1   : > { %8847 = vmatprep.subr.bf16.mxu1 %v8846_v37 }
0x15d2   : > { %7841 = vmatprep.mubr.f32.mxu1 %v5209_v48 }
0x15d3   : > { %7842 = vmatmul.mubr.f32.gmra.mrb[34].mxu1 %v5210_v49 }
0x15d4   : > { %8849 = vmatpush3.bf16.msra.mxu1 %v8846_v37 }
0x15d5   : > { %8851 = vmatprep.subr.bf16.mxu1 %v8850_v50 }
0x15d8   : > { %8853 = vmatpush3.bf16.msra.mxu1 %v8850_v50 }
0x15d9   : > { %8855 = vmatprep.subr.bf16.mxu1 %v8854_v55 }
0x15dc   : > { %8857 = vmatpush3.bf16.msra.mxu1 %v8854_v55 }
0x15dd   : > { %8859 = vmatprep.subr.bf16.mxu1 %v8858_v58 }
0x15e0   : > { %8861 = vmatpush3.bf16.msra.mxu1 %v8858_v58 }
0x15e1   : > { %8863 = vmatprep.subr.bf16.mxu1 %v8862_v22 }
0x15e4   : > { %8865 = vmatpush3.bf16.msra.mxu1 %v8862_v22 }
0x15e5   : > { %8867 = vmatprep.subr.bf16.mxu1 %v8866_v20 }
0x15e8   : > { %8869 = vmatpush3.bf16.msra.mxu1 %v8866_v20 }
0x15e9   : > { %8871 = vmatprep.subr.bf16.mxu1 %v8870_v32 }
0x15ec   : > { %8873 = vmatpush3.bf16.msra.mxu1 %v8870_v32 }
0x16a2   : > { %v7840_v28 = vpop.f32.mrb[32].mxu1 }
0x16a3   : > { %v5306_v35 = vadd.f32 %v7840_v28, %v6045_v0  ;;  %v5300_v1 = vpop.f32.mrb[33].mxu1 }
0x16a4   : > { %v5301_v38 = vadd.f32 %v6045_v0, %v5300_v1 }
0x16a6   : > { %9373 = vtanh.f32 %v5301_v38  ;;  %v7843_v39 = vpop.f32.mrb[34].mxu1 }
0x16a7   : > { %9375 = vtanh.f32 %v5306_v35  ;;  %v5316_v2 = vadd.f32 %v7843_v39, %v6045_v0  ;;  %v5310_v36 = vpop.f32.mrb[35].mxu1 }
0x16a8   : > { %v5311_v40 = vadd.f32 %v6045_v0, %v5310_v36 }
0x16aa   : > { %9377 = vtanh.f32 %v5311_v40 }
0x16ab   : > { %9379 = vtanh.f32 %v5316_v2 }
0x16b0   : > { %v9374_v3 = vpop.eup %9373 }
0x16b1   : > { %v9376_v44 = vpop.eup %9375  ;;  %7876 = vmatprep.mubr.f32.mxu1 %v9374_v3 }
0x16b2   : > { %7877 = vmatmul.mubr.f32.vlgmr.msra.gmra.mrb[36].mxu1 %v9376_v44 }
0x16b4   : > { %v9378_v4 = vpop.eup %9377 }
0x16b5   : > { %v9380_v5 = vpop.eup %9379  ;;  %7879 = vmatprep.mubr.f32.mxu1 %v9378_v4 }
0x16b6   : > { %7880 = vmatmul.mubr.f32.gmra.mrb[38].mxu1 %v9380_v5 }
0x1785   : > { %v7878_v7 = vpop.f32.mrb[36].mxu1 }
0x1786   : > { %v5418_v8 = vadd.f32 %v7878_v7, %v6046_v6  ;;  %v5412_v9 = vpop.f32.mrb[37].mxu1 }
0x1787   : > { %v5413_v10 = vadd.f32 %v6046_v6, %v5412_v9 }
0x1788   : > { %5448 = vst [vmem:[%s11617_s8 + $0x48] sm:$0xff] %v5418_v8 }
0x1789   : > { %5447 = vst [vmem:[%s11617_s8 + $0x20] sm:$0xff] %v5413_v10  ;;  %v7881_v11 = vpop.f32.mrb[38].mxu1 }
0x178a   : > { %v5428_v12 = vadd.f32 %v7881_v11, %v6046_v6  ;;  %v5422_v13 = vpop.f32.mrb[39].mxu1 }
0x178b   : > { %v5423_v14 = vadd.f32 %v6046_v6, %v5422_v13 }
0x178c   : > { %5450 = vst [vmem:[%s11617_s8 + $0x98] sm:$0xff] %v5428_v12 }
0x178d   : > { %5449 = vst [vmem:[%s11617_s8 + $0x70] sm:$0xff] %v5423_v14 }
0x178e PF: > { %s12108_s22 = sld [smem:[#allocation125_spill]]  ;;  %s12109_s4 = sld [smem:[#allocation121_spill]] }
0x178f   : > { %s5466_s18 = sshll.u32 %s11617_s8, 4  ;;  %s11787_s21 = scalar_lea.sflag [#allocation5], %s1874_s28  ;;  %s11783_s18 = int_to_ptr.vmem [resolvable:$true] %s5466_s18 }
0x1790   : > { %s10299_s14 = scalar_lea.vmem %s11783_s18, 2560  ;;  %p12110_p2 = scmp.ne.s32.totalorder %s12006_s19, 0 }
0x1791   : > { %p10300_p3 = scmp.ne.s32.totalorder %s11783_s18, %s10299_s14  ;;  %s10605_s6 = smov [#allocation57]  }
0x1792   : > { %s10303_s10 = sshll.u32 %s10605_s6, 4  ;;  %s10304_s10 = int_to_ptr.vmem [resolvable:$false] %s10303_s10 }
0x1793   : > { %p10301_p9 = pnand %p10300_p3, %p12110_p2  ;;  %s10305_s11 = scalar_lea.vmem %s10304_s10, 5120 }
0x1794   : > { %s8915_s26 = smul.u32 2560, %s12108_s22  ;;  %p10306_p5 = scmp.lt.s32.totalorder %s11783_s18, %s10304_s10 }
0x1795   : > { %p10302_p11 = pneg %p10301_p9  ;;  %p10307_p13 = scmp.lt.s32.totalorder %s10305_s11, %s10299_s14 }
0x1796   : > { %s11781_s9 = scalar_lea.hbm %s12109_s4, %s8915_s26 }
0x1797   : > { %p10308_p7 = por %p10307_p13, %p10306_p5 }
0x1799   : > { %p10309_p8 = pnand %p10308_p7, %p10302_p11 }
0x179b   : > { %10312 = shalt.err (!%p10309_p8)
}
0x179c   : > { %s10313_s28 = scalar_lea.hbm %s11781_s9, 2560  ;;  %s10317_s8 = scalar_lea.hbm %s12109_s4, 5120 }
0x179d   : > { %p10314_p12 = scmp.ne.s32.totalorder %s11781_s9, %s10313_s28  ;;  %p10318_p6 = scmp.lt.u32.totalorder %s11781_s9, %s12109_s4 }
0x179e   : > { %p10319_p0 = scmp.lt.u32.totalorder %s10317_s8, %s10313_s28  ;;  %p10321_p3 = scmp.lt.u32.totalorder %s10313_s28, %s11781_s9 }
0x179f   : > { %p10315_p10 = pnand %p10314_p12, %p12110_p2 }
0x17a0   : > { %p10320_p1 = por %p10319_p0, %p10318_p6 }
0x17a1   : > { %p10316_p4 = pneg %p10315_p10 }
0x17a2   : > { %p10322_p9 = por %p10321_p3, %p10320_p1 }
0x17a4   : > { %p10323_p11 = pnand %p10322_p9, %p10316_p4 }
0x17a6   : > { %10326 = shalt.err (!%p10323_p11)
}
0x17a7   : > { %s10606_s5 = smov 640   ;;  %s10607_s1 = smov 40  }
0x17a8   : > { %9052 = dma.vmem_to_hbm [thread:$0]  (%p12110_p2), %s11783_s18, 2560, %s11781_s9, %s11787_s21, %s10606_s5, %s10606_s5, %s10607_s1  }
0x17a9 PF: > { %s12111_s12 = sld [smem:[#allocation134_spill]]  ;;  %p9132_p5 = scmp.ge.s32.totalorder %s10517_s17, 2 }
0x17aa   : > { %s5481_s24 = sand.u32 1, %s10465_s0  }
0x17ab   : > { %s5482_s3 = scalar_lea.sflag [#allocation5], %s5481_s24 }
0x17af   : > { %p12112_p13 = scmp.ne.s32.totalorder %s12111_s12, 0 }
0x17b1   : > { %p9062_p7 = pnand %p9132_p5, %p12112_p13 }
0x17b3   : > { %10460 = dma.done.wait (!%p9062_p7), %s5482_s3, 2560  }
0x17b4   : > { %10462 = vsyncadd (!%p9062_p7), %s5482_s3, 4294964736  ;;  %s126_s17 = sadd.s32 1, %s10517_s17   ;;  %s12114_s19 = sld [smem:[#allocation122_spill]] }
0x17b5   : > { %p11812_p8 = scmp.ge.s32.totalorder %s126_s17, 10   ;;  %s12115_s10 = sld [smem:[#allocation133_spill]] }
0x17b6   : > { %s12116_s26 = sld [smem:[#allocation131_spill]]  ;;  %s12117_s18 = sld [smem:[#allocation123_spill]] }
0x17b7   : > { %s12118_s9 = sld [smem:[#allocation132_spill]]  ;;  %s12119_s21 = sld [smem:[#allocation126_spill]] }
0x17b8   : > { %s12120_s1 = sld [smem:[#allocation127_spill]]  ;;  %s12121_s14 = sld [smem:[#allocation129_spill]] }
0x17b9   : > { %s12123_s0 = smov %s10469_s7  ;;  %s12125_s11 = smov %s10481_s15 }
0x17ba   : > { %s12124_s7 = smov %s12114_s19  ;;  %s12126_s15 = smov %s10485_s16 }
0x17bb   : > { %s12128_s22 = smov %s10497_s23  ;;  %s12131_s28 = smov %s10513_s2 }
0x17bc   : > { %s12127_s16 = smov %s12116_s26  ;;  %125 = sbr.rel (!%p11812_p8) target bundleno = 122 (0x7a), region = 443 }
0x17bd   : > { %s12129_s23 = smov %s12118_s9  ;;  %s12130_s26 = smov %s12119_s21 }
0x17be   : > { %s12132_s2 = smov %s12121_s14 }
0x17c3   :  { %5487 = vsyncpa [#allocation4], 1 }
0x17c4   :  { %5489 = vsyncpa [#allocation4 + $0x1], 1 }
0x17c5   :  { %5490 = vsyncpa [#allocation7], 1 }
0x17c6   :  { %5492 = vsyncpa [#allocation7 + $0x1], 1 }
0x17c7   :  { %5493 = vsyncpa [#allocation10], 1 }
0x17c8   :  { %5494 = vsyncpa [#allocation13], 1 }
0x17c9   :  { %5495 = vsyncpa [#allocation16], 1 }
0x17ca   :  { %5496 = vsyncpa [#allocation19], 1 }
0x17cb   :  { %5497 = vsyncpa [#allocation22], 1 }
0x17cc   :  { %5498 = vsyncpa [#allocation25], 1 }
0x17cd   :  { %5499 = vsyncpa [#allocation28], 1 }
0x17ce   :  { %5500 = vsyncpa [#allocation31], 1 }
0x17cf   :  { %5501 = vsyncpa [#allocation34], 1 }
0x17d0   :  { %5502 = vsyncpa [#allocation37], 1 }
0x17d1   :  { %5503 = vsyncpa [#allocation40], 1 }
0x17d2   :  { %5504 = vsyncpa [#allocation43], 1 }
0x17d3   :  { %5505 = vsyncpa [#allocation46], 1 }
0x17d4   :  { %5506 = vsyncpa [#allocation49], 1 }
0x17d5   :  { %5507 = vsyncpa [#allocation52], 1 }
0x17d6   :  { %5508 = vsyncpa [#allocation55], 1 }
0x17d7   :  { %5509 = vsyncpa [#allocation5], 1 }
0x17d8   :  { %5511 = vsyncpa [#allocation5 + $0x1], 1 }

</bundles_post_ra>
